<compile_context>
chip_gen: v7x
topology: tpu7x:2x2x1
jax: 0.10.0
libtpu: 0.0.40
codegen_flags: <defaults>
</compile_context>

<pallas_src>
import functools
import math

import jax
import jax.numpy as jnp
from jax.experimental import pallas as pl
from jax.experimental.pallas import tpu as pltpu


# MXU operands use bf16 (with f32 accumulation); elementwise math (LayerNorm, softmax,
# GELU) stays in f32.  Set to jnp.float32 for exact-parity runs.
_MXU_DTYPE = jnp.bfloat16
_LN_EPS = 1e-5


def _gelu(x):
    # TODO(synk): PyTorch nn.GELU default is the exact erf form; tanh approximation is
    # used here for a guaranteed Mosaic lowering (~1e-3 relative difference).
    c = math.sqrt(2.0 / math.pi)
    return 0.5 * x * (1.0 + jnp.tanh(c * (x + 0.044715 * x * x * x)))


def _round_up(x, m):
    return (x + m - 1) // m * m


def _pick_tile(dim, preferred, align):
    """Largest `align`-multiple divisor of `dim` that is <= preferred; falls back to the
    full dim (a full-extent block is always legal)."""
    hi = min(preferred, dim)
    start = hi - hi % align
    for cand in range(start, 0, -align):
        if dim % cand == 0:
            return cand
    return dim


def _choose_row_tile(M, preferred=256):
    """Row tile: prefer MXU-shaped 256-row tiles; small-M calls use a single padded tile."""
    if M >= preferred:
        return preferred
    return _round_up(M, 8)


# ------------------------------ Tiled matmul (+bias, +activation, +fused residual) ------------------------------

def _mm_kernel(*refs, activation, has_residual):
    if has_residual:
        x_ref, w_ref, b_ref, res_ref, o_ref, acc_ref = refs
    else:
        x_ref, w_ref, b_ref, o_ref, acc_ref = refs
        res_ref = None

    @pl.when(pl.program_id(2) == 0)
    def _():
        acc_ref[...] = jnp.zeros_like(acc_ref)

    acc_ref[...] += jnp.dot(
        x_ref[...].astype(_MXU_DTYPE),
        w_ref[...].astype(_MXU_DTYPE),
        preferred_element_type=jnp.float32,
    )

    @pl.when(pl.program_id(2) == pl.num_programs(2) - 1)
    def _():
        acc = acc_ref[...] + b_ref[...].astype(jnp.float32)
        if activation == "gelu":
            acc = _gelu(acc)
        if has_residual:
            acc = acc + res_ref[...].astype(jnp.float32)   # free VPU filler in the epilogue
        o_ref[...] = acc.astype(o_ref.dtype)


def matmul_bias(x, w, b, activation="none", residual=None,
                out_dtype=jnp.float32, *, tm=256, tn=512, tk=512):
    """y = activation(x @ w + b) [+ residual]; tiled (M//tm, N//tn, K//tk) grid with an
    fp32 VMEM accumulator. M is padded up to a multiple of tm (padded rows sliced off)."""
    M, K = x.shape
    _, N = w.shape
    tm = _choose_row_tile(M, tm)
    Mp = _round_up(M, tm)
    tn = _pick_tile(N, tn, 128)
    tk = _pick_tile(K, tk, 128)
    # Avoid a degenerate single-step grid (no pipelining, one idle TC on v7x).
    if Mp // tm == 1 and N // tn == 1 and N // 128 >= 2:
        tn = _pick_tile(N, max(128, N // 2), 128)

    if Mp != M:
        x = jnp.pad(x, ((0, Mp - M), (0, 0)))
        if residual is not None:
            residual = jnp.pad(residual, ((0, Mp - M), (0, 0)))

    b2 = b.reshape(1, N).astype(jnp.float32)
    has_residual = residual is not None

    in_specs = [
        pl.BlockSpec((tm, tk), lambda i, j, k: (i, k)),
        pl.BlockSpec((tk, tn), lambda i, j, k: (k, j)),
        pl.BlockSpec((1, tn), lambda i, j, k: (0, j)),
    ]
    args = [x, w, b2]
    if has_residual:
        in_specs.append(pl.BlockSpec((tm, tn), lambda i, j, k: (i, j)))
        args.append(residual)

    out = pl.pallas_call(
        functools.partial(_mm_kernel, activation=activation, has_residual=has_residual),
        out_shape=jax.ShapeDtypeStruct((Mp, N), out_dtype),
        grid=(Mp // tm, N // tn, K // tk),
        in_specs=in_specs,
        out_specs=pl.BlockSpec((tm, tn), lambda i, j, k: (i, j)),
        scratch_shapes=[pltpu.VMEM((tm, tn), jnp.float32)],
        compiler_params=pltpu.CompilerParams(
            dimension_semantics=("parallel", "parallel", "arbitrary")),
    )(*args)
    return out[:M] if Mp != M else out


# ------------------------------ Fused LayerNorm + matmul (LN cached across N tiles) ------------------------------

def _ln_mm_kernel(x_ref, g_ref, bn_ref, w_ref, b_ref, o_ref, xn_ref, *, activation, eps):
    # LayerNorm is computed once per row tile (j == 0) and cached in bf16 VMEM scratch;
    # the x block index is j-invariant so no extra DMA is incurred.
    @pl.when(pl.program_id(1) == 0)
    def _():
        x = x_ref[...].astype(jnp.float32)
        mean = jnp.mean(x, axis=-1, keepdims=True)
        var = jnp.mean(jnp.square(x - mean), axis=-1, keepdims=True)
        xn = (x - mean) * jax.lax.rsqrt(var + eps)
        xn = xn * g_ref[...].astype(jnp.float32) + bn_ref[...].astype(jnp.float32)
        xn_ref[...] = xn.astype(_MXU_DTYPE)

    acc = jnp.dot(xn_ref[...], w_ref[...].astype(_MXU_DTYPE),
                  preferred_element_type=jnp.float32)
    acc = acc + b_ref[...].astype(jnp.float32)
    if activation == "gelu":
        acc = _gelu(acc)
    o_ref[...] = acc.astype(o_ref.dtype)


def layernorm_matmul_bias(x, gamma, beta, w, b, activation="none",
                          out_dtype=jnp.float32, *, tm=256, tn=512):
    """y = activation(LayerNorm(x) @ w + b); LN is computed in the matmul prologue.

    The contraction dim K (= feature dim of x) is kept un-split so LN sees full rows.
    The N axis is "arbitrary" so the LN cache is valid under megacore splitting.
    """
    M, K = x.shape
    _, N = w.shape
    tm = _choose_row_tile(M, tm)
    Mp = _round_up(M, tm)
    tn = _pick_tile(N, tn, 128)
    if Mp // tm == 1 and N // tn == 1 and N // 128 >= 2:
        tn = _pick_tile(N, max(128, N // 2), 128)
    if Mp != M:
        x = jnp.pad(x, ((0, Mp - M), (0, 0)))

    g2 = gamma.reshape(1, K).astype(jnp.float32)
    bn2 = beta.reshape(1, K).astype(jnp.float32)
    b2 = b.reshape(1, N).astype(jnp.float32)

    out = pl.pallas_call(
        functools.partial(_ln_mm_kernel, activation=activation, eps=_LN_EPS),
        out_shape=jax.ShapeDtypeStruct((Mp, N), out_dtype),
        grid=(Mp // tm, N // tn),
        in_specs=[
            pl.BlockSpec((tm, K), lambda i, j: (i, 0)),
            pl.BlockSpec((1, K), lambda i, j: (0, 0)),
            pl.BlockSpec((1, K), lambda i, j: (0, 0)),
            pl.BlockSpec((K, tn), lambda i, j: (0, j)),
            pl.BlockSpec((1, tn), lambda i, j: (0, j)),
        ],
        out_specs=pl.BlockSpec((tm, tn), lambda i, j: (i, j)),
        scratch_shapes=[pltpu.VMEM((tm, K), _MXU_DTYPE)],
        compiler_params=pltpu.CompilerParams(
            dimension_semantics=("parallel", "arbitrary")),
    )(x, g2, bn2, w, b2)
    return out[:M] if Mp != M else out


# ------------------------------ Multi-head self-attention ------------------------------

def _mhsa_kernel(qkv_ref, o_ref, *, n_heads, dh, scale):
    qkv_dim = n_heads * dh
    # TODO(synk): per-head contractions are only dh deep; grouping 2-4 heads per MXU pass
    # would raise occupancy further on the 256x256 MXU (v6e/v7x).
    for h in range(n_heads):                                   # static unroll over heads
        sl_q = slice(h * dh, (h + 1) * dh)
        sl_k = slice(qkv_dim + h * dh, qkv_dim + (h + 1) * dh)
        sl_v = slice(2 * qkv_dim + h * dh, 2 * qkv_dim + (h + 1) * dh)
        q_h = qkv_ref[0, :, sl_q]                              # (S, Dh) bf16, no f32 temp
        k_h = qkv_ref[0, :, sl_k]
        v_h = qkv_ref[0, :, sl_v]
        # QK^T via dot_general contracting the last axes (no explicit transpose of k).
        s = jax.lax.dot_general(q_h, k_h, (((1,), (1,)), ((), ())),
                                preferred_element_type=jnp.float32) * scale   # (S, S)
        s = s - jnp.max(s, axis=-1, keepdims=True)
        p = jnp.exp(s)
        p = p * pl.reciprocal(jnp.sum(p, axis=-1, keepdims=True), approx=True)
        o_h = jnp.dot(p.astype(_MXU_DTYPE), v_h, preferred_element_type=jnp.float32)
        o_ref[0, :, sl_q] = o_h.astype(o_ref.dtype)            # direct per-head store


def attention(qkv, n_heads):
    """qkv: (B, S, 3*QKV) fused bf16 projection; returns (B, S, QKV) in bf16."""
    B, S, three_qkv = qkv.shape
    qkv_dim = three_qkv // 3
    dh = qkv_dim // n_heads
    scale = 1.0 / math.sqrt(dh)
    return pl.pallas_call(
        functools.partial(_mhsa_kernel, n_heads=n_heads, dh=dh, scale=scale),
        out_shape=jax.ShapeDtypeStruct((B, S, qkv_dim), jnp.bfloat16),
        grid=(B,),
        in_specs=[pl.BlockSpec((1, S, three_qkv), lambda b: (b, 0, 0))],
        out_specs=pl.BlockSpec((1, S, qkv_dim), lambda b: (b, 0, 0)),
        compiler_params=pltpu.CompilerParams(dimension_semantics=("parallel",)),
    )(qkv)


# ------------------------------ Fused MLP head (Linear -> GELU -> Linear) ------------------------------

def _mlp_head_kernel(x_ref, w1_ref, b1_ref, w2_ref, b2_ref, o_ref):
    hmid = jnp.dot(x_ref[...].astype(_MXU_DTYPE), w1_ref[...].astype(_MXU_DTYPE),
                   preferred_element_type=jnp.float32) + b1_ref[...].astype(jnp.float32)
    hmid = _gelu(hmid)
    out = jnp.dot(hmid.astype(_MXU_DTYPE), w2_ref[...].astype(_MXU_DTYPE),
                  preferred_element_type=jnp.float32) + b2_ref[...].astype(jnp.float32)
    o_ref[...] = out.astype(o_ref.dtype)


def mlp_head(x, w1, b1, w2, b2):
    B, D = x.shape
    H = w1.shape[1]
    Ncls = w2.shape[1]
    return pl.pallas_call(
        _mlp_head_kernel,
        out_shape=jax.ShapeDtypeStruct((B, Ncls), jnp.float32),
        grid=(1,),
        in_specs=[
            pl.BlockSpec((B, D), lambda i: (0, 0)),
            pl.BlockSpec((D, H), lambda i: (0, 0)),
            pl.BlockSpec((1, H), lambda i: (0, 0)),
            pl.BlockSpec((H, Ncls), lambda i: (0, 0)),
            pl.BlockSpec((1, Ncls), lambda i: (0, 0)),
        ],
        out_specs=pl.BlockSpec((B, Ncls), lambda i: (0, 0)),
        compiler_params=pltpu.CompilerParams(dimension_semantics=("arbitrary",)),
    )(x, w1, b1.reshape(1, H), w2, b2.reshape(1, Ncls))


# ------------------------------ Parameter setup ------------------------------

def init_vit_params(key, channel, img_size, patch_size, d_dim, qkv_dim,
                    att_head_num, mlp_hidden_dim, n_layers,
                    mlp_head_hidden_dim, n_classes):
    n_patches = (img_size // patch_size) ** 2
    patch_dim = channel * patch_size * patch_size
    n_classes_pad = _round_up(n_classes, 128)          # lane-dense classifier output
    std = 0.02

    def nrm(k, shape):
        return (std * jax.random.normal(k, shape)).astype(_MXU_DTYPE)

    keys = iter(jax.random.split(key, 8 + 4 * n_layers))
    params = {
        "emb_w": nrm(next(keys), (patch_dim, d_dim)),
        "emb_b": jnp.zeros((d_dim,), jnp.float32),
        "cls": (std * jax.random.normal(next(keys), (1, 1, d_dim))).astype(jnp.float32),
        "pos": (std * jax.random.normal(next(keys), (1, n_patches + 1, d_dim))).astype(jnp.float32),
        "layers": [],
        "head_w1": nrm(next(keys), (qkv_dim, mlp_head_hidden_dim)),
        "head_b1": jnp.zeros((mlp_head_hidden_dim,), jnp.float32),
        # Zero-pad the class dim to a lane-dense width; logits are sliced back outside.
        "head_w2": jnp.pad(nrm(next(keys), (mlp_head_hidden_dim, n_classes)),
                           ((0, 0), (0, n_classes_pad - n_classes))),
        "head_b2": jnp.zeros((n_classes_pad,), jnp.float32),
    }
    for _ in range(n_layers):
        layer = {
            "ln1_g": jnp.ones((d_dim,), jnp.float32),
            "ln1_b": jnp.zeros((d_dim,), jnp.float32),
            "w_qkv": nrm(next(keys), (d_dim, 3 * qkv_dim)),   # fused [q | k | v] projection
            "b_qkv": jnp.zeros((3 * qkv_dim,), jnp.float32),
            "wo": nrm(next(keys), (qkv_dim, d_dim)),
            "bo": jnp.zeros((d_dim,), jnp.float32),
            "ln2_g": jnp.ones((d_dim,), jnp.float32),
            "ln2_b": jnp.zeros((d_dim,), jnp.float32),
            "mlp_w1": nrm(next(keys), (d_dim, mlp_hidden_dim)),
            "mlp_b1": jnp.zeros((mlp_hidden_dim,), jnp.float32),
            "mlp_w2": nrm(next(keys), (mlp_hidden_dim, d_dim)),
            "mlp_b2": jnp.zeros((d_dim,), jnp.float32),
        }
        params["layers"].append(layer)
    return params


# ------------------------------ Forward pass ------------------------------

def vit_forward(x, params, *, patch_size, att_head_num, n_classes):
    B, C, H, W = x.shape
    P = patch_size
    nh, nw = H // P, W // P
    N = nh * nw
    D = params["emb_w"].shape[1]
    QKV = params["layers"][0]["wo"].shape[0]
    Hn = att_head_num

    # Patchify: 'b c (h p1) (w p2) -> b (h w) (p1 p2 c)'
    patches = x.reshape(B, C, nh, P, nw, P)
    patches = patches.transpose(0, 2, 4, 3, 5, 1).reshape(B * N, P * P * C)

    # Linear projection of patches (tiled Pallas matmul); residual stream stays f32.
    emb = matmul_bias(patches, params["emb_w"], params["emb_b"]).reshape(B, N, D)

    # Prepend cls token, add positional embedding.
    cls = jnp.broadcast_to(params["cls"], (B, 1, D))
    h = jnp.concatenate([cls, emb], axis=1) + params["pos"]      # (B, S, D) f32
    S = N + 1
    h = h.reshape(B * S, D)                                       # 2-D residual stream

    for layer in params["layers"]:
        # ---- multi-head self-attention (pre-LN); LN fused into the QKV projection ----
        qkv = layernorm_matmul_bias(h, layer["ln1_g"], layer["ln1_b"],
                                    layer["w_qkv"], layer["b_qkv"],
                                    out_dtype=jnp.bfloat16)          # (B*S, 3*QKV) bf16
        o = attention(qkv.reshape(B, S, 3 * QKV), Hn)                # (B, S, QKV) bf16
        # Output projection with the residual add fused into the epilogue.
        h = matmul_bias(o.reshape(B * S, QKV), layer["wo"], layer["bo"],
                        residual=h)                                  # (B*S, D) f32

        # ---- MLP block (pre-LN); LN fused into the first MLP matmul ----
        m = layernorm_matmul_bias(h, layer["ln2_g"], layer["ln2_b"],
                                  layer["mlp_w1"], layer["mlp_b1"],
                                  activation="gelu", out_dtype=jnp.bfloat16)
        h = matmul_bias(m, layer["mlp_w2"], layer["mlp_b2"], residual=h)

    # Classification on the cls token; fused MLP head (Linear -> GELU -> Linear).
    cls_out = h.reshape(B, S, D)[:, 0, :]                            # (B, QKV) f32
    logits = mlp_head(cls_out, params["head_w1"], params["head_b1"],
                      params["head_w2"], params["head_b2"])          # (B, n_classes_pad)
    # NOTE: ViT.forward never applies self.acti, so raw logits are returned.
    return logits[:, :n_classes]


# ------------------------------ Main ------------------------------

if __name__ == "__main__":
    # Small, lane-friendly ViT config (feature dims are multiples of 128 where possible).
    channel, img_size, patch_size = 3, 16, 4
    d_dim, qkv_dim, att_head_num = 128, 128, 4
    mlp_hidden_dim, n_transform_layers = 256, 2
    mlp_head_hidden_dim, n_classes = 128, 10
    batch = 2

    key = jax.random.PRNGKey(0)
    k_x, k_p = jax.random.split(key)
    x = jax.random.normal(k_x, (batch, channel, img_size, img_size), dtype=jnp.float32)

    params = init_vit_params(
        k_p, channel, img_size, patch_size, d_dim, qkv_dim, att_head_num,
        mlp_hidden_dim, n_transform_layers, mlp_head_hidden_dim, n_classes)

    fwd = jax.jit(functools.partial(vit_forward,
                                    patch_size=patch_size,
                                    att_head_num=att_head_num,
                                    n_classes=n_classes))
    logits = fwd(x, params)
    jax.block_until_ready(logits)
    assert logits.shape == (batch, n_classes)
    print("KERNEL_OK")
</pallas_src>

<mosaic_0001>
module attributes {stable_mosaic.version = 11 : i64} {
  func.func @_mm_kernel(%arg0: i32, %arg1: i32, %arg2: i32, %arg3: memref<32x48xf32, #tpu.memory_space<vmem>>, %arg4: memref<48x128xbf16, #tpu.memory_space<vmem>>, %arg5: memref<1x128xf32, #tpu.memory_space<vmem>>, %arg6: memref<32x128xf32, #tpu.memory_space<vmem>>, %arg7: memref<32x128xf32, #tpu.memory_space<vmem>>) attributes {dimension_semantics = [#tpu.dimension_semantics<parallel>, #tpu.dimension_semantics<parallel>, #tpu.dimension_semantics<arbitrary>], iteration_bounds = array<i64: 1, 1, 1>, scalar_prefetch = 0 : i64, scratch_operands = 1 : i64, tpu.core_type = #tpu.core_type<tc>, window_params = [{transform_indices = @transform_0, window_bounds = array<i64: 32, 48>}, {transform_indices = @transform_1, window_bounds = array<i64: 48, 128>}, {transform_indices = @transform_2, window_bounds = array<i64: 1, 128>}, {transform_indices = @transform_3, window_bounds = array<i64: 32, 128>}]} {
    %c0_i32 = arith.constant 0 : i32
    %0 = arith.cmpi eq, %arg2, %c0_i32 : i32
    %1 = arith.extui %0 : i1 to i32
    %c0_i32_0 = arith.constant 0 : i32
    %2 = arith.cmpi ne, %1, %c0_i32_0 : i32
    scf.if %2 {
      %cst_10 = arith.constant 0.000000e+00 : f32
      %13 = vector.broadcast %cst_10 : f32 to vector<32x128xf32>
      %c0_11 = arith.constant 0 : index
      %c0_12 = arith.constant 0 : index
      %14 = vector.load %arg7[%c0_11, %c0_12] : memref<32x128xf32, #tpu.memory_space<vmem>>, vector<32x128xf32>
      tpu.vector_store %arg7[%c0_11, %c0_12], %13 {strides = array<i32>} : memref<32x128xf32, #tpu.memory_space<vmem>>, vector<32x128xf32>,
    } else {
    }
    %c0 = arith.constant 0 : index
    %c0_1 = arith.constant 0 : index
    %3 = vector.load %arg7[%c0, %c0_1] : memref<32x128xf32, #tpu.memory_space<vmem>>, vector<32x128xf32>
    %c0_2 = arith.constant 0 : index
    %c0_3 = arith.constant 0 : index
    %4 = vector.load %arg3[%c0_2, %c0_3] : memref<32x48xf32, #tpu.memory_space<vmem>>, vector<32x48xf32>
    %5 = arith.truncf %4 : vector<32x48xf32> to vector<32x48xbf16>
    %c0_4 = arith.constant 0 : index
    %c0_5 = arith.constant 0 : index
    %6 = vector.load %arg4[%c0_4, %c0_5] : memref<48x128xbf16, #tpu.memory_space<vmem>>, vector<48x128xbf16>
    %cst = arith.constant dense<0.000000e+00> : vector<32x128xf32>
    %7 = tpu.matmul %5, %6, %cst {dimension_numbers = #tpu.dot_dimension_numbers<[1], [0], [0], [1], [0, 0, 1, 1], [], []>} : vector<32x48xbf16>, vector<48x128xbf16>, vector<32x128xf32> -> vector<32x128xf32>
    %8 = arith.addf %3, %7 : vector<32x128xf32>
    %c0_6 = arith.constant 0 : index
    %c0_7 = arith.constant 0 : index
    %9 = vector.load %arg7[%c0_6, %c0_7] : memref<32x128xf32, #tpu.memory_space<vmem>>, vector<32x128xf32>
    tpu.vector_store %arg7[%c0_6, %c0_7], %8 {strides = array<i32>} : memref<32x128xf32, #tpu.memory_space<vmem>>, vector<32x128xf32>,
    %c0_i32_8 = arith.constant 0 : i32
    %10 = arith.cmpi eq, %arg2, %c0_i32_8 : i32
    %11 = arith.extui %10 : i1 to i32
    %c0_i32_9 = arith.constant 0 : i32
    %12 = arith.cmpi ne, %11, %c0_i32_9 : i32
    scf.if %12 {
      %c0_10 = arith.constant 0 : index
      %c0_11 = arith.constant 0 : index
      %13 = vector.load %arg7[%c0_10, %c0_11] : memref<32x128xf32, #tpu.memory_space<vmem>>, vector<32x128xf32>
      %c0_12 = arith.constant 0 : index
      %c0_13 = arith.constant 0 : index
      %14 = vector.load %arg5[%c0_12, %c0_13] : memref<1x128xf32, #tpu.memory_space<vmem>>, vector<1x128xf32>
      %15 = vector.broadcast %14 : vector<1x128xf32> to vector<32x128xf32>
      %16 = arith.addf %13, %15 : vector<32x128xf32>
      %c0_14 = arith.constant 0 : index
      %c0_15 = arith.constant 0 : index
      %17 = vector.load %arg6[%c0_14, %c0_15] : memref<32x128xf32, #tpu.memory_space<vmem>>, vector<32x128xf32>
      tpu.vector_store %arg6[%c0_14, %c0_15], %16 {strides = array<i32>} : memref<32x128xf32, #tpu.memory_space<vmem>>, vector<32x128xf32>,
    } else {
    }
    return
  }
  func.func @transform_0(%arg0: i32, %arg1: i32, %arg2: i32) -> (i32, i32) {
    %c0_i32 = arith.constant 0 : i32
    return %arg0, %arg2 : i32, i32
  }
  func.func @transform_1(%arg0: i32, %arg1: i32, %arg2: i32) -> (i32, i32) {
    %c0_i32 = arith.constant 0 : i32
    return %arg2, %arg1 : i32, i32
  }
  func.func @transform_2(%arg0: i32, %arg1: i32, %arg2: i32) -> (i32, i32) {
    %c0_i32 = arith.constant 0 : i32
    %c0_i32_0 = arith.constant 0 : i32
    return %c0_i32, %arg1 : i32, i32
  }
  func.func @transform_3(%arg0: i32, %arg1: i32, %arg2: i32) -> (i32, i32) {
    %c0_i32 = arith.constant 0 : i32
    return %arg0, %arg1 : i32, i32
  }
}

module attributes {stable_mosaic.version = 11 : i64} {
  func.func @_ln_mm_kernel(%arg0: i32, %arg1: i32, %arg2: memref<40x128xf32, #tpu.memory_space<vmem>>, %arg3: memref<1x128xf32, #tpu.memory_space<vmem>>, %arg4: memref<1x128xf32, #tpu.memory_space<vmem>>, %arg5: memref<128x128xbf16, #tpu.memory_space<vmem>>, %arg6: memref<1x128xf32, #tpu.memory_space<vmem>>, %arg7: memref<40x128xbf16, #tpu.memory_space<vmem>>, %arg8: memref<40x128xbf16, #tpu.memory_space<vmem>>) attributes {dimension_semantics = [#tpu.dimension_semantics<parallel>, #tpu.dimension_semantics<arbitrary>], iteration_bounds = array<i64: 1, 3>, scalar_prefetch = 0 : i64, scratch_operands = 1 : i64, tpu.core_type = #tpu.core_type<tc>, window_params = [{transform_indices = @transform_0, window_bounds = array<i64: 40, 128>}, {pipeline_mode = #tpu.pipeline_mode<synchronous>, transform_indices = @transform_1, window_bounds = array<i64: 1, 128>}, {pipeline_mode = #tpu.pipeline_mode<synchronous>, transform_indices = @transform_2, window_bounds = array<i64: 1, 128>}, {transform_indices = @transform_3, window_bounds = array<i64: 128, 128>}, {transform_indices = @transform_4, window_bounds = array<i64: 1, 128>}, {transform_indices = @transform_5, window_bounds = array<i64: 40, 128>}]} {
    %c0_i32 = arith.constant 0 : i32
    %0 = arith.cmpi eq, %arg1, %c0_i32 : i32
    %1 = arith.extui %0 : i1 to i32
    %c0_i32_0 = arith.constant 0 : i32
    %2 = arith.cmpi ne, %1, %c0_i32_0 : i32
    scf.if %2 {
      %c0_8 = arith.constant 0 : index
      %c0_9 = arith.constant 0 : index
      %11 = vector.load %arg2[%c0_8, %c0_9] : memref<40x128xf32, #tpu.memory_space<vmem>>, vector<40x128xf32>
      %cst_10 = arith.constant dense<0.000000e+00> : vector<40xf32>
      %12 = vector.multi_reduction <add>, %11, %cst_10 [1] : vector<40x128xf32> to vector<40xf32>
      %13 = vector.shape_cast %12 : vector<40xf32> to vector<40x1xf32>
      %cst_11 = arith.constant 1.280000e+02 : f32
      %14 = vector.broadcast %cst_11 : f32 to vector<40x1xf32>
      %15 = arith.divf %13, %14 : vector<40x1xf32>
      %16 = vector.broadcast %15 : vector<40x1xf32> to vector<40x128xf32>
      %17 = arith.subf %11, %16 : vector<40x128xf32>
      %18 = arith.mulf %17, %17 : vector<40x128xf32>
      %cst_12 = arith.constant dense<0.000000e+00> : vector<40xf32>
      %19 = vector.multi_reduction <add>, %18, %cst_12 [1] : vector<40x128xf32> to vector<40xf32>
      %20 = vector.shape_cast %19 : vector<40xf32> to vector<40x1xf32>
      %cst_13 = arith.constant 1.280000e+02 : f32
      %21 = vector.broadcast %cst_13 : f32 to vector<40x1xf32>
      %22 = arith.divf %20, %21 : vector<40x1xf32>
      %23 = vector.broadcast %15 : vector<40x1xf32> to vector<40x128xf32>
      %24 = arith.subf %11, %23 : vector<40x128xf32>
      %cst_14 = arith.constant 9.99999974E-6 : f32
      %25 = vector.broadcast %cst_14 : f32 to vector<40x1xf32>
      %26 = arith.addf %22, %25 : vector<40x1xf32>
      %27 = math.rsqrt %26 : vector<40x1xf32>
      %28 = vector.broadcast %27 : vector<40x1xf32> to vector<40x128xf32>
      %29 = arith.mulf %24, %28 : vector<40x128xf32>
      %c0_15 = arith.constant 0 : index
      %c0_16 = arith.constant 0 : index
      %30 = vector.load %arg3[%c0_15, %c0_16] : memref<1x128xf32, #tpu.memory_space<vmem>>, vector<1x128xf32>
      %31 = vector.broadcast %30 : vector<1x128xf32> to vector<40x128xf32>
      %32 = arith.mulf %29, %31 : vector<40x128xf32>
      %c0_17 = arith.constant 0 : index
      %c0_18 = arith.constant 0 : index
      %33 = vector.load %arg4[%c0_17, %c0_18] : memref<1x128xf32, #tpu.memory_space<vmem>>, vector<1x128xf32>
      %34 = vector.broadcast %33 : vector<1x128xf32> to vector<40x128xf32>
      %35 = arith.addf %32, %34 : vector<40x128xf32>
      %36 = arith.truncf %35 : vector<40x128xf32> to vector<40x128xbf16>
      %c0_19 = arith.constant 0 : index
      %c0_20 = arith.constant 0 : index
      %37 = vector.load %arg8[%c0_19, %c0_20] : memref<40x128xbf16, #tpu.memory_space<vmem>>, vector<40x128xbf16>
      tpu.vector_store %arg8[%c0_19, %c0_20], %36 {strides = array<i32>} : memref<40x128xbf16, #tpu.memory_space<vmem>>, vector<40x128xbf16>,
    } else {
    }
    %c0 = arith.constant 0 : index
    %c0_1 = arith.constant 0 : index
    %3 = vector.load %arg8[%c0, %c0_1] : memref<40x128xbf16, #tpu.memory_space<vmem>>, vector<40x128xbf16>
    %c0_2 = arith.constant 0 : index
    %c0_3 = arith.constant 0 : index
    %4 = vector.load %arg5[%c0_2, %c0_3] : memref<128x128xbf16, #tpu.memory_space<vmem>>, vector<128x128xbf16>
    %cst = arith.constant dense<0.000000e+00> : vector<40x128xf32>
    %5 = tpu.matmul %3, %4, %cst {dimension_numbers = #tpu.dot_dimension_numbers<[1], [0], [0], [1], [0, 0, 1, 1], [], []>} : vector<40x128xbf16>, vector<128x128xbf16>, vector<40x128xf32> -> vector<40x128xf32>
    %c0_4 = arith.constant 0 : index
    %c0_5 = arith.constant 0 : index
    %6 = vector.load %arg6[%c0_4, %c0_5] : memref<1x128xf32, #tpu.memory_space<vmem>>, vector<1x128xf32>
    %7 = vector.broadcast %6 : vector<1x128xf32> to vector<40x128xf32>
    %8 = arith.addf %5, %7 : vector<40x128xf32>
    %9 = arith.truncf %8 : vector<40x128xf32> to vector<40x128xbf16>
    %c0_6 = arith.constant 0 : index
    %c0_7 = arith.constant 0 : index
    %10 = vector.load %arg7[%c0_6, %c0_7] : memref<40x128xbf16, #tpu.memory_space<vmem>>, vector<40x128xbf16>
    tpu.vector_store %arg7[%c0_6, %c0_7], %9 {strides = array<i32>} : memref<40x128xbf16, #tpu.memory_space<vmem>>, vector<40x128xbf16>,
    return
  }
  func.func @transform_0(%arg0: i32, %arg1: i32) -> (i32, i32) {
    %c0_i32 = arith.constant 0 : i32
    %c0_i32_0 = arith.constant 0 : i32
    return %arg0, %c0_i32 : i32, i32
  }
  func.func @transform_1(%arg0: i32, %arg1: i32) -> (i32, i32) {
    %c0_i32 = arith.constant 0 : i32
    %c0_i32_0 = arith.constant 0 : i32
    %c0_i32_1 = arith.constant 0 : i32
    return %c0_i32, %c0_i32_0 : i32, i32
  }
  func.func @transform_2(%arg0: i32, %arg1: i32) -> (i32, i32) {
    %c0_i32 = arith.constant 0 : i32
    %c0_i32_0 = arith.constant 0 : i32
    %c0_i32_1 = arith.constant 0 : i32
    return %c0_i32, %c0_i32_0 : i32, i32
  }
  func.func @transform_3(%arg0: i32, %arg1: i32) -> (i32, i32) {
    %c0_i32 = arith.constant 0 : i32
    %c0_i32_0 = arith.constant 0 : i32
    return %c0_i32, %arg1 : i32, i32
  }
  func.func @transform_4(%arg0: i32, %arg1: i32) -> (i32, i32) {
    %c0_i32 = arith.constant 0 : i32
    %c0_i32_0 = arith.constant 0 : i32
    return %c0_i32, %arg1 : i32, i32
  }
  func.func @transform_5(%arg0: i32, %arg1: i32) -> (i32, i32) {
    %c0_i32 = arith.constant 0 : i32
    return %arg0, %arg1 : i32, i32
  }
}

module attributes {stable_mosaic.version = 11 : i64} {
  func.func @_mhsa_kernel(%arg0: i32, %arg1: memref<1x17x384xbf16, #tpu.memory_space<vmem>>, %arg2: memref<1x17x128xbf16, #tpu.memory_space<vmem>>) attributes {dimension_semantics = [#tpu.dimension_semantics<parallel>], iteration_bounds = array<i64: 2>, scalar_prefetch = 0 : i64, scratch_operands = 0 : i64, tpu.core_type = #tpu.core_type<tc>, window_params = [{transform_indices = @transform_0, window_bounds = array<i64: 1, 17, 384>}, {transform_indices = @transform_1, window_bounds = array<i64: 1, 17, 128>}]} {
    %c0 = arith.constant 0 : index
    %c0_0 = arith.constant 0 : index
    %c0_1 = arith.constant 0 : index
    %0 = vector.load %arg1[%c0, %c0_0, %c0_1] : memref<1x17x384xbf16, #tpu.memory_space<vmem>>, vector<1x17x32xbf16>
    %1 = vector.shape_cast %0 : vector<1x17x32xbf16> to vector<17x32xbf16>
    %c0_2 = arith.constant 0 : index
    %c0_3 = arith.constant 0 : index
    %c128 = arith.constant 128 : index
    %2 = vector.load %arg1[%c0_2, %c0_3, %c128] : memref<1x17x384xbf16, #tpu.memory_space<vmem>>, vector<1x17x32xbf16>
    %3 = vector.shape_cast %2 : vector<1x17x32xbf16> to vector<17x32xbf16>
    %c0_4 = arith.constant 0 : index
    %c0_5 = arith.constant 0 : index
    %c256 = arith.constant 256 : index
    %4 = vector.load %arg1[%c0_4, %c0_5, %c256] : memref<1x17x384xbf16, #tpu.memory_space<vmem>>, vector<1x17x32xbf16>
    %5 = vector.shape_cast %4 : vector<1x17x32xbf16> to vector<17x32xbf16>
    %cst = arith.constant dense<0.000000e+00> : vector<17x17xf32>
    %6 = tpu.matmul %1, %3, %cst {dimension_numbers = #tpu.dot_dimension_numbers<[1], [1], [0], [0], [0, 0, 1, 0], [], []>} : vector<17x32xbf16>, vector<17x32xbf16>, vector<17x17xf32> -> vector<17x17xf32>
    %cst_6 = arith.constant 0.176776692 : f32
    %7 = vector.broadcast %cst_6 : f32 to vector<17x17xf32>
    %8 = arith.mulf %6, %7 : vector<17x17xf32>
    %cst_7 = arith.constant dense<0xFF800000> : vector<17xf32>
    %9 = vector.multi_reduction <maximumf>, %8, %cst_7 [1] : vector<17x17xf32> to vector<17xf32>
    %10 = vector.shape_cast %9 : vector<17xf32> to vector<17x1xf32>
    %11 = vector.broadcast %10 : vector<17x1xf32> to vector<17x17xf32>
    %12 = arith.subf %8, %11 : vector<17x17xf32>
    %13 = math.exp %12 : vector<17x17xf32>
    %cst_8 = arith.constant dense<0.000000e+00> : vector<17xf32>
    %14 = vector.multi_reduction <add>, %13, %cst_8 [1] : vector<17x17xf32> to vector<17xf32>
    %15 = vector.shape_cast %14 : vector<17xf32> to vector<17x1xf32>
    %16 = tpu.reciprocal %15 {approx = true} : vector<17x1xf32> -> vector<17x1xf32>
    %17 = vector.broadcast %16 : vector<17x1xf32> to vector<17x17xf32>
    %18 = arith.mulf %13, %17 : vector<17x17xf32>
    %19 = arith.truncf %18 : vector<17x17xf32> to vector<17x17xbf16>
    %cst_9 = arith.constant dense<0.000000e+00> : vector<17x32xf32>
    %20 = tpu.matmul %19, %5, %cst_9 {dimension_numbers = #tpu.dot_dimension_numbers<[1], [0], [0], [1], [0, 0, 1, 1], [], []>} : vector<17x17xbf16>, vector<17x32xbf16>, vector<17x32xf32> -> vector<17x32xf32>
    %21 = arith.truncf %20 : vector<17x32xf32> to vector<17x32xbf16>
    %c0_10 = arith.constant 0 : index
    %c0_11 = arith.constant 0 : index
    %c0_12 = arith.constant 0 : index
    %22 = vector.load %arg2[%c0_10, %c0_11, %c0_12] : memref<1x17x128xbf16, #tpu.memory_space<vmem>>, vector<1x17x32xbf16>
    %23 = vector.shape_cast %22 : vector<1x17x32xbf16> to vector<17x32xbf16>
    %24 = vector.shape_cast %21 : vector<17x32xbf16> to vector<1x17x32xbf16>
    tpu.vector_store %arg2[%c0_10, %c0_11, %c0_12], %24 {strides = array<i32>} : memref<1x17x128xbf16, #tpu.memory_space<vmem>>, vector<1x17x32xbf16>,
    %c0_13 = arith.constant 0 : index
    %c0_14 = arith.constant 0 : index
    %c32 = arith.constant 32 : index
    %25 = vector.load %arg1[%c0_13, %c0_14, %c32] : memref<1x17x384xbf16, #tpu.memory_space<vmem>>, vector<1x17x32xbf16>
    %26 = vector.shape_cast %25 : vector<1x17x32xbf16> to vector<17x32xbf16>
    %c0_15 = arith.constant 0 : index
    %c0_16 = arith.constant 0 : index
    %c160 = arith.constant 160 : index
    %27 = vector.load %arg1[%c0_15, %c0_16, %c160] : memref<1x17x384xbf16, #tpu.memory_space<vmem>>, vector<1x17x32xbf16>
    %28 = vector.shape_cast %27 : vector<1x17x32xbf16> to vector<17x32xbf16>
    %c0_17 = arith.constant 0 : index
    %c0_18 = arith.constant 0 : index
    %c288 = arith.constant 288 : index
    %29 = vector.load %arg1[%c0_17, %c0_18, %c288] : memref<1x17x384xbf16, #tpu.memory_space<vmem>>, vector<1x17x32xbf16>
    %30 = vector.shape_cast %29 : vector<1x17x32xbf16> to vector<17x32xbf16>
    %cst_19 = arith.constant dense<0.000000e+00> : vector<17x17xf32>
    %31 = tpu.matmul %26, %28, %cst_19 {dimension_numbers = #tpu.dot_dimension_numbers<[1], [1], [0], [0], [0, 0, 1, 0], [], []>} : vector<17x32xbf16>, vector<17x32xbf16>, vector<17x17xf32> -> vector<17x17xf32>
    %cst_20 = arith.constant 0.176776692 : f32
    %32 = vector.broadcast %cst_20 : f32 to vector<17x17xf32>
    %33 = arith.mulf %31, %32 : vector<17x17xf32>
    %cst_21 = arith.constant dense<0xFF800000> : vector<17xf32>
    %34 = vector.multi_reduction <maximumf>, %33, %cst_21 [1] : vector<17x17xf32> to vector<17xf32>
    %35 = vector.shape_cast %34 : vector<17xf32> to vector<17x1xf32>
    %36 = vector.broadcast %35 : vector<17x1xf32> to vector<17x17xf32>
    %37 = arith.subf %33, %36 : vector<17x17xf32>
    %38 = math.exp %37 : vector<17x17xf32>
    %cst_22 = arith.constant dense<0.000000e+00> : vector<17xf32>
    %39 = vector.multi_reduction <add>, %38, %cst_22 [1] : vector<17x17xf32> to vector<17xf32>
    %40 = vector.shape_cast %39 : vector<17xf32> to vector<17x1xf32>
    %41 = tpu.reciprocal %40 {approx = true} : vector<17x1xf32> -> vector<17x1xf32>
    %42 = vector.broadcast %41 : vector<17x1xf32> to vector<17x17xf32>
    %43 = arith.mulf %38, %42 : vector<17x17xf32>
    %44 = arith.truncf %43 : vector<17x17xf32> to vector<17x17xbf16>
    %cst_23 = arith.constant dense<0.000000e+00> : vector<17x32xf32>
    %45 = tpu.matmul %44, %30, %cst_23 {dimension_numbers = #tpu.dot_dimension_numbers<[1], [0], [0], [1], [0, 0, 1, 1], [], []>} : vector<17x17xbf16>, vector<17x32xbf16>, vector<17x32xf32> -> vector<17x32xf32>
    %46 = arith.truncf %45 : vector<17x32xf32> to vector<17x32xbf16>
    %c0_24 = arith.constant 0 : index
    %c0_25 = arith.constant 0 : index
    %c32_26 = arith.constant 32 : index
    %47 = vector.load %arg2[%c0_24, %c0_25, %c32_26] : memref<1x17x128xbf16, #tpu.memory_space<vmem>>, vector<1x17x32xbf16>
    %48 = vector.shape_cast %47 : vector<1x17x32xbf16> to vector<17x32xbf16>
    %49 = vector.shape_cast %46 : vector<17x32xbf16> to vector<1x17x32xbf16>
    tpu.vector_store %arg2[%c0_24, %c0_25, %c32_26], %49 {strides = array<i32>} : memref<1x17x128xbf16, #tpu.memory_space<vmem>>, vector<1x17x32xbf16>,
    %c0_27 = arith.constant 0 : index
    %c0_28 = arith.constant 0 : index
    %c64 = arith.constant 64 : index
    %50 = vector.load %arg1[%c0_27, %c0_28, %c64] : memref<1x17x384xbf16, #tpu.memory_space<vmem>>, vector<1x17x32xbf16>
    %51 = vector.shape_cast %50 : vector<1x17x32xbf16> to vector<17x32xbf16>
    %c0_29 = arith.constant 0 : index
    %c0_30 = arith.constant 0 : index
    %c192 = arith.constant 192 : index
    %52 = vector.load %arg1[%c0_29, %c0_30, %c192] : memref<1x17x384xbf16, #tpu.memory_space<vmem>>, vector<1x17x32xbf16>
    %53 = vector.shape_cast %52 : vector<1x17x32xbf16> to vector<17x32xbf16>
    %c0_31 = arith.constant 0 : index
    %c0_32 = arith.constant 0 : index
    %c320 = arith.constant 320 : index
    %54 = vector.load %arg1[%c0_31, %c0_32, %c320] : memref<1x17x384xbf16, #tpu.memory_space<vmem>>, vector<1x17x32xbf16>
    %55 = vector.shape_cast %54 : vector<1x17x32xbf16> to vector<17x32xbf16>
    %cst_33 = arith.constant dense<0.000000e+00> : vector<17x17xf32>
    %56 = tpu.matmul %51, %53, %cst_33 {dimension_numbers = #tpu.dot_dimension_numbers<[1], [1], [0], [0], [0, 0, 1, 0], [], []>} : vector<17x32xbf16>, vector<17x32xbf16>, vector<17x17xf32> -> vector<17x17xf32>
    %cst_34 = arith.constant 0.176776692 : f32
    %57 = vector.broadcast %cst_34 : f32 to vector<17x17xf32>
    %58 = arith.mulf %56, %57 : vector<17x17xf32>
    %cst_35 = arith.constant dense<0xFF800000> : vector<17xf32>
    %59 = vector.multi_reduction <maximumf>, %58, %cst_35 [1] : vector<17x17xf32> to vector<17xf32>
    %60 = vector.shape_cast %59 : vector<17xf32> to vector<17x1xf32>
    %61 = vector.broadcast %60 : vector<17x1xf32> to vector<17x17xf32>
    %62 = arith.subf %58, %61 : vector<17x17xf32>
    %63 = math.exp %62 : vector<17x17xf32>
    %cst_36 = arith.constant dense<0.000000e+00> : vector<17xf32>
    %64 = vector.multi_reduction <add>, %63, %cst_36 [1] : vector<17x17xf32> to vector<17xf32>
    %65 = vector.shape_cast %64 : vector<17xf32> to vector<17x1xf32>
    %66 = tpu.reciprocal %65 {approx = true} : vector<17x1xf32> -> vector<17x1xf32>
    %67 = vector.broadcast %66 : vector<17x1xf32> to vector<17x17xf32>
    %68 = arith.mulf %63, %67 : vector<17x17xf32>
    %69 = arith.truncf %68 : vector<17x17xf32> to vector<17x17xbf16>
    %cst_37 = arith.constant dense<0.000000e+00> : vector<17x32xf32>
    %70 = tpu.matmul %69, %55, %cst_37 {dimension_numbers = #tpu.dot_dimension_numbers<[1], [0], [0], [1], [0, 0, 1, 1], [], []>} : vector<17x17xbf16>, vector<17x32xbf16>, vector<17x32xf32> -> vector<17x32xf32>
    %71 = arith.truncf %70 : vector<17x32xf32> to vector<17x32xbf16>
    %c0_38 = arith.constant 0 : index
    %c0_39 = arith.constant 0 : index
    %c64_40 = arith.constant 64 : index
    %72 = vector.load %arg2[%c0_38, %c0_39, %c64_40] : memref<1x17x128xbf16, #tpu.memory_space<vmem>>, vector<1x17x32xbf16>
    %73 = vector.shape_cast %72 : vector<1x17x32xbf16> to vector<17x32xbf16>
    %74 = vector.shape_cast %71 : vector<17x32xbf16> to vector<1x17x32xbf16>
    tpu.vector_store %arg2[%c0_38, %c0_39, %c64_40], %74 {strides = array<i32>} : memref<1x17x128xbf16, #tpu.memory_space<vmem>>, vector<1x17x32xbf16>,
    %c0_41 = arith.constant 0 : index
    %c0_42 = arith.constant 0 : index
    %c96 = arith.constant 96 : index
    %75 = vector.load %arg1[%c0_41, %c0_42, %c96] : memref<1x17x384xbf16, #tpu.memory_space<vmem>>, vector<1x17x32xbf16>
    %76 = vector.shape_cast %75 : vector<1x17x32xbf16> to vector<17x32xbf16>
    %c0_43 = arith.constant 0 : index
    %c0_44 = arith.constant 0 : index
    %c224 = arith.constant 224 : index
    %77 = vector.load %arg1[%c0_43, %c0_44, %c224] : memref<1x17x384xbf16, #tpu.memory_space<vmem>>, vector<1x17x32xbf16>
    %78 = vector.shape_cast %77 : vector<1x17x32xbf16> to vector<17x32xbf16>
    %c0_45 = arith.constant 0 : index
    %c0_46 = arith.constant 0 : index
    %c352 = arith.constant 352 : index
    %79 = vector.load %arg1[%c0_45, %c0_46, %c352] : memref<1x17x384xbf16, #tpu.memory_space<vmem>>, vector<1x17x32xbf16>
    %80 = vector.shape_cast %79 : vector<1x17x32xbf16> to vector<17x32xbf16>
    %cst_47 = arith.constant dense<0.000000e+00> : vector<17x17xf32>
    %81 = tpu.matmul %76, %78, %cst_47 {dimension_numbers = #tpu.dot_dimension_numbers<[1], [1], [0], [0], [0, 0, 1, 0], [], []>} : vector<17x32xbf16>, vector<17x32xbf16>, vector<17x17xf32> -> vector<17x17xf32>
    %cst_48 = arith.constant 0.176776692 : f32
    %82 = vector.broadcast %cst_48 : f32 to vector<17x17xf32>
    %83 = arith.mulf %81, %82 : vector<17x17xf32>
    %cst_49 = arith.constant dense<0xFF800000> : vector<17xf32>
    %84 = vector.multi_reduction <maximumf>, %83, %cst_49 [1] : vector<17x17xf32> to vector<17xf32>
    %85 = vector.shape_cast %84 : vector<17xf32> to vector<17x1xf32>
    %86 = vector.broadcast %85 : vector<17x1xf32> to vector<17x17xf32>
    %87 = arith.subf %83, %86 : vector<17x17xf32>
    %88 = math.exp %87 : vector<17x17xf32>
    %cst_50 = arith.constant dense<0.000000e+00> : vector<17xf32>
    %89 = vector.multi_reduction <add>, %88, %cst_50 [1] : vector<17x17xf32> to vector<17xf32>
    %90 = vector.shape_cast %89 : vector<17xf32> to vector<17x1xf32>
    %91 = tpu.reciprocal %90 {approx = true} : vector<17x1xf32> -> vector<17x1xf32>
    %92 = vector.broadcast %91 : vector<17x1xf32> to vector<17x17xf32>
    %93 = arith.mulf %88, %92 : vector<17x17xf32>
    %94 = arith.truncf %93 : vector<17x17xf32> to vector<17x17xbf16>
    %cst_51 = arith.constant dense<0.000000e+00> : vector<17x32xf32>
    %95 = tpu.matmul %94, %80, %cst_51 {dimension_numbers = #tpu.dot_dimension_numbers<[1], [0], [0], [1], [0, 0, 1, 1], [], []>} : vector<17x17xbf16>, vector<17x32xbf16>, vector<17x32xf32> -> vector<17x32xf32>
    %96 = arith.truncf %95 : vector<17x32xf32> to vector<17x32xbf16>
    %c0_52 = arith.constant 0 : index
    %c0_53 = arith.constant 0 : index
    %c96_54 = arith.constant 96 : index
    %97 = vector.load %arg2[%c0_52, %c0_53, %c96_54] : memref<1x17x128xbf16, #tpu.memory_space<vmem>>, vector<1x17x32xbf16>
    %98 = vector.shape_cast %97 : vector<1x17x32xbf16> to vector<17x32xbf16>
    %99 = vector.shape_cast %96 : vector<17x32xbf16> to vector<1x17x32xbf16>
    tpu.vector_store %arg2[%c0_52, %c0_53, %c96_54], %99 {strides = array<i32>} : memref<1x17x128xbf16, #tpu.memory_space<vmem>>, vector<1x17x32xbf16>,
    return
  }
  func.func @transform_0(%arg0: i32) -> (i32, i32, i32) {
    %c0_i32 = arith.constant 0 : i32
    %c0_i32_0 = arith.constant 0 : i32
    %c0_i32_1 = arith.constant 0 : i32
    return %arg0, %c0_i32, %c0_i32_0 : i32, i32, i32
  }
  func.func @transform_1(%arg0: i32) -> (i32, i32, i32) {
    %c0_i32 = arith.constant 0 : i32
    %c0_i32_0 = arith.constant 0 : i32
    %c0_i32_1 = arith.constant 0 : i32
    return %arg0, %c0_i32, %c0_i32_0 : i32, i32, i32
  }
}

module attributes {stable_mosaic.version = 11 : i64} {
  func.func @_mm_kernel(%arg0: i32, %arg1: i32, %arg2: i32, %arg3: memref<40x128xbf16, #tpu.memory_space<vmem>>, %arg4: memref<128x128xbf16, #tpu.memory_space<vmem>>, %arg5: memref<1x128xf32, #tpu.memory_space<vmem>>, %arg6: memref<40x128xf32, #tpu.memory_space<vmem>>, %arg7: memref<40x128xf32, #tpu.memory_space<vmem>>, %arg8: memref<40x128xf32, #tpu.memory_space<vmem>>) attributes {dimension_semantics = [#tpu.dimension_semantics<parallel>, #tpu.dimension_semantics<parallel>, #tpu.dimension_semantics<arbitrary>], iteration_bounds = array<i64: 1, 1, 1>, scalar_prefetch = 0 : i64, scratch_operands = 1 : i64, tpu.core_type = #tpu.core_type<tc>, window_params = [{transform_indices = @transform_0, window_bounds = array<i64: 40, 128>}, {transform_indices = @transform_1, window_bounds = array<i64: 128, 128>}, {transform_indices = @transform_2, window_bounds = array<i64: 1, 128>}, {transform_indices = @transform_3, window_bounds = array<i64: 40, 128>}, {transform_indices = @transform_4, window_bounds = array<i64: 40, 128>}]} {
    %c0_i32 = arith.constant 0 : i32
    %0 = arith.cmpi eq, %arg2, %c0_i32 : i32
    %1 = arith.extui %0 : i1 to i32
    %c0_i32_0 = arith.constant 0 : i32
    %2 = arith.cmpi ne, %1, %c0_i32_0 : i32
    scf.if %2 {
      %cst_10 = arith.constant 0.000000e+00 : f32
      %12 = vector.broadcast %cst_10 : f32 to vector<40x128xf32>
      %c0_11 = arith.constant 0 : index
      %c0_12 = arith.constant 0 : index
      %13 = vector.load %arg8[%c0_11, %c0_12] : memref<40x128xf32, #tpu.memory_space<vmem>>, vector<40x128xf32>
      tpu.vector_store %arg8[%c0_11, %c0_12], %12 {strides = array<i32>} : memref<40x128xf32, #tpu.memory_space<vmem>>, vector<40x128xf32>,
    } else {
    }
    %c0 = arith.constant 0 : index
    %c0_1 = arith.constant 0 : index
    %3 = vector.load %arg8[%c0, %c0_1] : memref<40x128xf32, #tpu.memory_space<vmem>>, vector<40x128xf32>
    %c0_2 = arith.constant 0 : index
    %c0_3 = arith.constant 0 : index
    %4 = vector.load %arg3[%c0_2, %c0_3] : memref<40x128xbf16, #tpu.memory_space<vmem>>, vector<40x128xbf16>
    %c0_4 = arith.constant 0 : index
    %c0_5 = arith.constant 0 : index
    %5 = vector.load %arg4[%c0_4, %c0_5] : memref<128x128xbf16, #tpu.memory_space<vmem>>, vector<128x128xbf16>
    %cst = arith.constant dense<0.000000e+00> : vector<40x128xf32>
    %6 = tpu.matmul %4, %5, %cst {dimension_numbers = #tpu.dot_dimension_numbers<[1], [0], [0], [1], [0, 0, 1, 1], [], []>} : vector<40x128xbf16>, vector<128x128xbf16>, vector<40x128xf32> -> vector<40x128xf32>
    %7 = arith.addf %3, %6 : vector<40x128xf32>
    %c0_6 = arith.constant 0 : index
    %c0_7 = arith.constant 0 : index
    %8 = vector.load %arg8[%c0_6, %c0_7] : memref<40x128xf32, #tpu.memory_space<vmem>>, vector<40x128xf32>
    tpu.vector_store %arg8[%c0_6, %c0_7], %7 {strides = array<i32>} : memref<40x128xf32, #tpu.memory_space<vmem>>, vector<40x128xf32>,
    %c0_i32_8 = arith.constant 0 : i32
    %9 = arith.cmpi eq, %arg2, %c0_i32_8 : i32
    %10 = arith.extui %9 : i1 to i32
    %c0_i32_9 = arith.constant 0 : i32
    %11 = arith.cmpi ne, %10, %c0_i32_9 : i32
    scf.if %11 {
      %c0_10 = arith.constant 0 : index
      %c0_11 = arith.constant 0 : index
      %12 = vector.load %arg8[%c0_10, %c0_11] : memref<40x128xf32, #tpu.memory_space<vmem>>, vector<40x128xf32>
      %c0_12 = arith.constant 0 : index
      %c0_13 = arith.constant 0 : index
      %13 = vector.load %arg5[%c0_12, %c0_13] : memref<1x128xf32, #tpu.memory_space<vmem>>, vector<1x128xf32>
      %14 = vector.broadcast %13 : vector<1x128xf32> to vector<40x128xf32>
      %15 = arith.addf %12, %14 : vector<40x128xf32>
      %c0_14 = arith.constant 0 : index
      %c0_15 = arith.constant 0 : index
      %16 = vector.load %arg6[%c0_14, %c0_15] : memref<40x128xf32, #tpu.memory_space<vmem>>, vector<40x128xf32>
      %17 = arith.addf %15, %16 : vector<40x128xf32>
      %c0_16 = arith.constant 0 : index
      %c0_17 = arith.constant 0 : index
      %18 = vector.load %arg7[%c0_16, %c0_17] : memref<40x128xf32, #tpu.memory_space<vmem>>, vector<40x128xf32>
      tpu.vector_store %arg7[%c0_16, %c0_17], %17 {strides = array<i32>} : memref<40x128xf32, #tpu.memory_space<vmem>>, vector<40x128xf32>,
    } else {
    }
    return
  }
  func.func @transform_0(%arg0: i32, %arg1: i32, %arg2: i32) -> (i32, i32) {
    %c0_i32 = arith.constant 0 : i32
    return %arg0, %arg2 : i32, i32
  }
  func.func @transform_1(%arg0: i32, %arg1: i32, %arg2: i32) -> (i32, i32) {
    %c0_i32 = arith.constant 0 : i32
    return %arg2, %arg1 : i32, i32
  }
  func.func @transform_2(%arg0: i32, %arg1: i32, %arg2: i32) -> (i32, i32) {
    %c0_i32 = arith.constant 0 : i32
    %c0_i32_0 = arith.constant 0 : i32
    return %c0_i32, %arg1 : i32, i32
  }
  func.func @transform_3(%arg0: i32, %arg1: i32, %arg2: i32) -> (i32, i32) {
    %c0_i32 = arith.constant 0 : i32
    return %arg0, %arg1 : i32, i32
  }
  func.func @transform_4(%arg0: i32, %arg1: i32, %arg2: i32) -> (i32, i32) {
    %c0_i32 = arith.constant 0 : i32
    return %arg0, %arg1 : i32, i32
  }
}

module attributes {stable_mosaic.version = 11 : i64} {
  func.func @_ln_mm_kernel(%arg0: i32, %arg1: i32, %arg2: memref<40x128xf32, #tpu.memory_space<vmem>>, %arg3: memref<1x128xf32, #tpu.memory_space<vmem>>, %arg4: memref<1x128xf32, #tpu.memory_space<vmem>>, %arg5: memref<128x128xbf16, #tpu.memory_space<vmem>>, %arg6: memref<1x128xf32, #tpu.memory_space<vmem>>, %arg7: memref<40x128xbf16, #tpu.memory_space<vmem>>, %arg8: memref<40x128xbf16, #tpu.memory_space<vmem>>) attributes {dimension_semantics = [#tpu.dimension_semantics<parallel>, #tpu.dimension_semantics<arbitrary>], iteration_bounds = array<i64: 1, 2>, scalar_prefetch = 0 : i64, scratch_operands = 1 : i64, tpu.core_type = #tpu.core_type<tc>, window_params = [{transform_indices = @transform_0, window_bounds = array<i64: 40, 128>}, {pipeline_mode = #tpu.pipeline_mode<synchronous>, transform_indices = @transform_1, window_bounds = array<i64: 1, 128>}, {pipeline_mode = #tpu.pipeline_mode<synchronous>, transform_indices = @transform_2, window_bounds = array<i64: 1, 128>}, {transform_indices = @transform_3, window_bounds = array<i64: 128, 128>}, {transform_indices = @transform_4, window_bounds = array<i64: 1, 128>}, {transform_indices = @transform_5, window_bounds = array<i64: 40, 128>}]} {
    %c0_i32 = arith.constant 0 : i32
    %0 = arith.cmpi eq, %arg1, %c0_i32 : i32
    %1 = arith.extui %0 : i1 to i32
    %c0_i32_0 = arith.constant 0 : i32
    %2 = arith.cmpi ne, %1, %c0_i32_0 : i32
    scf.if %2 {
      %c0_12 = arith.constant 0 : index
      %c0_13 = arith.constant 0 : index
      %24 = vector.load %arg2[%c0_12, %c0_13] : memref<40x128xf32, #tpu.memory_space<vmem>>, vector<40x128xf32>
      %cst_14 = arith.constant dense<0.000000e+00> : vector<40xf32>
      %25 = vector.multi_reduction <add>, %24, %cst_14 [1] : vector<40x128xf32> to vector<40xf32>
      %26 = vector.shape_cast %25 : vector<40xf32> to vector<40x1xf32>
      %cst_15 = arith.constant 1.280000e+02 : f32
      %27 = vector.broadcast %cst_15 : f32 to vector<40x1xf32>
      %28 = arith.divf %26, %27 : vector<40x1xf32>
      %29 = vector.broadcast %28 : vector<40x1xf32> to vector<40x128xf32>
      %30 = arith.subf %24, %29 : vector<40x128xf32>
      %31 = arith.mulf %30, %30 : vector<40x128xf32>
      %cst_16 = arith.constant dense<0.000000e+00> : vector<40xf32>
      %32 = vector.multi_reduction <add>, %31, %cst_16 [1] : vector<40x128xf32> to vector<40xf32>
      %33 = vector.shape_cast %32 : vector<40xf32> to vector<40x1xf32>
      %cst_17 = arith.constant 1.280000e+02 : f32
      %34 = vector.broadcast %cst_17 : f32 to vector<40x1xf32>
      %35 = arith.divf %33, %34 : vector<40x1xf32>
      %36 = vector.broadcast %28 : vector<40x1xf32> to vector<40x128xf32>
      %37 = arith.subf %24, %36 : vector<40x128xf32>
      %cst_18 = arith.constant 9.99999974E-6 : f32
      %38 = vector.broadcast %cst_18 : f32 to vector<40x1xf32>
      %39 = arith.addf %35, %38 : vector<40x1xf32>
      %40 = math.rsqrt %39 : vector<40x1xf32>
      %41 = vector.broadcast %40 : vector<40x1xf32> to vector<40x128xf32>
      %42 = arith.mulf %37, %41 : vector<40x128xf32>
      %c0_19 = arith.constant 0 : index
      %c0_20 = arith.constant 0 : index
      %43 = vector.load %arg3[%c0_19, %c0_20] : memref<1x128xf32, #tpu.memory_space<vmem>>, vector<1x128xf32>
      %44 = vector.broadcast %43 : vector<1x128xf32> to vector<40x128xf32>
      %45 = arith.mulf %42, %44 : vector<40x128xf32>
      %c0_21 = arith.constant 0 : index
      %c0_22 = arith.constant 0 : index
      %46 = vector.load %arg4[%c0_21, %c0_22] : memref<1x128xf32, #tpu.memory_space<vmem>>, vector<1x128xf32>
      %47 = vector.broadcast %46 : vector<1x128xf32> to vector<40x128xf32>
      %48 = arith.addf %45, %47 : vector<40x128xf32>
      %49 = arith.truncf %48 : vector<40x128xf32> to vector<40x128xbf16>
      %c0_23 = arith.constant 0 : index
      %c0_24 = arith.constant 0 : index
      %50 = vector.load %arg8[%c0_23, %c0_24] : memref<40x128xbf16, #tpu.memory_space<vmem>>, vector<40x128xbf16>
      tpu.vector_store %arg8[%c0_23, %c0_24], %49 {strides = array<i32>} : memref<40x128xbf16, #tpu.memory_space<vmem>>, vector<40x128xbf16>,
    } else {
    }
    %c0 = arith.constant 0 : index
    %c0_1 = arith.constant 0 : index
    %3 = vector.load %arg8[%c0, %c0_1] : memref<40x128xbf16, #tpu.memory_space<vmem>>, vector<40x128xbf16>
    %c0_2 = arith.constant 0 : index
    %c0_3 = arith.constant 0 : index
    %4 = vector.load %arg5[%c0_2, %c0_3] : memref<128x128xbf16, #tpu.memory_space<vmem>>, vector<128x128xbf16>
    %cst = arith.constant dense<0.000000e+00> : vector<40x128xf32>
    %5 = tpu.matmul %3, %4, %cst {dimension_numbers = #tpu.dot_dimension_numbers<[1], [0], [0], [1], [0, 0, 1, 1], [], []>} : vector<40x128xbf16>, vector<128x128xbf16>, vector<40x128xf32> -> vector<40x128xf32>
    %c0_4 = arith.constant 0 : index
    %c0_5 = arith.constant 0 : index
    %6 = vector.load %arg6[%c0_4, %c0_5] : memref<1x128xf32, #tpu.memory_space<vmem>>, vector<1x128xf32>
    %7 = vector.broadcast %6 : vector<1x128xf32> to vector<40x128xf32>
    %8 = arith.addf %5, %7 : vector<40x128xf32>
    %cst_6 = arith.constant 5.000000e-01 : f32
    %9 = vector.broadcast %cst_6 : f32 to vector<40x128xf32>
    %10 = arith.mulf %9, %8 : vector<40x128xf32>
    %cst_7 = arith.constant 4.471500e-02 : f32
    %11 = vector.broadcast %cst_7 : f32 to vector<40x128xf32>
    %12 = arith.mulf %11, %8 : vector<40x128xf32>
    %13 = arith.mulf %12, %8 : vector<40x128xf32>
    %14 = arith.mulf %13, %8 : vector<40x128xf32>
    %15 = arith.addf %8, %14 : vector<40x128xf32>
    %cst_8 = arith.constant 0.797884583 : f32
    %16 = vector.broadcast %cst_8 : f32 to vector<40x128xf32>
    %17 = arith.mulf %16, %15 : vector<40x128xf32>
    %18 = math.tanh %17 : vector<40x128xf32>
    %cst_9 = arith.constant 1.000000e+00 : f32
    %19 = vector.broadcast %cst_9 : f32 to vector<40x128xf32>
    %20 = arith.addf %19, %18 : vector<40x128xf32>
    %21 = arith.mulf %10, %20 : vector<40x128xf32>
    %22 = arith.truncf %21 : vector<40x128xf32> to vector<40x128xbf16>
    %c0_10 = arith.constant 0 : index
    %c0_11 = arith.constant 0 : index
    %23 = vector.load %arg7[%c0_10, %c0_11] : memref<40x128xbf16, #tpu.memory_space<vmem>>, vector<40x128xbf16>
    tpu.vector_store %arg7[%c0_10, %c0_11], %22 {strides = array<i32>} : memref<40x128xbf16, #tpu.memory_space<vmem>>, vector<40x128xbf16>,
    return
  }
  func.func @transform_0(%arg0: i32, %arg1: i32) -> (i32, i32) {
    %c0_i32 = arith.constant 0 : i32
    %c0_i32_0 = arith.constant 0 : i32
    return %arg0, %c0_i32 : i32, i32
  }
  func.func @transform_1(%arg0: i32, %arg1: i32) -> (i32, i32) {
    %c0_i32 = arith.constant 0 : i32
    %c0_i32_0 = arith.constant 0 : i32
    %c0_i32_1 = arith.constant 0 : i32
    return %c0_i32, %c0_i32_0 : i32, i32
  }
  func.func @transform_2(%arg0: i32, %arg1: i32) -> (i32, i32) {
    %c0_i32 = arith.constant 0 : i32
    %c0_i32_0 = arith.constant 0 : i32
    %c0_i32_1 = arith.constant 0 : i32
    return %c0_i32, %c0_i32_0 : i32, i32
  }
  func.func @transform_3(%arg0: i32, %arg1: i32) -> (i32, i32) {
    %c0_i32 = arith.constant 0 : i32
    %c0_i32_0 = arith.constant 0 : i32
    return %c0_i32, %arg1 : i32, i32
  }
  func.func @transform_4(%arg0: i32, %arg1: i32) -> (i32, i32) {
    %c0_i32 = arith.constant 0 : i32
    %c0_i32_0 = arith.constant 0 : i32
    return %c0_i32, %arg1 : i32, i32
  }
  func.func @transform_5(%arg0: i32, %arg1: i32) -> (i32, i32) {
    %c0_i32 = arith.constant 0 : i32
    return %arg0, %arg1 : i32, i32
  }
}

module attributes {stable_mosaic.version = 11 : i64} {
  func.func @_mm_kernel(%arg0: i32, %arg1: i32, %arg2: i32, %arg3: memref<40x256xbf16, #tpu.memory_space<vmem>>, %arg4: memref<256x128xbf16, #tpu.memory_space<vmem>>, %arg5: memref<1x128xf32, #tpu.memory_space<vmem>>, %arg6: memref<40x128xf32, #tpu.memory_space<vmem>>, %arg7: memref<40x128xf32, #tpu.memory_space<vmem>>, %arg8: memref<40x128xf32, #tpu.memory_space<vmem>>) attributes {dimension_semantics = [#tpu.dimension_semantics<parallel>, #tpu.dimension_semantics<parallel>, #tpu.dimension_semantics<arbitrary>], iteration_bounds = array<i64: 1, 1, 1>, scalar_prefetch = 0 : i64, scratch_operands = 1 : i64, tpu.core_type = #tpu.core_type<tc>, window_params = [{transform_indices = @transform_0, window_bounds = array<i64: 40, 256>}, {transform_indices = @transform_1, window_bounds = array<i64: 256, 128>}, {transform_indices = @transform_2, window_bounds = array<i64: 1, 128>}, {transform_indices = @transform_3, window_bounds = array<i64: 40, 128>}, {transform_indices = @transform_4, window_bounds = array<i64: 40, 128>}]} {
    %c0_i32 = arith.constant 0 : i32
    %0 = arith.cmpi eq, %arg2, %c0_i32 : i32
    %1 = arith.extui %0 : i1 to i32
    %c0_i32_0 = arith.constant 0 : i32
    %2 = arith.cmpi ne, %1, %c0_i32_0 : i32
    scf.if %2 {
      %cst_10 = arith.constant 0.000000e+00 : f32
      %12 = vector.broadcast %cst_10 : f32 to vector<40x128xf32>
      %c0_11 = arith.constant 0 : index
      %c0_12 = arith.constant 0 : index
      %13 = vector.load %arg8[%c0_11, %c0_12] : memref<40x128xf32, #tpu.memory_space<vmem>>, vector<40x128xf32>
      tpu.vector_store %arg8[%c0_11, %c0_12], %12 {strides = array<i32>} : memref<40x128xf32, #tpu.memory_space<vmem>>, vector<40x128xf32>,
    } else {
    }
    %c0 = arith.constant 0 : index
    %c0_1 = arith.constant 0 : index
    %3 = vector.load %arg8[%c0, %c0_1] : memref<40x128xf32, #tpu.memory_space<vmem>>, vector<40x128xf32>
    %c0_2 = arith.constant 0 : index
    %c0_3 = arith.constant 0 : index
    %4 = vector.load %arg3[%c0_2, %c0_3] : memref<40x256xbf16, #tpu.memory_space<vmem>>, vector<40x256xbf16>
    %c0_4 = arith.constant 0 : index
    %c0_5 = arith.constant 0 : index
    %5 = vector.load %arg4[%c0_4, %c0_5] : memref<256x128xbf16, #tpu.memory_space<vmem>>, vector<256x128xbf16>
    %cst = arith.constant dense<0.000000e+00> : vector<40x128xf32>
    %6 = tpu.matmul %4, %5, %cst {dimension_numbers = #tpu.dot_dimension_numbers<[1], [0], [0], [1], [0, 0, 1, 1], [], []>} : vector<40x256xbf16>, vector<256x128xbf16>, vector<40x128xf32> -> vector<40x128xf32>
    %7 = arith.addf %3, %6 : vector<40x128xf32>
    %c0_6 = arith.constant 0 : index
    %c0_7 = arith.constant 0 : index
    %8 = vector.load %arg8[%c0_6, %c0_7] : memref<40x128xf32, #tpu.memory_space<vmem>>, vector<40x128xf32>
    tpu.vector_store %arg8[%c0_6, %c0_7], %7 {strides = array<i32>} : memref<40x128xf32, #tpu.memory_space<vmem>>, vector<40x128xf32>,
    %c0_i32_8 = arith.constant 0 : i32
    %9 = arith.cmpi eq, %arg2, %c0_i32_8 : i32
    %10 = arith.extui %9 : i1 to i32
    %c0_i32_9 = arith.constant 0 : i32
    %11 = arith.cmpi ne, %10, %c0_i32_9 : i32
    scf.if %11 {
      %c0_10 = arith.constant 0 : index
      %c0_11 = arith.constant 0 : index
      %12 = vector.load %arg8[%c0_10, %c0_11] : memref<40x128xf32, #tpu.memory_space<vmem>>, vector<40x128xf32>
      %c0_12 = arith.constant 0 : index
      %c0_13 = arith.constant 0 : index
      %13 = vector.load %arg5[%c0_12, %c0_13] : memref<1x128xf32, #tpu.memory_space<vmem>>, vector<1x128xf32>
      %14 = vector.broadcast %13 : vector<1x128xf32> to vector<40x128xf32>
      %15 = arith.addf %12, %14 : vector<40x128xf32>
      %c0_14 = arith.constant 0 : index
      %c0_15 = arith.constant 0 : index
      %16 = vector.load %arg6[%c0_14, %c0_15] : memref<40x128xf32, #tpu.memory_space<vmem>>, vector<40x128xf32>
      %17 = arith.addf %15, %16 : vector<40x128xf32>
      %c0_16 = arith.constant 0 : index
      %c0_17 = arith.constant 0 : index
      %18 = vector.load %arg7[%c0_16, %c0_17] : memref<40x128xf32, #tpu.memory_space<vmem>>, vector<40x128xf32>
      tpu.vector_store %arg7[%c0_16, %c0_17], %17 {strides = array<i32>} : memref<40x128xf32, #tpu.memory_space<vmem>>, vector<40x128xf32>,
    } else {
    }
    return
  }
  func.func @transform_0(%arg0: i32, %arg1: i32, %arg2: i32) -> (i32, i32) {
    %c0_i32 = arith.constant 0 : i32
    return %arg0, %arg2 : i32, i32
  }
  func.func @transform_1(%arg0: i32, %arg1: i32, %arg2: i32) -> (i32, i32) {
    %c0_i32 = arith.constant 0 : i32
    return %arg2, %arg1 : i32, i32
  }
  func.func @transform_2(%arg0: i32, %arg1: i32, %arg2: i32) -> (i32, i32) {
    %c0_i32 = arith.constant 0 : i32
    %c0_i32_0 = arith.constant 0 : i32
    return %c0_i32, %arg1 : i32, i32
  }
  func.func @transform_3(%arg0: i32, %arg1: i32, %arg2: i32) -> (i32, i32) {
    %c0_i32 = arith.constant 0 : i32
    return %arg0, %arg1 : i32, i32
  }
  func.func @transform_4(%arg0: i32, %arg1: i32, %arg2: i32) -> (i32, i32) {
    %c0_i32 = arith.constant 0 : i32
    return %arg0, %arg1 : i32, i32
  }
}

module attributes {stable_mosaic.version = 11 : i64} {
  func.func @_mlp_head_kernel(%arg0: i32, %arg1: memref<2x128xf32, #tpu.memory_space<vmem>>, %arg2: memref<128x128xbf16, #tpu.memory_space<vmem>>, %arg3: memref<1x128xf32, #tpu.memory_space<vmem>>, %arg4: memref<128x128xbf16, #tpu.memory_space<vmem>>, %arg5: memref<1x128xf32, #tpu.memory_space<vmem>>, %arg6: memref<2x128xf32, #tpu.memory_space<vmem>>) attributes {dimension_semantics = [#tpu.dimension_semantics<arbitrary>], iteration_bounds = array<i64: 1>, scalar_prefetch = 0 : i64, scratch_operands = 0 : i64, tpu.core_type = #tpu.core_type<tc>, window_params = [{pipeline_mode = #tpu.pipeline_mode<synchronous>, transform_indices = @transform_0, window_bounds = array<i64: 2, 128>}, {pipeline_mode = #tpu.pipeline_mode<synchronous>, transform_indices = @transform_1, window_bounds = array<i64: 128, 128>}, {pipeline_mode = #tpu.pipeline_mode<synchronous>, transform_indices = @transform_2, window_bounds = array<i64: 1, 128>}, {pipeline_mode = #tpu.pipeline_mode<synchronous>, transform_indices = @transform_3, window_bounds = array<i64: 128, 128>}, {pipeline_mode = #tpu.pipeline_mode<synchronous>, transform_indices = @transform_4, window_bounds = array<i64: 1, 128>}, {pipeline_mode = #tpu.pipeline_mode<synchronous>, transform_indices = @transform_5, window_bounds = array<i64: 2, 128>}]} {
    %c0 = arith.constant 0 : index
    %c0_0 = arith.constant 0 : index
    %0 = vector.load %arg1[%c0, %c0_0] : memref<2x128xf32, #tpu.memory_space<vmem>>, vector<2x128xf32>
    %1 = arith.truncf %0 : vector<2x128xf32> to vector<2x128xbf16>
    %c0_1 = arith.constant 0 : index
    %c0_2 = arith.constant 0 : index
    %2 = vector.load %arg2[%c0_1, %c0_2] : memref<128x128xbf16, #tpu.memory_space<vmem>>, vector<128x128xbf16>
    %cst = arith.constant dense<0.000000e+00> : vector<2x128xf32>
    %3 = tpu.matmul %1, %2, %cst {dimension_numbers = #tpu.dot_dimension_numbers<[1], [0], [0], [1], [0, 0, 1, 1], [], []>} : vector<2x128xbf16>, vector<128x128xbf16>, vector<2x128xf32> -> vector<2x128xf32>
    %c0_3 = arith.constant 0 : index
    %c0_4 = arith.constant 0 : index
    %4 = vector.load %arg3[%c0_3, %c0_4] : memref<1x128xf32, #tpu.memory_space<vmem>>, vector<1x128xf32>
    %5 = vector.broadcast %4 : vector<1x128xf32> to vector<2x128xf32>
    %6 = arith.addf %3, %5 : vector<2x128xf32>
    %cst_5 = arith.constant 5.000000e-01 : f32
    %7 = vector.broadcast %cst_5 : f32 to vector<2x128xf32>
    %8 = arith.mulf %7, %6 : vector<2x128xf32>
    %cst_6 = arith.constant 4.471500e-02 : f32
    %9 = vector.broadcast %cst_6 : f32 to vector<2x128xf32>
    %10 = arith.mulf %9, %6 : vector<2x128xf32>
    %11 = arith.mulf %10, %6 : vector<2x128xf32>
    %12 = arith.mulf %11, %6 : vector<2x128xf32>
    %13 = arith.addf %6, %12 : vector<2x128xf32>
    %cst_7 = arith.constant 0.797884583 : f32
    %14 = vector.broadcast %cst_7 : f32 to vector<2x128xf32>
    %15 = arith.mulf %14, %13 : vector<2x128xf32>
    %16 = math.tanh %15 : vector<2x128xf32>
    %cst_8 = arith.constant 1.000000e+00 : f32
    %17 = vector.broadcast %cst_8 : f32 to vector<2x128xf32>
    %18 = arith.addf %17, %16 : vector<2x128xf32>
    %19 = arith.mulf %8, %18 : vector<2x128xf32>
    %20 = arith.truncf %19 : vector<2x128xf32> to vector<2x128xbf16>
    %c0_9 = arith.constant 0 : index
    %c0_10 = arith.constant 0 : index
    %21 = vector.load %arg4[%c0_9, %c0_10] : memref<128x128xbf16, #tpu.memory_space<vmem>>, vector<128x128xbf16>
    %cst_11 = arith.constant dense<0.000000e+00> : vector<2x128xf32>
    %22 = tpu.matmul %20, %21, %cst_11 {dimension_numbers = #tpu.dot_dimension_numbers<[1], [0], [0], [1], [0, 0, 1, 1], [], []>} : vector<2x128xbf16>, vector<128x128xbf16>, vector<2x128xf32> -> vector<2x128xf32>
    %c0_12 = arith.constant 0 : index
    %c0_13 = arith.constant 0 : index
    %23 = vector.load %arg5[%c0_12, %c0_13] : memref<1x128xf32, #tpu.memory_space<vmem>>, vector<1x128xf32>
    %24 = vector.broadcast %23 : vector<1x128xf32> to vector<2x128xf32>
    %25 = arith.addf %22, %24 : vector<2x128xf32>
    %c0_14 = arith.constant 0 : index
    %c0_15 = arith.constant 0 : index
    %26 = vector.load %arg6[%c0_14, %c0_15] : memref<2x128xf32, #tpu.memory_space<vmem>>, vector<2x128xf32>
    tpu.vector_store %arg6[%c0_14, %c0_15], %25 {strides = array<i32>} : memref<2x128xf32, #tpu.memory_space<vmem>>, vector<2x128xf32>,
    return
  }
  func.func @transform_0(%arg0: i32) -> (i32, i32) {
    %c0_i32 = arith.constant 0 : i32
    %c0_i32_0 = arith.constant 0 : i32
    %c0_i32_1 = arith.constant 0 : i32
    return %c0_i32, %c0_i32_0 : i32, i32
  }
  func.func @transform_1(%arg0: i32) -> (i32, i32) {
    %c0_i32 = arith.constant 0 : i32
    %c0_i32_0 = arith.constant 0 : i32
    %c0_i32_1 = arith.constant 0 : i32
    return %c0_i32, %c0_i32_0 : i32, i32
  }
  func.func @transform_2(%arg0: i32) -> (i32, i32) {
    %c0_i32 = arith.constant 0 : i32
    %c0_i32_0 = arith.constant 0 : i32
    %c0_i32_1 = arith.constant 0 : i32
    return %c0_i32, %c0_i32_0 : i32, i32
  }
  func.func @transform_3(%arg0: i32) -> (i32, i32) {
    %c0_i32 = arith.constant 0 : i32
    %c0_i32_0 = arith.constant 0 : i32
    %c0_i32_1 = arith.constant 0 : i32
    return %c0_i32, %c0_i32_0 : i32, i32
  }
  func.func @transform_4(%arg0: i32) -> (i32, i32) {
    %c0_i32 = arith.constant 0 : i32
    %c0_i32_0 = arith.constant 0 : i32
    %c0_i32_1 = arith.constant 0 : i32
    return %c0_i32, %c0_i32_0 : i32, i32
  }
  func.func @transform_5(%arg0: i32) -> (i32, i32) {
    %c0_i32 = arith.constant 0 : i32
    %c0_i32_0 = arith.constant 0 : i32
    %c0_i32_1 = arith.constant 0 : i32
    return %c0_i32, %c0_i32_0 : i32, i32
  }
}

</mosaic_0001>

<bundles_post_ra>
// kernel: vit_forward.12
= control target key start
LH: loop header
LB: loop body
LE: loop exit
PB: predicated region body
PF: predicated region fallthrough
CT: control target
= control target key end

     0   :  { %vm57_vm0 = vcmask 392192   ;;  %s227_s1 = inlined_call_operand.vmem [shape: bf16[48,128], index: 1, kind: input, shape index: {}]   ;;  %s228_s0 = inlined_call_operand.vmem [shape: f32[32,48], index: 0, kind: input, shape index: {}]   ;;  %s229_s2 = inlined_call_operand.vmem [shape: f32[1,128], index: 2, kind: input, shape index: {}]   ;;  %s230_s3 = inlined_call_operand.vmem [shape: f32[32,128], index: 3, kind: output, shape index: {}]  }
   0x1   :  { %v168_v0 = vld [vmem:[%s227_s1] sm:$0xff]   ;;  %v169_v1 = vld [vmem:[%s227_s1 + $0x8] sm:$0xff]   ;;  %v170_v4 = vld [vmem:[%s227_s1 + $0x10] sm:$0xff]  }
   0x2   :  { %158 = vmatprep.subr.bf16.mxu0 %v168_v0  ;;  %v27_v2 = vld [vmem:[%s228_s0] sm:$0xff]  ;;  %v28_v3 = vld [vmem:[%s228_s0 + $0x8] sm:$0xff]  ;;  %v29_v6 = vld [vmem:[%s228_s0 + $0x10] sm:$0xff] }
   0x3   :  { %159 = vmatpush3.bf16.msra.mxu0 %v168_v0  ;;  %v31_v5 = vpack.c.bf16 %v28_v3, %v27_v2  ;;  %v30_v7 = vld [vmem:[%s228_s0 + $0x18] sm:$0xff]  ;;  %v152_v9 = vld [vmem:[%s229_s2] ss:$0 sm:$0xff] }
   0x4   :  { %160 = vmatprep.subr.bf16.mxu0 %v169_v1  ;;  %v32_v8 = vpack.c.bf16 %v30_v7, %v29_v6 }
   0x5   :  { %164 = vmatprep.mubr.msk.bf16.mxu0 %vm57_vm0, %v31_v5 }
   0x7   :  { %161 = vmatpush3.bf16.msra.mxu0 %v169_v1 }
   0x8   :  { %162 = vmatprep.subr.bf16.mxu0 %v170_v4 }
   0xb   :  { %163 = vmatpush3.bf16.msra.mxu0 %v170_v4 }
   0xe   :  { %165 = vmatmul.mubr.msk.bf16.vlgmr.msra.gmra.mrb[0].mxu0 %vm57_vm0, %v32_v8 }
  0xe1   :  { %v166_v10 = vpop.f32.mrb[0].mxu0 }
  0xe2   :  { %v137_v11 = vadd.f32 %v166_v10, %v152_v9  ;;  %v98_v12 = vpop.f32.mrb[1].mxu0 }
  0xe3   :  { %v135_v13 = vadd.f32 %v152_v9, %v98_v12  ;;  %v167_v14 = vpop.f32.mrb[2].mxu0 }
  0xe4   :  { %141 = vst [vmem:[%s230_s3 + $0x10] sm:$0xff] %v137_v11  ;;  %v138_v15 = vadd.f32 %v167_v14, %v152_v9  ;;  %v101_v16 = vpop.f32.mrb[3].mxu0 }
  0xe5   :  { %139 = vst [vmem:[%s230_s3] sm:$0xff] %v135_v13  ;;  %v136_v17 = vadd.f32 %v152_v9, %v101_v16 }
  0xe6   :  { %142 = vst [vmem:[%s230_s3 + $0x18] sm:$0xff] %v138_v15 }
  0xe7   :  { %140 = vst [vmem:[%s230_s3 + $0x8] sm:$0xff] %v136_v17 }

// kernel: vit_forward.13
= control target key start
LH: loop header
LB: loop body
LE: loop exit
PB: predicated region body
PF: predicated region fallthrough
CT: control target
= control target key end

     0   :  { %s1079_s18 = smov 0   ;;  %s1081_s19 = smov 0   ;;  %s1227_s0 = inlined_call_operand.vmem [shape: f32[40,128], index: 0, kind: input, shape index: {}]   ;;  %s1228_s1 = inlined_call_operand.vmem [shape: f32[1,128], index: 1, kind: input, shape index: {}]   ;;  %s1229_s2 = inlined_call_operand.vmem [shape: f32[1,128], index: 2, kind: input, shape index: {}]   ;;  %s1230_s3 = inlined_call_operand.vmem [shape: bf16[128,384], index: 3, kind: input, shape index: {}]   ;;  %s1231_s4 = inlined_call_operand.vmem [shape: f32[1,384], index: 4, kind: input, shape index: {}]   ;;  %s1232_s5 = inlined_call_operand.vmem [shape: bf16[40,384], index: 5, kind: output, shape index: {}]  }
   0x1   :  { %s1083_s20 = smov 0   ;;  %s1085_s21 = smov 0  }
   0x2   :  { %s1087_s22 = smov 0  }
   0x3 LB: > { %s24_s23 = sadd.s32 1, %s1041_s21  ;;  %s819_s24 = sadd.s32 4294967295, %s1045_s22   ;;  %s1045_s22 = sphi %s1087_s22, %s15_s22   ;;  %s1041_s21 = sphi %s1085_s21, %s1237_s21   ;;  %s1037_s20 = sphi %s1083_s20, %s1236_s20   ;;  %s1033_s19 = sphi %s1081_s19, %s1235_s19   ;;  %s1029_s18 = sphi %s1079_s18, %s1234_s18  }
   0x4   : > { %p25_p0 = scmp.ge.s32.totalorder %s24_s23, 3  ;;  %p109_p1 = scmp.ne.s32.totalorder %s1033_s19, %s1029_s18 }
   0x5   : > { %p110_p2 = scmp.eq.s32.totalorder %s1045_s22, 0  ;;  %p167_p4 = scmp.eq.s32.totalorder %s819_s24, 2 }
   0x6   : > { %s1239_s23 = smov (%p25_p0, %s24_s23), 0  ;;  %s102_s26 = sadd.s32 1, %s1033_s19 }
   0x7   : > { %p111_p3 = por %p110_p2, %p109_p1  ;;  %s99_s25 = ssub.s32 %s1041_s21, %s1239_s23 }
   0x8   : > { %p100_p5 = scmp.eq.s32.totalorder %s99_s25, 0  ;;  %p1114_p6 = por %p167_p4, %p109_p1 }
   0x9   : > { %p823_p7 = scmp.ge.s32.totalorder %s1045_s22, 3 }
   0xa   : > { %s1119_s28 = scalar_select %p100_p5, %s1033_s19, %s102_s26  }
   0xb   : > { %204 = sbr.rel (%p823_p7) target bundleno = 32 (0x20), region = 28 }
  0x12   : > { %207 = sbr.rel (!%p111_p3) target bundleno = 32 (0x20), region = 32  ;;  %s209_s29 = sand.u32 (%p111_p3), 1, %s1033_s19  }
  0x13   : > { %s825_s30 = sshll.u32 (%p111_p3), %s1041_s21, 2  ;;  %s824_s6 = sshll.u32 (%p111_p3), %s209_s29, 6 }
  0x14   : > { %s1127_s9 = scalar_lea.vmem (%p111_p3), %s1230_s3, %s825_s30  ;;  %s211_s10 = scalar_lea.vmem (%p111_p3), [#allocation3], %s824_s6 }
  0x15   : > { %v229_v0 = vld [vmem:[%s1127_s9] sm:$0xf] (%p111_p3)  ;;  %v231_v1 = vld [vmem:[%s1127_s9 + $0xc] sm:$0xf] (%p111_p3)  ;;  %v233_v2 = vld [vmem:[%s1127_s9 + $0x18] sm:$0xf] (%p111_p3) }
  0x16   : > { %230 = vst [vmem:[%s211_s10] sm:$0xf] (%p111_p3), %v229_v0  ;;  %232 = vst [vmem:[%s211_s10 + $0x4] sm:$0xf] (%p111_p3), %v231_v1  ;;  %v235_v3 = vld [vmem:[%s1127_s9 + $0x24] sm:$0xf] (%p111_p3) }
  0x17   : > { %v237_v4 = vld [vmem:[%s1127_s9 + $0x30] sm:$0xf] (%p111_p3)  ;;  %234 = vst [vmem:[%s211_s10 + $0x8] sm:$0xf] (%p111_p3), %v233_v2  ;;  %236 = vst [vmem:[%s211_s10 + $0xc] sm:$0xf] (%p111_p3), %v235_v3 }
  0x18   : > { %238 = vst [vmem:[%s211_s10 + $0x10] sm:$0xf] (%p111_p3), %v237_v4  ;;  %v239_v5 = vld [vmem:[%s1127_s9 + $0x3c] sm:$0xf] (%p111_p3)  ;;  %v241_v6 = vld [vmem:[%s1127_s9 + $0x48] sm:$0xf] (%p111_p3) }
  0x19   : > { %v243_v7 = vld [vmem:[%s1127_s9 + $0x54] sm:$0xf]  ;;  %240 = vst [vmem:[%s211_s10 + $0x14] sm:$0xf] %v239_v5  ;;  %242 = vst [vmem:[%s211_s10 + $0x18] sm:$0xf] %v241_v6 }
  0x1a   : > { %244 = vst [vmem:[%s211_s10 + $0x1c] sm:$0xf] %v243_v7  ;;  %v245_v8 = vld [vmem:[%s1127_s9 + $0x60] sm:$0xf]  ;;  %v247_v9 = vld [vmem:[%s1127_s9 + $0x6c] sm:$0xf] }
  0x1b   : > { %v249_v10 = vld [vmem:[%s1127_s9 + $0x78] sm:$0xf]  ;;  %246 = vst [vmem:[%s211_s10 + $0x20] sm:$0xf] %v245_v8  ;;  %248 = vst [vmem:[%s211_s10 + $0x24] sm:$0xf] %v247_v9 }
  0x1c   : > { %250 = vst [vmem:[%s211_s10 + $0x28] sm:$0xf] %v249_v10  ;;  %v251_v11 = vld [vmem:[%s1127_s9 + $0x84] sm:$0xf]  ;;  %v253_v12 = vld [vmem:[%s1127_s9 + $0x90] sm:$0xf] }
  0x1d   : > { %v255_v13 = vld [vmem:[%s1127_s9 + $0x9c] sm:$0xf]  ;;  %252 = vst [vmem:[%s211_s10 + $0x2c] sm:$0xf] %v251_v11  ;;  %254 = vst [vmem:[%s211_s10 + $0x30] sm:$0xf] %v253_v12 }
  0x1e   : > { %256 = vst [vmem:[%s211_s10 + $0x34] sm:$0xf] %v255_v13  ;;  %v257_v14 = vld [vmem:[%s1127_s9 + $0xa8] sm:$0xf]  ;;  %v259_v15 = vld [vmem:[%s1127_s9 + $0xb4] sm:$0xf] }
  0x1f   : > { %258 = vst [vmem:[%s211_s10 + $0x38] sm:$0xf] %v257_v14  ;;  %260 = vst [vmem:[%s211_s10 + $0x3c] sm:$0xf] %v259_v15 }
  0x20 PF: > { %p826_p8 = scmp.ge.s32.totalorder %s1045_s22, 1  ;;  %p320_p9 = scmp.lt.s32.totalorder %s1045_s22, 4 }
  0x22   : > { %p321_p10 = pnand %p826_p8, %p320_p9 }
  0x23   : > { %s327_s11 = sand.u32 (!%p321_p10), 1, %s1029_s18   ;;  %p367_p11 = scmp.lt.s32.totalorder (!%p321_p10), %s1037_s20, 2 }
  0x24   : > { %324 = sbr.rel (%p321_p10) target bundleno = 634 (0x27a), region = 77  ;;  %s827_s12 = sshll.u32 (!%p321_p10), %s327_s11, 6 }
  0x25   : > { %s943_s13 = smul.u32 (!%p321_p10), 20, %s327_s11  ;;  %s1156_s24 = scalar_lea.vmem (!%p321_p10), [#allocation3], %s827_s12 }
  0x26   : > { %p828_p12 = scmp.ne.s32.totalorder (!%p321_p10), %s1037_s20, 0 }
  0x27   : > { %s1158_s25 = scalar_lea.vmem (!%p321_p10), [#allocation4], %s943_s13 }
  0x2b   : > { %s1150_s14 = scalar_select %p367_p11, %s1037_s20, 2 }
  0x2c   : > { %375 = sbr.rel (%p828_p12) target bundleno = 368 (0x170), region = 85  ;;  %v376_v16 = vld [vmem:[%s1227_s0] sm:$0xff] (!%p828_p12)  ;;  %v378_v17 = vld [vmem:[%s1227_s0 + $0x10] sm:$0xff] (!%p828_p12)  ;;  %v377_v18 = vld [vmem:[%s1227_s0 + $0x8] sm:$0xff] (!%p828_p12) }
  0x2d   : > { %s369_s17 = scalar_lea.vmem %s1231_s4, %s1150_s14  ;;  %381 = vadd.xlane.f32.xlu0 (!%p828_p12), %v376_v16  ;;  %385 = vadd.xlane.f32.xlu1 (!%p828_p12), %v378_v17  ;;  %v379_v19 = vld [vmem:[%s1227_s0 + $0x18] sm:$0xff] (!%p828_p12)  ;;  %v380_v20 = vld [vmem:[%s1227_s0 + $0x20] sm:$0xff] (!%p828_p12) }
  0x2e   : > { %v829_v58 = vld [vmem:[%s1228_s1] ss:$0 sm:$0xff] (!%p828_p12) }
  0x2f   : > { %v830_v0 = vld [vmem:[%s1229_s2] ss:$0 sm:$0xff] (!%p828_p12) }
  0x31   : > { %383 = vadd.xlane.f32.xlu0 (!%p828_p12), %v377_v18  ;;  %387 = vadd.xlane.f32.xlu1 (!%p828_p12), %v379_v19 }
  0x35   : > { %389 = vadd.xlane.f32.xlu0 %v380_v20 }
  0xba   : > { %v382_v21 = vpop.xlane.xlu0 %381  ;;  %v386_v22 = vpop.xlane.xlu1 %385 }
  0xbb   : > { %v392_v23 = vmul.f32 0.0078125, %v382_v21  ;;  %v394_v24 = vmul.f32 0.0078125, %v386_v22 }
  0xbd   : > { %v397_v25 = vsub.f32 %v376_v16, %v392_v23  ;;  %v399_v26 = vsub.f32 %v378_v17, %v394_v24 }
  0xbe   : > { %v384_v27 = vpop.xlane.xlu0 %383  ;;  %v388_v28 = vpop.xlane.xlu1 %387 }
  0xbf   : > { %v393_v29 = vmul.f32 0.0078125, %v384_v27  ;;  %v402_v30 = vmul.f32 %v397_v25, %v397_v25  ;;  %v395_v31 = vmul.f32 0.0078125, %v388_v28  ;;  %v404_v34 = vmul.f32 %v399_v26, %v399_v26 }
  0xc1   : > { %v398_v32 = vsub.f32 %v377_v18, %v393_v29  ;;  %407 = vadd.xlane.f32.xlu1 %v402_v30  ;;  %v400_v33 = vsub.f32 %v379_v19, %v395_v31 }
  0xc2   : > { %v390_v35 = vpop.xlane.xlu0 %389 }
  0xc3   : > { %v396_v36 = vmul.f32 0.0078125, %v390_v35  ;;  %v403_v37 = vmul.f32 %v398_v32, %v398_v32  ;;  %v405_v39 = vmul.f32 %v400_v33, %v400_v33 }
  0xc5   : > { %v401_v38 = vsub.f32 %v380_v20, %v396_v36  ;;  %411 = vadd.xlane.f32.xlu1 %v404_v34  ;;  %409 = vadd.xlane.f32.xlu0 %v403_v37 }
  0xc7   : > { %v406_v40 = vmul.f32 %v401_v38, %v401_v38 }
  0xc9   : > { %413 = vadd.xlane.f32.xlu0 %v405_v39  ;;  %415 = vadd.xlane.f32.xlu1 %v406_v40 }
 0x14e   : > { %v408_v41 = vpop.xlane.xlu1 %407 }
 0x14f   : > { %v417_v42 = vmul.f32 0.0078125, %v408_v41 }
 0x151   : > { %v422_v43 = vadd.f32 1e-05, %v417_v42 }
 0x152   : > { %v412_v44 = vpop.xlane.xlu1 %411  ;;  %v410_v45 = vpop.xlane.xlu0 %409 }
 0x153   : > { %986 = vrsqrt.f32 %v422_v43  ;;  %v419_v46 = vmul.f32 0.0078125, %v412_v44  ;;  %v418_v47 = vmul.f32 0.0078125, %v410_v45 }
 0x155   : > { %v424_v48 = vadd.f32 1e-05, %v419_v46  ;;  %v423_v49 = vadd.f32 1e-05, %v418_v47 }
 0x156   : > { %v416_v50 = vpop.xlane.xlu1 %415  ;;  %v414_v51 = vpop.xlane.xlu0 %413 }
 0x157   : > { %988 = vrsqrt.f32 %v424_v48  ;;  %v421_v52 = vmul.f32 0.0078125, %v416_v50  ;;  %v420_v53 = vmul.f32 0.0078125, %v414_v51 }
 0x158   : > { %990 = vrsqrt.f32 %v423_v49 }
 0x159   : > { %v426_v54 = vadd.f32 1e-05, %v421_v52  ;;  %v425_v55 = vadd.f32 1e-05, %v420_v53 }
 0x15b   : > { %992 = vrsqrt.f32 %v426_v54 }
 0x15c   : > { %994 = vrsqrt.f32 %v425_v55 }
 0x15d   : > { %v987_v56 = vpop.eup %986 }
 0x15e   : > { %v432_v57 = vmul.f32 %v987_v56, %v397_v25 }
 0x160   : > { %v444_v61 = vmul.f32 %v829_v58, %v432_v57 }
 0x161   : > { %v989_v59 = vpop.eup %988 }
 0x162   : > { %v991_v60 = vpop.eup %990  ;;  %v434_v62 = vmul.f32 %v989_v59, %v399_v26  ;;  %v456_v5 = vadd.f32 %v830_v0, %v444_v61 }
 0x163   : > { %v433_v63 = vmul.f32 %v991_v60, %v398_v32 }
 0x164   : > { %v446_v6 = vmul.f32 %v829_v58, %v434_v62 }
 0x165   : > { %v993_v1 = vpop.eup %992  ;;  %v445_v2 = vmul.f32 %v829_v58, %v433_v63 }
 0x166   : > { %v995_v3 = vpop.eup %994  ;;  %v436_v4 = vmul.f32 %v993_v1, %v401_v38  ;;  %v458_v13 = vadd.f32 %v830_v0, %v446_v6 }
 0x167   : > { %v457_v7 = vadd.f32 %v830_v0, %v445_v2  ;;  %v435_v8 = vmul.f32 %v995_v3, %v400_v33 }
 0x168   : > { %v448_v9 = vmul.f32 %v829_v58, %v436_v4 }
 0x169   : > { %v869_v10 = vpack.c.bf16 %v457_v7, %v456_v5  ;;  %v447_v11 = vmul.f32 %v829_v58, %v435_v8 }
 0x16a   : > { %v460_v12 = vadd.f32 %v830_v0, %v448_v9 }
 0x16b   : > { %870 = vst [vmem:[#allocation2] sm:$0xff] %v869_v10   ;;  %v459_v14 = vadd.f32 %v830_v0, %v447_v11 }
 0x16c   : > { %v860_v15 = vpack.c.bf16 %v460_v12, %v460_v12 }
 0x16d   : > { %v874_v16 = vpack.c.bf16 %v459_v14, %v458_v13 }
 0x16e   : > { %486 = vst [vmem:[#allocation2 + $0x10] sm:$0xf] %v860_v15 }
 0x16f   : > { %886 = vst [vmem:[#allocation2 + $0x8] sm:$0xff] %v874_v16  }
 0x170 PF: > { %v996_v17 = vld [vmem:[%s1156_s24] sm:$0xff]   ;;  %v1047_v18 = vmov 0.0   ;;  %v997_v19 = vld [vmem:[%s1156_s24 + $0x8] sm:$0xff]   ;;  %vm1048_vm0 = vmmov 0   ;;  %v998_v20 = vld [vmem:[%s1156_s24 + $0x10] sm:$0xff]   ;;  %s853_s14 = sshll.u32 (%p1114_p6), %s1037_s20, 2 }
 0x171   : > { %927 = vmatprep.subr.bf16.mxu1 %v1047_v18  ;;  %899 = vmatprep.subr.bf16.mxu0 %v1047_v18  ;;  %v999_v21 = vld [vmem:[%s1156_s24 + $0x18] sm:$0xff]   ;;  %v1000_v22 = vld [vmem:[%s1156_s24 + $0x20] sm:$0xff]   ;;  %v1001_v23 = vld [vmem:[%s1156_s24 + $0x28] sm:$0xff]   ;;  %s672_s18 = scalar_lea.vmem (%p1114_p6), %s1232_s5, %s853_s14 }
 0x172   : > { %935 = vmatpush3.bf16.msra.mxu1 %v996_v17  ;;  %900 = vmatpush3.bf16.msra.mxu0 %v996_v17  ;;  %v1002_v24 = vld [vmem:[%s1156_s24 + $0x30] sm:$0xff]   ;;  %v1003_v25 = vld [vmem:[%s1156_s24 + $0x38] sm:$0xff]   ;;  %v836_v29 = vld [vmem:[%s369_s17] ss:$0 sm:$0xff] }
 0x173   : > { %928 = vmatprep.subr.bf16.mxu1 %v1047_v18  ;;  %901 = vmatprep.subr.bf16.mxu0 %v1047_v18  ;;  %v1005_v27 = vld [vmem:[#allocation2] sm:$0xff]  }
 0x174   : > { %919 = vmatprep.mubr.msk.bf16.mxu1 %vm1048_vm0, %v1047_v18  ;;  %915 = vmatprep.mubr.msk.bf16.mxu0 %vm1048_vm0, %v1047_v18 }
 0x175   : > { %v1006_v28 = vld [vmem:[#allocation2 + $0x10] ss:$0 sps:$4 sm:$0xff]  }
 0x176   : > { %936 = vmatpush3.bf16.msra.mxu1 %v997_v19  ;;  %902 = vmatpush3.bf16.msra.mxu0 %v997_v19  ;;  %v1004_v26 = vld [vmem:[#allocation2 + $0x8] sm:$0xff]  }
 0x177   : > { %929 = vmatprep.subr.bf16.mxu1 %v1047_v18  ;;  %903 = vmatprep.subr.bf16.mxu0 %v1047_v18 }
 0x17a   : > { %937 = vmatpush3.bf16.msra.mxu1 %v998_v20  ;;  %904 = vmatpush3.bf16.msra.mxu0 %v998_v20 }
 0x17b   : > { %930 = vmatprep.subr.bf16.mxu1 %v1047_v18  ;;  %905 = vmatprep.subr.bf16.mxu0 %v1047_v18 }
 0x17e   : > { %938 = vmatpush3.bf16.msra.mxu1 %v999_v21  ;;  %906 = vmatpush3.bf16.msra.mxu0 %v999_v21 }
 0x17f   : > { %931 = vmatprep.subr.bf16.mxu1 %v1047_v18  ;;  %907 = vmatprep.subr.bf16.mxu0 %v1047_v18 }
 0x182   : > { %939 = vmatpush3.bf16.msra.mxu1 %v1000_v22  ;;  %908 = vmatpush3.bf16.msra.mxu0 %v1000_v22 }
 0x183   : > { %932 = vmatprep.subr.bf16.mxu1 %v1047_v18  ;;  %909 = vmatprep.subr.bf16.mxu0 %v1047_v18 }
 0x186   : > { %940 = vmatpush3.bf16.msra.mxu1 %v1001_v23  ;;  %910 = vmatpush3.bf16.msra.mxu0 %v1001_v23 }
 0x187   : > { %933 = vmatprep.subr.bf16.mxu1 %v1047_v18  ;;  %911 = vmatprep.subr.bf16.mxu0 %v1047_v18 }
 0x18a   : > { %941 = vmatpush3.bf16.msra.mxu1 %v1002_v24  ;;  %912 = vmatpush3.bf16.msra.mxu0 %v1002_v24 }
 0x18b   : > { %934 = vmatprep.subr.bf16.mxu1 %v1047_v18  ;;  %913 = vmatprep.subr.bf16.mxu0 %v1047_v18 }
 0x18e   : > { %942 = vmatpush3.bf16.msra.mxu1 %v1003_v25  ;;  %914 = vmatpush3.bf16.msra.mxu0 %v1003_v25 }
 0x191   : > { %920 = vmatmul.mubr.bf16.vlgmr.msra.gmra.mrb[0].mxu1 %v1004_v26  ;;  %916 = vmatmul.mubr.bf16.vlgmr.msra.gmra.mrb[0].mxu0 %v1005_v27 }
 0x192   : > { %923 = vmatprep.mubr.msk.bf16.mxu1 %vm1048_vm0, %v1047_v18 }
 0x199   : > { %924 = vmatmul.mubr.bf16.gmra.mrb[4].mxu1 %v1006_v28 }
 0x264   : > { %v621_v30 = vpop.f32.mrb[0].mxu1  ;;  %v613_v31 = vpop.f32.mrb[0].mxu0 }
 0x265   : > { %v921_v32 = vpop.f32.mrb[1].mxu1  ;;  %v614_v33 = vadd.f32 %v836_v29, %v613_v31  ;;  %v917_v34 = vpop.f32.mrb[1].mxu0  ;;  %v622_v37 = vadd.f32 %v836_v29, %v621_v30 }
 0x266   : > { %v624_v35 = vpop.f32.mrb[2].mxu1  ;;  %v616_v36 = vpop.f32.mrb[2].mxu0 }
 0x267   : > { %v625_v38 = vadd.f32 %v836_v29, %v624_v35  ;;  %v922_v39 = vpop.f32.mrb[3].mxu1  ;;  %v617_v40 = vadd.f32 %v836_v29, %v616_v36  ;;  %v918_v41 = vpop.f32.mrb[3].mxu0 }
 0x269   : > { %v884_v42 = vpack.c.bf16 %v625_v38, %v622_v37  ;;  %v879_v43 = vpack.c.bf16 %v617_v40, %v614_v33 }
 0x26b   : > { %887 = vst [vmem:[%s1158_s25 + $0x8] sm:$0xff] %v884_v42   ;;  %880 = vst [vmem:[%s1158_s25] sm:$0xff] %v879_v43   ;;  %667 = sbr.rel (!%p1114_p6) target bundleno = 634 (0x27a), region = 89 }
 0x26c   : > { %v629_v44 = vpop.f32.mrb[4].mxu1 }
 0x26d   : > { %v630_v45 = vadd.f32 %v836_v29, %v629_v44  ;;  %v925_v46 = vpop.f32.mrb[5].mxu1 }
 0x26e   : > { %v632_v47 = vpop.f32.mrb[6].mxu1 }
 0x26f   : > { %v865_v48 = vpack.c.bf16 %v630_v45, %v630_v45  ;;  %v926_v49 = vpop.f32.mrb[7].mxu1 }
 0x271   : > { %660 = vst [vmem:[%s1158_s25 + $0x10] sm:$0xf] %v865_v48 }
 0x272   : > { %v688_v50 = vld [vmem:[%s1158_s25] sm:$0xf]  ;;  %v690_v51 = vld [vmem:[%s1158_s25 + $0x4] sm:$0xf]  ;;  %v692_v52 = vld [vmem:[%s1158_s25 + $0x8] sm:$0xf] }
 0x273   : > { %v694_v53 = vld [vmem:[%s1158_s25 + $0xc] sm:$0xf]  ;;  %689 = vst [vmem:[%s672_s18] sm:$0xf] %v688_v50  ;;  %691 = vst [vmem:[%s672_s18 + $0xc] sm:$0xf] %v690_v51 }
 0x274   : > { %693 = vst [vmem:[%s672_s18 + $0x18] sm:$0xf] %v692_v52  ;;  %695 = vst [vmem:[%s672_s18 + $0x24] sm:$0xf] %v694_v53 }
 0x278   : > { %v696_v54 = vld [vmem:[%s1158_s25 + $0x10] sm:$0xf] }
 0x279   : > { %697 = vst [vmem:[%s672_s18 + $0x30] sm:$0xf] %v696_v54 }
 0x27a PF: > { %s15_s22 = sadd.s32 1, %s1045_s22   ;;  %s1234_s18 = smov %s1033_s19 }
 0x27b   : > { %p12_p13 = scmp.ge.s32.totalorder %s15_s22, 5   ;;  %s1235_s19 = smov %s1119_s28 }
 0x27c   : > { %s1236_s20 = smov %s1041_s21  ;;  %s1237_s21 = smov %s1239_s23 }
 0x27d   :  { %14 = sbr.rel (!%p12_p13) target bundleno = 3 (0x3), region = 167 }

// kernel: vit_forward.15
= control target key start
LH: loop header
LB: loop body
LE: loop exit
PB: predicated region body
PF: predicated region fallthrough
CT: control target
= control target key end

     0   :  { %v302_v0 = vmov 0.0   ;;  %vm303_vm0 = vmmov 0   ;;  %s398_s1 = inlined_call_operand.vmem [shape: bf16[128,128], index: 1, kind: input, shape index: {}]   ;;  %s399_s0 = inlined_call_operand.vmem [shape: bf16[40,128], index: 0, kind: input, shape index: {}]   ;;  %s400_s2 = inlined_call_operand.vmem [shape: f32[1,128], index: 2, kind: input, shape index: {}]   ;;  %s401_s3 = inlined_call_operand.vmem [shape: f32[40,128], index: 3, kind: input, shape index: {}]   ;;  %s402_s4 = inlined_call_operand.vmem [shape: f32[40,128], index: 4, kind: output, shape index: {}]  }
   0x1   :  { %273 = vmatprep.subr.bf16.mxu1 %v302_v0  ;;  %v291_v1 = vld [vmem:[%s398_s1] sm:$0xff]   ;;  %245 = vmatprep.subr.bf16.mxu0 %v302_v0  ;;  %v292_v2 = vld [vmem:[%s398_s1 + $0x8] sm:$0xff]   ;;  %v293_v3 = vld [vmem:[%s398_s1 + $0x10] sm:$0xff]  }
   0x2   :  { %265 = vmatprep.mubr.msk.bf16.mxu1 %vm303_vm0, %v302_v0  ;;  %261 = vmatprep.mubr.msk.bf16.mxu0 %vm303_vm0, %v302_v0  ;;  %v294_v4 = vld [vmem:[%s398_s1 + $0x18] sm:$0xff]   ;;  %v295_v5 = vld [vmem:[%s398_s1 + $0x20] sm:$0xff]   ;;  %v296_v6 = vld [vmem:[%s398_s1 + $0x28] sm:$0xff]  }
   0x3   :  { %281 = vmatpush3.bf16.msra.mxu1 %v291_v1  ;;  %246 = vmatpush3.bf16.msra.mxu0 %v291_v1  ;;  %v297_v7 = vld [vmem:[%s398_s1 + $0x30] sm:$0xff]   ;;  %v298_v8 = vld [vmem:[%s398_s1 + $0x38] sm:$0xff]   ;;  %v299_v9 = vld [vmem:[%s399_s0 + $0x8] sm:$0xff]  }
   0x4   :  { %274 = vmatprep.subr.bf16.mxu1 %v302_v0  ;;  %247 = vmatprep.subr.bf16.mxu0 %v302_v0  ;;  %v300_v10 = vld [vmem:[%s399_s0] sm:$0xff]   ;;  %v301_v11 = vld [vmem:[%s399_s0 + $0x10] ss:$0 sps:$4 sm:$0xff]   ;;  %v206_v22 = vld [vmem:[%s401_s3 + $0x18] sm:$0xff] }
   0x5   :  { %v233_v12 = vld [vmem:[%s400_s2] ss:$0 sm:$0xff]  ;;  %v205_v14 = vld [vmem:[%s401_s3 + $0x10] sm:$0xff]  ;;  %v204_v24 = vld [vmem:[%s401_s3 + $0x8] sm:$0xff] }
   0x6   :  { %v203_v16 = vld [vmem:[%s401_s3] sm:$0xff] }
   0x7   :  { %282 = vmatpush3.bf16.msra.mxu1 %v292_v2  ;;  %248 = vmatpush3.bf16.msra.mxu0 %v292_v2  ;;  %v207_v34 = vld [vmem:[%s401_s3 + $0x20] sm:$0xff] }
   0x8   :  { %275 = vmatprep.subr.bf16.mxu1 %v302_v0  ;;  %249 = vmatprep.subr.bf16.mxu0 %v302_v0 }
   0xb   :  { %283 = vmatpush3.bf16.msra.mxu1 %v293_v3  ;;  %250 = vmatpush3.bf16.msra.mxu0 %v293_v3 }
   0xc   :  { %276 = vmatprep.subr.bf16.mxu1 %v302_v0  ;;  %251 = vmatprep.subr.bf16.mxu0 %v302_v0 }
   0xf   :  { %284 = vmatpush3.bf16.msra.mxu1 %v294_v4  ;;  %252 = vmatpush3.bf16.msra.mxu0 %v294_v4 }
  0x10   :  { %277 = vmatprep.subr.bf16.mxu1 %v302_v0  ;;  %253 = vmatprep.subr.bf16.mxu0 %v302_v0 }
  0x13   :  { %285 = vmatpush3.bf16.msra.mxu1 %v295_v5  ;;  %254 = vmatpush3.bf16.msra.mxu0 %v295_v5 }
  0x14   :  { %278 = vmatprep.subr.bf16.mxu1 %v302_v0  ;;  %255 = vmatprep.subr.bf16.mxu0 %v302_v0 }
  0x17   :  { %286 = vmatpush3.bf16.msra.mxu1 %v296_v6  ;;  %256 = vmatpush3.bf16.msra.mxu0 %v296_v6 }
  0x18   :  { %279 = vmatprep.subr.bf16.mxu1 %v302_v0  ;;  %257 = vmatprep.subr.bf16.mxu0 %v302_v0 }
  0x1b   :  { %287 = vmatpush3.bf16.msra.mxu1 %v297_v7  ;;  %258 = vmatpush3.bf16.msra.mxu0 %v297_v7 }
  0x1c   :  { %280 = vmatprep.subr.bf16.mxu1 %v302_v0  ;;  %259 = vmatprep.subr.bf16.mxu0 %v302_v0 }
  0x1f   :  { %288 = vmatpush3.bf16.msra.mxu1 %v298_v8  ;;  %260 = vmatpush3.bf16.msra.mxu0 %v298_v8 }
  0x22   :  { %266 = vmatmul.mubr.bf16.vlgmr.msra.gmra.mrb[0].mxu1 %v299_v9  ;;  %262 = vmatmul.mubr.bf16.vlgmr.msra.gmra.mrb[0].mxu0 %v300_v10 }
  0x23   :  { %269 = vmatprep.mubr.msk.bf16.mxu1 %vm303_vm0, %v302_v0 }
  0x2a   :  { %270 = vmatmul.mubr.bf16.gmra.mrb[4].mxu1 %v301_v11 }
  0xf5   :  { %v159_v13 = vpop.f32.mrb[0].mxu1  ;;  %v151_v15 = vpop.f32.mrb[0].mxu0 }
  0xf6   :  { %v200_v17 = vadd.f32 %v233_v12, %v159_v13  ;;  %v267_v18 = vpop.f32.mrb[1].mxu1  ;;  %v198_v19 = vadd.f32 %v233_v12, %v151_v15  ;;  %v263_v20 = vpop.f32.mrb[1].mxu0 }
  0xf7   :  { %v162_v21 = vpop.f32.mrb[2].mxu1  ;;  %v154_v23 = vpop.f32.mrb[2].mxu0 }
  0xf8   :  { %v210_v25 = vadd.f32 %v205_v14, %v200_v17  ;;  %v201_v26 = vadd.f32 %v233_v12, %v162_v21  ;;  %v208_v27 = vadd.f32 %v203_v16, %v198_v19  ;;  %v268_v28 = vpop.f32.mrb[3].mxu1  ;;  %v199_v29 = vadd.f32 %v233_v12, %v154_v23  ;;  %v264_v30 = vpop.f32.mrb[3].mxu0 }
  0xfa   :  { %215 = vst [vmem:[%s402_s4 + $0x10] sm:$0xff] %v210_v25  ;;  %v211_v31 = vadd.f32 %v206_v22, %v201_v26  ;;  %213 = vst [vmem:[%s402_s4] sm:$0xff] %v208_v27  ;;  %v209_v32 = vadd.f32 %v204_v24, %v199_v29 }
  0xfc   :  { %216 = vst [vmem:[%s402_s4 + $0x18] sm:$0xff] %v211_v31  ;;  %214 = vst [vmem:[%s402_s4 + $0x8] sm:$0xff] %v209_v32 }
  0xfd   :  { %v167_v33 = vpop.f32.mrb[4].mxu1 }
  0xfe   :  { %v202_v35 = vadd.f32 %v233_v12, %v167_v33  ;;  %v271_v36 = vpop.f32.mrb[5].mxu1 }
  0xff   :  { %v170_v37 = vpop.f32.mrb[6].mxu1 }
 0x100   :  { %v212_v38 = vadd.f32 %v207_v34, %v202_v35  ;;  %v272_v39 = vpop.f32.mrb[7].mxu1 }
 0x102   :  { %217 = vst [vmem:[%s402_s4 + $0x20] sm:$0xff] %v212_v38 }

// kernel: vit_forward.14
= control target key start
LH: loop header
LB: loop body
LE: loop exit
PB: predicated region body
PF: predicated region fallthrough
CT: control target
= control target key end

     0   :  { %s1359_s6 = smov 0   ;;  %s1533_s0 = inlined_call_operand.vmem [shape: bf16[2,17,384], index: 0, kind: input, shape index: {}]   ;;  %s1534_s1 = inlined_call_operand.vmem [shape: bf16[2,17,128], index: 1, kind: output, shape index: {}]  }
   0x1 LB: > { %s1074_s7 = sadd.s32 4294967295, %s1343_s6   ;;  %p1078_p0 = scmp.ge.s32.totalorder %s1343_s6, 1  ;;  %s1343_s6 = sphi %s1359_s6, %s11_s6  }
   0x2   : > { %p87_p1 = scmp.lt.s32.totalorder %s1343_s6, 3 }
   0x4   : > { %p88_p2 = pnand %p1078_p0, %p87_p1 }
   0x5   : > { %p107_p3 = scmp.lt.s32.totalorder (!%p88_p2), %s1074_s7, 1  ;;  %vm143_vm0 = vcmask (!%p88_p2), 261120   ;;  %vm214_vm1 = vcmask (!%p88_p2), 131072   ;;  %vm207_vm2 = vcmask (!%p88_p2), 138240   ;;  %vm259_vm3 = vcmask (!%p88_p2), 1040384   ;;  %s1345_s12 = smov (!%p88_p2), 96  }
   0x6   : > { %91 = sbr.rel (%p88_p2) target bundleno = 2563 (0xa03), region = 24  ;;  %v1346_v35 = vmov (!%p88_p2), 0   ;;  %vm329_vm4 = vcmask (!%p88_p2), 253952   ;;  %vm330_vm5 = vsmask.f32 (!%p88_p2), 256  ;;  %vm326_vm7 = vcmask (!%p88_p2), 257024  }
   0x7   : > { %v1396_v36 = vsel (!%p88_p2), %vm259_vm3, 65535, %v1346_v35  ;;  %vm331_vm6 = vmand (!%p88_p2), %vm329_vm4, %vm330_vm5  ;;  %s1347_s17 = smov (!%p88_p2), 64   ;;  %s1348_s18 = smov (!%p88_p2), 32   ;;  %vm558_vm8 = vcmask (!%p88_p2), 516352   ;;  %vm555_vm9 = vcmask (!%p88_p2), 519424   ;;  %vm783_vm11 = vcmask (!%p88_p2), 781824  }
   0x8   : > { %vm559_vm10 = vmand (!%p88_p2), %vm558_vm8, %vm330_vm5  ;;  %vm786_vm12 = vcmask (!%p88_p2), 778752   ;;  %vm1014_vm14 = vcmask (!%p88_p2), 1041152  }
   0x9   : > { %vm787_vm13 = vmand (!%p88_p2), %vm786_vm12, %vm330_vm5 }
   0xa   : > { %vm1015_vm15 = vmand (!%p88_p2), %vm1014_vm14, %vm330_vm5 }
   0xd   : > { %s1536_s7 = smov (!%p107_p3, %s1074_s7), 1 }
   0xe   : > { %s1251_s8 = smul.u32 36, %s1536_s7 }
   0xf   : > { %s1252_s13 = smul.u32 12, %s1536_s7 }
  0x10   : > { %s1373_s11 = scalar_lea.vmem %s1533_s0, %s1251_s8 }
  0x11   : > { %v1265_v0 = vld [vmem:[%s1373_s11 + $0x4] ss:$12 sps:$4 sm:$0xff]   ;;  %v1266_v1 = vld [vmem:[%s1373_s11 + $0x1c] ss:$0 sps:$4 sm:$0x11]   ;;  %s1416_s16 = scalar_lea.vmem %s1534_s1, %s1252_s13 }
  0x12   : > { %1243 = vmatprep.subr.msk.bf16.mxu0 %vm143_vm0, %v1265_v0  ;;  %v151_v2 = vsel %vm143_vm0, %v1265_v0, 0  ;;  %v1267_v3 = vld [vmem:[%s1373_s11] ss:$12 sps:$4 sm:$0xff]   ;;  %v154_v4 = vsel %vm143_vm0, %v1266_v1, 0  ;;  %v1273_v32 = vld [vmem:[%s1373_s11 + $0x8] ss:$12 sps:$4 sm:$0xff]  }
  0x13   : > { %1180 = vmatpush3.bf16.xpose.msra.mxu0 %v151_v2  ;;  %1183 = vmatprep.mubr.msk.bf16.mxu0 %vm143_vm0, %v1267_v3  ;;  %v1268_v5 = vld [vmem:[%s1373_s11 + $0x18] ss:$0 sps:$4 sm:$0x11]   ;;  %v1270_v31 = vld [vmem:[%s1373_s11 + $0x1c] ss:$0 sps:$4 sm:$0x11]  }
  0x14   : > { %1244 = vmatprep.subr.msk.bf16.mxu0 %vm143_vm0, %v1266_v1  ;;  %v1274_v33 = vld [vmem:[%s1373_s11 + $0x20] ss:$0 sps:$4 sm:$0x11]   ;;  %1187 = vmatprep.subr.bf16.mxu1 %v1273_v32  ;;  %v1269_v37 = vld [vmem:[%s1373_s11 + $0x4] ss:$12 sps:$4 sm:$0xff]  }
  0x15   : > { %v1271_v34 = vld [vmem:[%s1373_s11] ss:$12 sps:$4 sm:$0xff]   ;;  %1188 = vmatpush3.bf16.msra.mxu1 %v1273_v32  ;;  %v263_v38 = vand.u32 %v1274_v33, %v1396_v36  ;;  %v1272_v39 = vld [vmem:[%s1373_s11 + $0x18] ss:$0 sps:$4 sm:$0x11]  }
  0x16   : > { %v332_v58 = vld [vmem:[%s1416_s16 + $0x8] sm:$0x1]  ;;  %v1280_v32 = vld [vmem:[%s1373_s11 + $0x18] ss:$0 sps:$4 sm:$0x11]  }
  0x17   : > { %1189 = vmatprep.subr.bf16.mxu1 %v263_v38 }
  0x19   : > { %1190 = vmatpush3.bf16.msra.mxu1 %v263_v38 }
  0x1b   : > { %1182 = vmatpush3.bf16.xpose.msra.mxu0 %v154_v4 }
  0x22   : > { %1184 = vmatmul.mubr.msk.bf16.vlgmr.msra.gmra.mrb[0].mxu0 %vm143_vm0, %v1268_v5 }
  0xf5   : > { %v1185_v6 = vpop.f32.mrb[0].mxu0 }
  0xf6   : > { %v206_v7 = vmul.f32 0.17677669, %v1185_v6  ;;  %v190_v8 = vpop.f32.mrb[1].mxu0 }
  0xf7   : > { %v204_v9 = vmul.f32 0.17677669, %v190_v8  ;;  %v1186_v10 = vpop.f32.mrb[2].mxu0 }
  0xf8   : > { %v193_v11 = vpop.f32.mrb[3].mxu0  ;;  %v215_v12 = vsel %vm214_vm1, %v206_v7, -inf }
  0xf9   : > { %v205_v13 = vmul.f32 0.17677669, %v193_v11  ;;  %216 = vmax.xlane.f32.xlu1 %v215_v12  ;;  %v208_v14 = vsel %vm207_vm2, %v204_v9, -inf }
  0xfa   : > { %209 = vmax.xlane.f32.xlu0 %v208_v14 }
  0xfb   : > { %v211_v15 = vsel %vm207_vm2, %v205_v13, -inf }
  0xfe   : > { %212 = vmax.xlane.f32.xlu0 %v211_v15 }
 0x186   : > { %v217_v16 = vpop.xlane.xlu1 %216 }
 0x187   : > { %v220_v17 = vsub.f32 %v206_v7, %v217_v16  ;;  %v210_v18 = vpop.xlane.xlu0 %209 }
 0x188   : > { %v218_v19 = vsub.f32 %v204_v9, %v210_v18 }
 0x189   : > { %v225_v20 = vmul.f32 1.442695, %v220_v17 }
 0x18a   : > { %v221_v21 = vmul.f32 1.442695, %v218_v19 }
 0x18b   : > { %v213_v22 = vpop.xlane.xlu0 %212 }
 0x18c   : > { %1289 = vpow2.f32 %v221_v21  ;;  %v219_v23 = vsub.f32 %v205_v13, %v213_v22 }
 0x18d   : > { %1291 = vpow2.f32 %v225_v20 }
 0x18e   : > { %v223_v24 = vmul.f32 1.442695, %v219_v23 }
 0x190   : > { %1293 = vpow2.f32 %v223_v24 }
 0x196   : > { %v1290_v25 = vpop.eup %1289 }
 0x197   : > { %v227_v26 = vsel %vm207_vm2, %v1290_v25, 0.0  ;;  %v1292_v27 = vpop.eup %1291 }
 0x198   : > { %228 = vadd.xlane.f32.xlu1 %v227_v26  ;;  %v233_v29 = vsel %vm214_vm1, %v1292_v27, 0.0 }
 0x19a   : > { %v1294_v28 = vpop.eup %1293 }
 0x19b   : > { %v230_v30 = vsel %vm207_vm2, %v1294_v28, 0.0 }
 0x19c   : > { %234 = vadd.xlane.f32.xlu1 %v233_v29  ;;  %231 = vadd.xlane.f32.xlu0 %v230_v30  ;;  %v1275_v29 = vld [vmem:[%s1373_s11 + $0x8] ss:$12 sps:$4 sm:$0xff]   ;;  %v1278_v30 = vld [vmem:[%s1373_s11 + $0x1c] ss:$0 sps:$4 sm:$0x11]  }
 0x1ad   : > { %366 = vrot.lane.b32.xlu1 %v1270_v31, %s1345_s12  ;;  %v1279_v31 = vld [vmem:[%s1373_s11] ss:$12 sps:$4 sm:$0xff]  }
 0x1b1   : > { %352 = vrot.lane.b32.xlu1 %v1271_v34, %s1345_s12 }
 0x1b2   : > { %364 = vrot.lane.b32.xlu0 %v1269_v37, %s1345_s12 }
 0x1b5   : > { %354 = vrot.lane.b32.xlu1 %v1272_v39, %s1345_s12 }
 0x225   : > { %v229_v40 = vpop.xlane.xlu1 %228 }
 0x226   : > { %1295 = vrcp.f32 %v229_v40 }
 0x229   : > { %v235_v41 = vpop.xlane.xlu1 %234  ;;  %v232_v42 = vpop.xlane.xlu0 %231 }
 0x22a   : > { %1297 = vrcp.f32 %v235_v41 }
 0x22b   : > { %1299 = vrcp.f32 %v232_v42 }
 0x22d   : > { %v365_v43 = vpop.permute.xlu0 %364  ;;  %v367_v45 = vpop.permute.xlu1 %366 }
 0x22e   : > { %1245 = vmatprep.subr.msk.bf16.mxu1 %vm143_vm0, %v365_v43  ;;  %v375_v53 = vsel %vm143_vm0, %v365_v43, 0  ;;  %v378_v55 = vsel %vm143_vm0, %v367_v45, 0 }
 0x230   : > { %v1296_v44 = vpop.eup %1295 }
 0x231   : > { %v239_v49 = vmul.f32 %v1296_v44, %v1290_v25  ;;  %v353_v54 = vpop.permute.xlu1 %352 }
 0x234   : > { %v1298_v46 = vpop.eup %1297 }
 0x235   : > { %v1300_v47 = vpop.eup %1299  ;;  %v241_v48 = vmul.f32 %v1298_v46, %v1292_v27  ;;  %v355_v56 = vpop.permute.xlu1 %354  ;;  %v1276_v27 = vld [vmem:[%s1373_s11 + $0x20] ss:$0 sps:$4 sm:$0x11]  }
 0x236   : > { %v240_v50 = vmul.f32 %v1300_v47, %v1294_v28  ;;  %v1277_v28 = vld [vmem:[%s1373_s11 + $0x4] ss:$12 sps:$4 sm:$0xff]  }
 0x237   : > { %v243_v51 = vpack.c.bf16 %v241_v48, %v241_v48 }
 0x238   : > { %v242_v52 = vpack.c.bf16 %v240_v50, %v239_v49 }
 0x23a   : > { %1191 = vmatprep.mubr.msk.bf16.mxu1 %vm207_vm2, %v242_v52 }
 0x23b   : > { %1192 = vmatmul.mubr.msk.bf16.vlgmr.msra.gmra.mrb[0].mxu1 %vm207_vm2, %v243_v51 }
 0x23c   : > { %1196 = vmatpush3.bf16.xpose.msra.mxu1 %v375_v53  ;;  %1199 = vmatprep.mubr.msk.bf16.mxu1 %vm143_vm0, %v353_v54 }
 0x23d   : > { %1246 = vmatprep.subr.msk.bf16.mxu1 %vm143_vm0, %v367_v45 }
 0x244   : > { %1198 = vmatpush3.bf16.xpose.msra.mxu1 %v378_v55 }
 0x24b   : > { %1200 = vmatmul.mubr.msk.bf16.vlgmr.msra.gmra.mrb[4].mxu1 %vm143_vm0, %v355_v56 }
 0x30e   : > { %v1193_v57 = vpop.f32.mrb[0].mxu1 }
 0x30f   : > { %v1137_v59 = vpack.c.bf16 %v1193_v57, %v1193_v57  ;;  %v299_v60 = vpop.f32.mrb[1].mxu1 }
 0x310   : > { %v1135_v61 = vpack.c.bf16 %v299_v60, %v299_v60  ;;  %v1194_v62 = vpop.f32.mrb[2].mxu1 }
 0x311   : > { %v333_v63 = vsel %vm331_vm6, %v1137_v59, %v332_v58  ;;  %v302_v0 = vpop.f32.mrb[3].mxu1 }
 0x312   : > { %334 = vst [vmem:[%s1416_s16 + $0x8] sm:$0x1] %v333_v63  ;;  %327 = vst.msk [vmem:[%s1416_s16] sm:$0xf] %vm326_vm7, %v1135_v61  ;;  %v1136_v1 = vpack.c.bf16 %v302_v0, %v302_v0 }
 0x314   : > { %328 = vst.msk [vmem:[%s1416_s16 + $0x4] sm:$0xf] %vm326_vm7, %v1136_v1 }
 0x31e   : > { %v1201_v2 = vpop.f32.mrb[4].mxu1 }
 0x31f   : > { %v414_v3 = vpop.f32.mrb[5].mxu1  ;;  %v430_v7 = vmul.f32 0.17677669, %v1201_v2 }
 0x320   : > { %v428_v4 = vmul.f32 0.17677669, %v414_v3  ;;  %v1202_v5 = vpop.f32.mrb[6].mxu1 }
 0x321   : > { %v417_v6 = vpop.f32.mrb[7].mxu1  ;;  %v437_v11 = vsel %vm214_vm1, %v430_v7, -inf }
 0x322   : > { %v429_v8 = vmul.f32 0.17677669, %v417_v6  ;;  %v431_v9 = vsel %vm207_vm2, %v428_v4, -inf }
 0x323   : > { %432 = vmax.xlane.f32.xlu0 %v431_v9 }
 0x324   : > { %v434_v10 = vsel %vm207_vm2, %v429_v8, -inf }
 0x325   : > { %435 = vmax.xlane.f32.xlu1 %v434_v10 }
 0x327   : > { %438 = vmax.xlane.f32.xlu0 %v437_v11 }
 0x3b0   : > { %v433_v12 = vpop.xlane.xlu0 %432 }
 0x3b1   : > { %v440_v13 = vsub.f32 %v428_v4, %v433_v12 }
 0x3b2   : > { %v436_v14 = vpop.xlane.xlu1 %435 }
 0x3b3   : > { %v443_v15 = vmul.f32 1.442695, %v440_v13  ;;  %v441_v16 = vsub.f32 %v429_v8, %v436_v14 }
 0x3b4   : > { %v439_v17 = vpop.xlane.xlu0 %438 }
 0x3b5   : > { %1301 = vpow2.f32 %v443_v15  ;;  %v445_v18 = vmul.f32 1.442695, %v441_v16  ;;  %v442_v19 = vsub.f32 %v430_v7, %v439_v17 }
 0x3b7   : > { %1303 = vpow2.f32 %v445_v18  ;;  %v447_v20 = vmul.f32 1.442695, %v442_v19  ;;  %v1282_v19 = vld [vmem:[%s1373_s11 + $0x20] ss:$0 sps:$4 sm:$0x11]  }
 0x3b9   : > { %1305 = vpow2.f32 %v447_v20  ;;  %v1283_v20 = vld [vmem:[%s1373_s11 + $0x4] ss:$12 sps:$4 sm:$0xff]  }
 0x3bf   : > { %v1302_v21 = vpop.eup %1301 }
 0x3c0   : > { %v449_v22 = vsel %vm207_vm2, %v1302_v21, 0.0 }
 0x3c1   : > { %v1304_v23 = vpop.eup %1303  ;;  %450 = vadd.xlane.f32.xlu0 %v449_v22  ;;  %v1284_v22 = vld [vmem:[%s1373_s11 + $0x1c] ss:$0 sps:$4 sm:$0x11]  }
 0x3c2   : > { %v452_v26 = vsel %vm207_vm2, %v1304_v23, 0.0 }
 0x3c3   : > { %v1306_v24 = vpop.eup %1305 }
 0x3c4   : > { %v455_v25 = vsel %vm214_vm1, %v1306_v24, 0.0 }
 0x3c5   : > { %456 = vadd.xlane.f32.xlu1 %v455_v25  ;;  %453 = vadd.xlane.f32.xlu0 %v452_v26 }
 0x3d6   : > { %476 = vrot.lane.b32.xlu1 %v1276_v27, %s1345_s12 }
 0x3da   : > { %592 = vrot.lane.b32.xlu1 %v1277_v28, %s1347_s17 }
 0x3db   : > { %474 = vrot.lane.b32.xlu0 %v1275_v29, %s1345_s12 }
 0x3de   : > { %594 = vrot.lane.b32.xlu1 %v1278_v30, %s1347_s17 }
 0x3df   : > { %580 = vrot.lane.b32.xlu0 %v1279_v31, %s1347_s17 }
 0x3e2   : > { %582 = vrot.lane.b32.xlu1 %v1280_v32, %s1347_s17 }
 0x44e   : > { %v451_v33 = vpop.xlane.xlu0 %450 }
 0x44f   : > { %1307 = vrcp.f32 %v451_v33 }
 0x452   : > { %v454_v34 = vpop.xlane.xlu0 %453  ;;  %v457_v35 = vpop.xlane.xlu1 %456 }
 0x453   : > { %1309 = vrcp.f32 %v454_v34 }
 0x454   : > { %1311 = vrcp.f32 %v457_v35 }
 0x456   : > { %v475_v37 = vpop.permute.xlu0 %474  ;;  %v477_v38 = vpop.permute.xlu1 %476 }
 0x457   : > { %1203 = vmatprep.subr.bf16.mxu0 %v475_v37  ;;  %v486_v39 = vand.u32 %v477_v38, %v1396_v36 }
 0x458   : > { %1204 = vmatpush3.bf16.msra.mxu0 %v475_v37 }
 0x459   : > { %1205 = vmatprep.subr.bf16.mxu0 %v486_v39  ;;  %v1308_v41 = vpop.eup %1307 }
 0x45a   : > { %v593_v40 = vpop.permute.xlu1 %592  ;;  %v461_v44 = vmul.f32 %v1308_v41, %v1302_v21  ;;  %v581_v49 = vpop.permute.xlu0 %580  ;;  %v1281_v21 = vld [vmem:[%s1373_s11 + $0x8] ss:$12 sps:$4 sm:$0xff]  }
 0x45b   : > { %v603_v50 = vsel %vm143_vm0, %v593_v40, 0 }
 0x45c   : > { %1206 = vmatpush3.bf16.msra.mxu0 %v486_v39 }
 0x45d   : > { %v1310_v42 = vpop.eup %1309  ;;  %1247 = vmatprep.subr.msk.bf16.mxu0 %vm143_vm0, %v593_v40 }
 0x45e   : > { %v1312_v43 = vpop.eup %1311  ;;  %v462_v45 = vmul.f32 %v1310_v42, %v1304_v23  ;;  %v595_v51 = vpop.permute.xlu1 %594  ;;  %v1285_v23 = vld [vmem:[%s1373_s11] ss:$12 sps:$4 sm:$0xff]  }
 0x45f   : > { %v463_v46 = vmul.f32 %v1312_v43, %v1306_v24  ;;  %v606_v52 = vsel %vm143_vm0, %v595_v51, 0  ;;  %v1286_v24 = vld [vmem:[%s1373_s11 + $0x18] ss:$0 sps:$4 sm:$0x11]  }
 0x460   : > { %v464_v47 = vpack.c.bf16 %v462_v45, %v461_v44 }
 0x461   : > { %v465_v48 = vpack.c.bf16 %v463_v46, %v463_v46 }
 0x462   : > { %1207 = vmatprep.mubr.msk.bf16.mxu0 %vm207_vm2, %v464_v47  ;;  %v583_v53 = vpop.permute.xlu1 %582 }
 0x463   : > { %1208 = vmatmul.mubr.msk.bf16.vlgmr.msra.gmra.mrb[4].mxu0 %vm207_vm2, %v465_v48 }
 0x464   : > { %1215 = vmatprep.mubr.msk.bf16.mxu0 %vm143_vm0, %v581_v49 }
 0x465   : > { %1212 = vmatpush3.bf16.xpose.msra.mxu0 %v603_v50 }
 0x466   : > { %1248 = vmatprep.subr.msk.bf16.mxu0 %vm143_vm0, %v595_v51 }
 0x46d   : > { %1214 = vmatpush3.bf16.xpose.msra.mxu0 %v606_v52 }
 0x474   : > { %1216 = vmatmul.mubr.msk.bf16.vlgmr.msra.gmra.mrb[8].mxu0 %vm143_vm0, %v583_v53 }
 0x536   : > { %v1450_v54 = vpop.f32.mrb[4].mxu0 }
 0x537   : > { %v1452_v55 = vpop.f32.mrb[5].mxu0 }
 0x538   : > { %v1210_v56 = vpop.f32.mrb[6].mxu0 }
 0x539   : > { %v1454_v57 = vpop.f32.mrb[7].mxu0 }
 0x547   : > { %v1217_v58 = vpop.f32.mrb[8].mxu0 }
 0x548   : > { %v642_v59 = vpop.f32.mrb[9].mxu0  ;;  %v658_v63 = vmul.f32 0.17677669, %v1217_v58 }
 0x549   : > { %v656_v60 = vmul.f32 0.17677669, %v642_v59  ;;  %v1218_v61 = vpop.f32.mrb[10].mxu0 }
 0x54a   : > { %v645_v62 = vpop.f32.mrb[11].mxu0  ;;  %v665_v3 = vsel %vm214_vm1, %v658_v63, -inf }
 0x54b   : > { %v657_v0 = vmul.f32 0.17677669, %v645_v62  ;;  %v659_v1 = vsel %vm207_vm2, %v656_v60, -inf }
 0x54c   : > { %660 = vmax.xlane.f32.xlu0 %v659_v1 }
 0x54d   : > { %v662_v2 = vsel %vm207_vm2, %v657_v0, -inf }
 0x54e   : > { %663 = vmax.xlane.f32.xlu1 %v662_v2 }
 0x550   : > { %666 = vmax.xlane.f32.xlu0 %v665_v3 }
 0x5d9   : > { %v661_v4 = vpop.xlane.xlu0 %660 }
 0x5da   : > { %v668_v5 = vsub.f32 %v656_v60, %v661_v4 }
 0x5db   : > { %v664_v6 = vpop.xlane.xlu1 %663 }
 0x5dc   : > { %v671_v7 = vmul.f32 1.442695, %v668_v5  ;;  %v669_v8 = vsub.f32 %v657_v0, %v664_v6 }
 0x5dd   : > { %v667_v9 = vpop.xlane.xlu0 %666 }
 0x5de   : > { %1313 = vpow2.f32 %v671_v7  ;;  %v673_v10 = vmul.f32 1.442695, %v669_v8  ;;  %v670_v11 = vsub.f32 %v658_v63, %v667_v9 }
 0x5e0   : > { %1315 = vpow2.f32 %v673_v10  ;;  %v675_v12 = vmul.f32 1.442695, %v670_v11 }
 0x5e2   : > { %1317 = vpow2.f32 %v675_v12 }
 0x5e8   : > { %v1314_v13 = vpop.eup %1313 }
 0x5e9   : > { %v677_v14 = vsel %vm207_vm2, %v1314_v13, 0.0 }
 0x5ea   : > { %v1316_v15 = vpop.eup %1315  ;;  %678 = vadd.xlane.f32.xlu0 %v677_v14  ;;  %v1287_v14 = vld [vmem:[%s1373_s11 + $0x20] ss:$0 sps:$4 sm:$0x11]  }
 0x5eb   : > { %v680_v18 = vsel %vm207_vm2, %v1316_v15, 0.0 }
 0x5ec   : > { %v1318_v16 = vpop.eup %1317 }
 0x5ed   : > { %v683_v17 = vsel %vm214_vm1, %v1318_v16, 0.0 }
 0x5ee   : > { %684 = vadd.xlane.f32.xlu1 %v683_v17  ;;  %681 = vadd.xlane.f32.xlu0 %v680_v18  ;;  %v1138_v18 = vpack.c.bf16 %v1452_v55, %v1452_v55 }
 0x5ff   : > { %704 = vrot.lane.b32.xlu1 %v1282_v19, %s1347_s17  ;;  %v1139_v19 = vpack.c.bf16 %v1454_v57, %v1454_v57 }
 0x603   : > { %820 = vrot.lane.b32.xlu1 %v1283_v20, %s1348_s18 }
 0x604   : > { %702 = vrot.lane.b32.xlu0 %v1281_v21, %s1347_s17 }
 0x607   : > { %822 = vrot.lane.b32.xlu1 %v1284_v22, %s1348_s18 }
 0x608   : > { %808 = vrot.lane.b32.xlu0 %v1285_v23, %s1348_s18 }
 0x60b   : > { %810 = vrot.lane.b32.xlu1 %v1286_v24, %s1348_s18 }
 0x677   : > { %v679_v25 = vpop.xlane.xlu0 %678 }
 0x678   : > { %1319 = vrcp.f32 %v679_v25 }
 0x67b   : > { %v682_v26 = vpop.xlane.xlu0 %681  ;;  %v685_v27 = vpop.xlane.xlu1 %684 }
 0x67c   : > { %1321 = vrcp.f32 %v682_v26  ;;  %v560_v26 = vld [vmem:[%s1416_s16 + $0x8] sm:$0x1] }
 0x67d   : > { %1323 = vrcp.f32 %v685_v27 }
 0x67f   : > { %v703_v28 = vpop.permute.xlu0 %702  ;;  %v705_v29 = vpop.permute.xlu1 %704 }
 0x680   : > { %1219 = vmatprep.subr.bf16.mxu1 %v703_v28  ;;  %v714_v30 = vand.u32 %v705_v29, %v1396_v36 }
 0x681   : > { %1220 = vmatpush3.bf16.msra.mxu1 %v703_v28 }
 0x682   : > { %1221 = vmatprep.subr.bf16.mxu1 %v714_v30  ;;  %v1320_v32 = vpop.eup %1319 }
 0x683   : > { %v821_v31 = vpop.permute.xlu1 %820  ;;  %v689_v35 = vmul.f32 %v1320_v32, %v1314_v13  ;;  %v809_v41 = vpop.permute.xlu0 %808 }
 0x684   : > { %v831_v42 = vsel %vm143_vm0, %v821_v31, 0 }
 0x685   : > { %1222 = vmatpush3.bf16.msra.mxu1 %v714_v30 }
 0x686   : > { %v1322_v33 = vpop.eup %1321  ;;  %1249 = vmatprep.subr.msk.bf16.mxu1 %vm143_vm0, %v821_v31 }
 0x687   : > { %v1324_v34 = vpop.eup %1323  ;;  %v690_v37 = vmul.f32 %v1322_v33, %v1316_v15  ;;  %v823_v43 = vpop.permute.xlu1 %822  ;;  %v1288_v15 = vld [vmem:[%s1373_s11 + $0x8] ss:$12 sps:$4 sm:$0xff]  }
 0x688   : > { %v691_v38 = vmul.f32 %v1324_v34, %v1318_v16  ;;  %v834_v44 = vsel %vm143_vm0, %v823_v43, 0  ;;  %v1140_v16 = vpack.c.bf16 %v1450_v54, %v1450_v54 }
 0x689   : > { %v692_v39 = vpack.c.bf16 %v690_v37, %v689_v35 }
 0x68a   : > { %v693_v40 = vpack.c.bf16 %v691_v38, %v691_v38 }
 0x68b   : > { %1223 = vmatprep.mubr.msk.bf16.mxu1 %vm207_vm2, %v692_v39  ;;  %v811_v45 = vpop.permute.xlu1 %810 }
 0x68c   : > { %1224 = vmatmul.mubr.msk.bf16.vlgmr.msra.gmra.mrb[8].mxu1 %vm207_vm2, %v693_v40 }
 0x68d   : > { %1231 = vmatprep.mubr.msk.bf16.mxu1 %vm143_vm0, %v809_v41 }
 0x68e   : > { %1228 = vmatpush3.bf16.xpose.msra.mxu1 %v831_v42 }
 0x68f   : > { %1250 = vmatprep.subr.msk.bf16.mxu1 %vm143_vm0, %v823_v43 }
 0x696   : > { %1230 = vmatpush3.bf16.xpose.msra.mxu1 %v834_v44 }
 0x69d   : > { %1232 = vmatmul.mubr.msk.bf16.vlgmr.msra.gmra.mrb[12].mxu1 %vm143_vm0, %v811_v45  ;;  %vm1011_vm0 = vcmask 1044224  }
 0x75f   : > { %v1225_v46 = vpop.f32.mrb[8].mxu1 }
 0x760   : > { %v750_v47 = vpop.f32.mrb[9].mxu1  ;;  %v1143_v17 = vpack.c.bf16 %v1225_v46, %v1225_v46 }
 0x761   : > { %v1226_v48 = vpop.f32.mrb[10].mxu1  ;;  %v1141_v20 = vpack.c.bf16 %v750_v47, %v750_v47 }
 0x762   : > { %v753_v49 = vpop.f32.mrb[11].mxu1 }
 0x763   : > { %v1142_v54 = vpack.c.bf16 %v753_v49, %v753_v49 }
 0x770   : > { %v1233_v50 = vpop.f32.mrb[12].mxu1 }
 0x771   : > { %v870_v51 = vpop.f32.mrb[13].mxu1  ;;  %v886_v58 = vmul.f32 0.17677669, %v1233_v50 }
 0x772   : > { %v884_v52 = vmul.f32 0.17677669, %v870_v51  ;;  %v1234_v53 = vpop.f32.mrb[14].mxu1 }
 0x773   : > { %v873_v56 = vpop.f32.mrb[15].mxu1  ;;  %v893_v62 = vsel %vm214_vm1, %v886_v58, -inf }
 0x774   : > { %v885_v59 = vmul.f32 0.17677669, %v873_v56  ;;  %v887_v60 = vsel %vm207_vm2, %v884_v52, -inf }
 0x775   : > { %888 = vmax.xlane.f32.xlu0 %v887_v60 }
 0x776   : > { %v890_v61 = vsel %vm207_vm2, %v885_v59, -inf }
 0x777   : > { %891 = vmax.xlane.f32.xlu1 %v890_v61 }
 0x779   : > { %894 = vmax.xlane.f32.xlu0 %v893_v62 }
 0x802   : > { %v889_v63 = vpop.xlane.xlu0 %888 }
 0x803   : > { %v896_v0 = vsub.f32 %v884_v52, %v889_v63 }
 0x804   : > { %v892_v1 = vpop.xlane.xlu1 %891 }
 0x805   : > { %v899_v2 = vmul.f32 1.442695, %v896_v0  ;;  %v897_v3 = vsub.f32 %v885_v59, %v892_v1 }
 0x806   : > { %v895_v4 = vpop.xlane.xlu0 %894 }
 0x807   : > { %1325 = vpow2.f32 %v899_v2  ;;  %v901_v5 = vmul.f32 1.442695, %v897_v3  ;;  %v898_v6 = vsub.f32 %v886_v58, %v895_v4 }
 0x809   : > { %1327 = vpow2.f32 %v901_v5  ;;  %v903_v7 = vmul.f32 1.442695, %v898_v6 }
 0x80b   : > { %1329 = vpow2.f32 %v903_v7 }
 0x811   : > { %v1326_v8 = vpop.eup %1325 }
 0x812   : > { %v905_v9 = vsel %vm207_vm2, %v1326_v8, 0.0 }
 0x813   : > { %v1328_v10 = vpop.eup %1327  ;;  %906 = vadd.xlane.f32.xlu0 %v905_v9 }
 0x814   : > { %v908_v13 = vsel %vm207_vm2, %v1328_v10, 0.0 }
 0x815   : > { %v1330_v11 = vpop.eup %1329 }
 0x816   : > { %v911_v12 = vsel %vm214_vm1, %v1330_v11, 0.0 }
 0x817   : > { %912 = vadd.xlane.f32.xlu1 %v911_v12  ;;  %909 = vadd.xlane.f32.xlu0 %v908_v13 }
 0x828   : > { %932 = vrot.lane.b32.xlu1 %v1287_v14, %s1348_s18 }
 0x82c   : > { %550 = vrot.lane.b32.xlu1 %v1140_v16, %s1348_s18 }
 0x82d   : > { %930 = vrot.lane.b32.xlu0 %v1288_v15, %s1348_s18 }
 0x830   : > { %778 = vrot.lane.b32.xlu1 %v1143_v17, %s1347_s17 }
 0x831   : > { %546 = vrot.lane.b32.xlu0 %v1138_v18, %s1348_s18 }
 0x834   : > { %548 = vrot.lane.b32.xlu1 %v1139_v19, %s1348_s18 }
 0x835   : > { %774 = vrot.lane.b32.xlu0 %v1141_v20, %s1347_s17 }
 0x838   : > { %776 = vrot.lane.b32.xlu1 %v1142_v54, %s1347_s17 }
 0x8a0   : > { %v907_v21 = vpop.xlane.xlu0 %906 }
 0x8a1   : > { %1331 = vrcp.f32 %v907_v21 }
 0x8a4   : > { %v910_v22 = vpop.xlane.xlu0 %909  ;;  %v913_v55 = vpop.xlane.xlu1 %912 }
 0x8a5   : > { %1333 = vrcp.f32 %v910_v22 }
 0x8a6   : > { %1335 = vrcp.f32 %v913_v55 }
 0x8a8   : > { %v931_v23 = vpop.permute.xlu0 %930  ;;  %v933_v57 = vpop.permute.xlu1 %932 }
 0x8a9   : > { %v942_v24 = vand.u32 %v933_v57, %v1396_v36  ;;  %1235 = vmatprep.subr.bf16.mxu0 %v931_v23 }
 0x8aa   : > { %1236 = vmatpush3.bf16.msra.mxu0 %v931_v23 }
 0x8ab   : > { %1237 = vmatprep.subr.bf16.mxu0 %v942_v24  ;;  %v1332_v28 = vpop.eup %1331 }
 0x8ac   : > { %v547_v25 = vpop.permute.xlu0 %546  ;;  %v551_v27 = vpop.permute.xlu1 %550  ;;  %v917_v33 = vmul.f32 %v1332_v28, %v1326_v8 }
 0x8ad   : > { %556 = vst.msk [vmem:[%s1416_s16] sm:$0xf] %vm555_vm9, %v547_v25  ;;  %v561_v29 = vsel %vm559_vm10, %v551_v27, %v560_v26 }
 0x8ae   : > { %562 = vst [vmem:[%s1416_s16 + $0x8] sm:$0x1] %v561_v29  ;;  %1238 = vmatpush3.bf16.msra.mxu0 %v942_v24 }
 0x8af   : > { %v1334_v36 = vpop.eup %1333 }
 0x8b0   : > { %v1336_v30 = vpop.eup %1335  ;;  %v775_v31 = vpop.permute.xlu0 %774  ;;  %v918_v34 = vmul.f32 %v1334_v36, %v1328_v10 }
 0x8b1   : > { %v779_v32 = vpop.permute.xlu1 %778  ;;  %v919_v35 = vmul.f32 %v1336_v30, %v1330_v11  ;;  %784 = vst.msk [vmem:[%s1416_s16] sm:$0xf] %vm783_vm11, %v775_v31 }
 0x8b2   : > { %v920_v37 = vpack.c.bf16 %v918_v34, %v917_v33 }
 0x8b3   : > { %v921_v38 = vpack.c.bf16 %v919_v35, %v919_v35 }
 0x8b4   : > { %1239 = vmatprep.mubr.msk.bf16.mxu0 %vm207_vm2, %v920_v37 }
 0x8b5   : > { %v549_v39 = vpop.permute.xlu1 %548  ;;  %v788_v40 = vld [vmem:[%s1416_s16 + $0x8] sm:$0x1]  ;;  %1240 = vmatmul.mubr.msk.bf16.vlgmr.msra.gmra.mrb[12].mxu0 %vm207_vm2, %v921_v38 }
 0x8b6   : > { %557 = vst.msk [vmem:[%s1416_s16 + $0x4] sm:$0xf] %vm555_vm9, %v549_v39  ;;  %v789_v41 = vsel %vm787_vm13, %v779_v32, %v788_v40 }
 0x8b7   : > { %790 = vst [vmem:[%s1416_s16 + $0x8] sm:$0x1] %v789_v41 }
 0x8b9   : > { %v777_v42 = vpop.permute.xlu1 %776 }
 0x8ba   : > { %785 = vst.msk [vmem:[%s1416_s16 + $0x4] sm:$0xf] %vm783_vm11, %v777_v42 }
 0x8be   : > { %v1016_v51 = vld [vmem:[%s1416_s16 + $0x8] sm:$0x1] }
 0x988   : > { %v1241_v43 = vpop.f32.mrb[12].mxu0 }
 0x989   : > { %v1146_v44 = vpack.c.bf16 %v1241_v43, %v1241_v43  ;;  %v978_v45 = vpop.f32.mrb[13].mxu0 }
 0x98a   : > { %v1144_v46 = vpack.c.bf16 %v978_v45, %v978_v45  ;;  %v1242_v47 = vpop.f32.mrb[14].mxu0 }
 0x98b   : > { %1006 = vrot.lane.b32.xlu0 %v1146_v44, %s1345_s12  ;;  %v981_v48 = vpop.f32.mrb[15].mxu0 }
 0x98c   : > { %v1145_v49 = vpack.c.bf16 %v981_v48, %v981_v48  ;;  %1002 = vrot.lane.b32.xlu1 %v1144_v46, %s1345_s12 }
 0x98f   : > { %1004 = vrot.lane.b32.xlu0 %v1145_v49, %s1345_s12 }
 0x9fd   : > { %v1007_v50 = vpop.permute.xlu0 %1006 }
 0x9fe   : > { %v1017_v52 = vsel %vm1015_vm15, %v1007_v50, %v1016_v51  ;;  %v1003_v53 = vpop.permute.xlu1 %1002 }
 0x9ff   : > { %1018 = vst [vmem:[%s1416_s16 + $0x8] sm:$0x1] %v1017_v52  ;;  %1012 = vst.msk [vmem:[%s1416_s16] sm:$0xf] %vm1011_vm0, %v1003_v53 }
 0xa01   : > { %v1005_v56 = vpop.permute.xlu0 %1004 }
 0xa02   : > { %1013 = vst.msk [vmem:[%s1416_s16 + $0x4] sm:$0xf] %vm1011_vm0, %v1005_v56 }
 0xa03 PF: > { %s11_s6 = sadd.s32 1, %s1343_s6  }
 0xa04   : > { %p8_p4 = scmp.ge.s32.totalorder %s11_s6, 4  }
 0xa06   :  { %10 = sbr.rel (!%p8_p4) target bundleno = 1 (0x1), region = 54 }

// kernel: vit_forward.17
= control target key start
LH: loop header
LB: loop body
LE: loop exit
PB: predicated region body
PF: predicated region fallthrough
CT: control target
= control target key end

     0   :  { %s515_s1 = inlined_call_operand.vmem [shape: bf16[256,128], index: 1, kind: input, shape index: {}]   ;;  %s516_s0 = inlined_call_operand.vmem [shape: bf16[40,256], index: 0, kind: input, shape index: {}]   ;;  %s517_s2 = inlined_call_operand.vmem [shape: f32[1,128], index: 2, kind: input, shape index: {}]   ;;  %s518_s3 = inlined_call_operand.vmem [shape: f32[40,128], index: 3, kind: input, shape index: {}]   ;;  %s519_s4 = inlined_call_operand.vmem [shape: f32[40,128], index: 4, kind: output, shape index: {}]  }
   0x1   :  { %v370_v0 = vld [vmem:[%s515_s1 + $0x40] sm:$0xff]   ;;  %v372_v2 = vld [vmem:[%s515_s1 + $0x48] sm:$0xff]   ;;  %v374_v4 = vld [vmem:[%s515_s1 + $0x50] sm:$0xff]  }
   0x2   :  { %v371_v1 = vld [vmem:[%s515_s1] sm:$0xff]   ;;  %354 = vmatprep.subr.bf16.mxu1 %v370_v0  ;;  %320 = vmatprep.subr.bf16.mxu0 %v370_v0  ;;  %v373_v3 = vld [vmem:[%s515_s1 + $0x8] sm:$0xff]   ;;  %v375_v5 = vld [vmem:[%s515_s1 + $0x10] sm:$0xff]  }
   0x3   :  { %362 = vmatpush3.bf16.msra.mxu1 %v371_v1  ;;  %321 = vmatpush3.bf16.msra.mxu0 %v371_v1  ;;  %v376_v6 = vld [vmem:[%s515_s1 + $0x58] sm:$0xff]   ;;  %v378_v8 = vld [vmem:[%s515_s1 + $0x60] sm:$0xff]   ;;  %v380_v10 = vld [vmem:[%s515_s1 + $0x68] sm:$0xff]  }
   0x4   :  { %355 = vmatprep.subr.bf16.mxu1 %v372_v2  ;;  %322 = vmatprep.subr.bf16.mxu0 %v372_v2  ;;  %v377_v7 = vld [vmem:[%s515_s1 + $0x18] sm:$0xff]   ;;  %v379_v9 = vld [vmem:[%s515_s1 + $0x20] sm:$0xff]   ;;  %v381_v13 = vld [vmem:[%s515_s1 + $0x28] sm:$0xff]  }
   0x5   :  { %v388_v11 = vld [vmem:[%s516_s0 + $0x14] ss:$8 sps:$4 sm:$0xff]   ;;  %v391_v12 = vld [vmem:[%s516_s0 + $0x4] ss:$8 sps:$4 sm:$0xff]   ;;  %v386_v19 = vld [vmem:[%s516_s0 + $0x10] ss:$8 sps:$4 sm:$0xff]  }
   0x6   :  { %v382_v14 = vld [vmem:[%s515_s1 + $0x70] sm:$0xff]   ;;  %232 = vmatprep.mubr.bf16.mxu1 %v388_v11  ;;  %224 = vmatprep.mubr.bf16.mxu0 %v391_v12  ;;  %v384_v16 = vld [vmem:[%s515_s1 + $0x78] sm:$0xff]   ;;  %v36_v18 = vld [vmem:[%s516_s0 + $0x20] sm:$0xff] }
   0x7   :  { %363 = vmatpush3.bf16.msra.mxu1 %v373_v3  ;;  %323 = vmatpush3.bf16.msra.mxu0 %v373_v3  ;;  %v383_v15 = vld [vmem:[%s515_s1 + $0x30] sm:$0xff]   ;;  %v385_v17 = vld [vmem:[%s515_s1 + $0x38] sm:$0xff]   ;;  %v389_v20 = vld [vmem:[%s516_s0] ss:$8 sps:$4 sm:$0xff]   ;;  %v302_v21 = vcombine.high %v36_v18, %v36_v18  ;;  %v301_v22 = vcombine.low %v36_v18, %v36_v18 }
   0x8   :  { %356 = vmatprep.subr.bf16.mxu1 %v374_v4  ;;  %324 = vmatprep.subr.bf16.mxu0 %v374_v4  ;;  %v319_v26 = vld [vmem:[%s517_s2] ss:$0 sm:$0xff]  ;;  %v280_v32 = vld [vmem:[%s518_s3 + $0x10] sm:$0xff]  ;;  %v281_v40 = vld [vmem:[%s518_s3 + $0x18] sm:$0xff] }
   0x9   :  { %v278_v34 = vld [vmem:[%s518_s3] sm:$0xff]  ;;  %v279_v41 = vld [vmem:[%s518_s3 + $0x8] sm:$0xff] }
   0xa   :  { %v282_v52 = vld [vmem:[%s518_s3 + $0x20] sm:$0xff] }
   0xb   :  { %364 = vmatpush3.bf16.msra.mxu1 %v375_v5  ;;  %325 = vmatpush3.bf16.msra.mxu0 %v375_v5 }
   0xc   :  { %357 = vmatprep.subr.bf16.mxu1 %v376_v6  ;;  %326 = vmatprep.subr.bf16.mxu0 %v376_v6 }
   0xf   :  { %365 = vmatpush3.bf16.msra.mxu1 %v377_v7  ;;  %327 = vmatpush3.bf16.msra.mxu0 %v377_v7 }
  0x10   :  { %358 = vmatprep.subr.bf16.mxu1 %v378_v8  ;;  %328 = vmatprep.subr.bf16.mxu0 %v378_v8 }
  0x13   :  { %366 = vmatpush3.bf16.msra.mxu1 %v379_v9  ;;  %329 = vmatpush3.bf16.msra.mxu0 %v379_v9 }
  0x14   :  { %359 = vmatprep.subr.bf16.mxu1 %v380_v10  ;;  %330 = vmatprep.subr.bf16.mxu0 %v380_v10 }
  0x17   :  { %367 = vmatpush3.bf16.msra.mxu1 %v381_v13  ;;  %331 = vmatpush3.bf16.msra.mxu0 %v381_v13 }
  0x18   :  { %360 = vmatprep.subr.bf16.mxu1 %v382_v14  ;;  %332 = vmatprep.subr.bf16.mxu0 %v382_v14 }
  0x1b   :  { %368 = vmatpush3.bf16.msra.mxu1 %v383_v15  ;;  %333 = vmatpush3.bf16.msra.mxu0 %v383_v15 }
  0x1c   :  { %361 = vmatprep.subr.bf16.mxu1 %v384_v16  ;;  %334 = vmatprep.subr.bf16.mxu0 %v384_v16 }
  0x1f   :  { %369 = vmatpush3.bf16.msra.mxu1 %v385_v17  ;;  %335 = vmatpush3.bf16.msra.mxu0 %v385_v17 }
  0x22   :  { %233 = vmatmul.mubr.bf16.vlgmr.msra.gmra.mrb[0].mxu1 %v386_v19  ;;  %225 = vmatmul.mubr.bf16.vlgmr.msra.gmra.mrb[0].mxu0 %v389_v20 }
  0x23   :  { %240 = vmatprep.mubr.bf16.mxu1 %v302_v21 }
  0x2a   :  { %241 = vmatmul.mubr.bf16.gmra.mrb[4].mxu1 %v301_v22 }
  0xf5   :  { %v342_v23 = vpop.f32.mrb[0].mxu1  ;;  %v336_v24 = vpop.f32.mrb[0].mxu0 }
  0xf6   :  { %v343_v25 = vpop.f32.mrb[1].mxu1  ;;  %v337_v27 = vpop.f32.mrb[1].mxu0 }
  0xf7   :  { %v344_v28 = vadd.f32 %v343_v25, %v342_v23  ;;  %v345_v29 = vpop.f32.mrb[2].mxu1  ;;  %v338_v30 = vadd.f32 %v337_v27, %v336_v24  ;;  %v339_v31 = vpop.f32.mrb[2].mxu0 }
  0xf8   :  { %v346_v33 = vpop.f32.mrb[3].mxu1  ;;  %v340_v35 = vpop.f32.mrb[3].mxu0 }
  0xf9   :  { %v275_v36 = vadd.f32 %v344_v28, %v319_v26  ;;  %v347_v37 = vadd.f32 %v346_v33, %v345_v29  ;;  %v273_v38 = vadd.f32 %v338_v30, %v319_v26  ;;  %v341_v39 = vadd.f32 %v340_v35, %v339_v31 }
  0xfb   :  { %v285_v42 = vadd.f32 %v280_v32, %v275_v36  ;;  %v276_v43 = vadd.f32 %v347_v37, %v319_v26  ;;  %v283_v44 = vadd.f32 %v278_v34, %v273_v38  ;;  %v274_v45 = vadd.f32 %v341_v39, %v319_v26 }
  0xfd   :  { %290 = vst [vmem:[%s519_s4 + $0x10] sm:$0xff] %v285_v42  ;;  %v286_v46 = vadd.f32 %v281_v40, %v276_v43  ;;  %288 = vst [vmem:[%s519_s4] sm:$0xff] %v283_v44  ;;  %v284_v47 = vadd.f32 %v279_v41, %v274_v45  ;;  %v348_v48 = vpop.f32.mrb[4].mxu1 }
  0xfe   :  { %v349_v49 = vpop.f32.mrb[5].mxu1 }
  0xff   :  { %291 = vst [vmem:[%s519_s4 + $0x18] sm:$0xff] %v286_v46  ;;  %289 = vst [vmem:[%s519_s4 + $0x8] sm:$0xff] %v284_v47  ;;  %v350_v50 = vadd.f32 %v349_v49, %v348_v48  ;;  %v351_v51 = vpop.f32.mrb[6].mxu1 }
 0x100   :  { %v352_v53 = vpop.f32.mrb[7].mxu1 }
 0x101   :  { %v277_v54 = vadd.f32 %v350_v50, %v319_v26 }
 0x103   :  { %v287_v55 = vadd.f32 %v282_v52, %v277_v54 }
 0x105   :  { %292 = vst [vmem:[%s519_s4 + $0x20] sm:$0xff] %v287_v55 }

// kernel: vit_forward.16
= control target key start
LH: loop header
LB: loop body
LE: loop exit
PB: predicated region body
PF: predicated region fallthrough
CT: control target
= control target key end

     0   :  { %s1134_s18 = smov 0   ;;  %s1136_s19 = smov 0   ;;  %s1282_s0 = inlined_call_operand.vmem [shape: f32[40,128], index: 0, kind: input, shape index: {}]   ;;  %s1283_s1 = inlined_call_operand.vmem [shape: f32[1,128], index: 1, kind: input, shape index: {}]   ;;  %s1284_s2 = inlined_call_operand.vmem [shape: f32[1,128], index: 2, kind: input, shape index: {}]   ;;  %s1285_s3 = inlined_call_operand.vmem [shape: bf16[128,256], index: 3, kind: input, shape index: {}]   ;;  %s1286_s4 = inlined_call_operand.vmem [shape: f32[1,256], index: 4, kind: input, shape index: {}]   ;;  %s1287_s5 = inlined_call_operand.vmem [shape: bf16[40,256], index: 5, kind: output, shape index: {}]  }
   0x1   :  { %s1138_s20 = smov 0   ;;  %s1140_s21 = smov 0  }
   0x2   :  { %s1142_s22 = smov 0  }
   0x3 LB: > { %s24_s23 = sadd.s32 1, %s1096_s21  ;;  %s864_s24 = sadd.s32 4294967295, %s1100_s22   ;;  %s1100_s22 = sphi %s1142_s22, %s15_s22   ;;  %s1096_s21 = sphi %s1140_s21, %s1292_s21   ;;  %s1092_s20 = sphi %s1138_s20, %s1291_s20   ;;  %s1088_s19 = sphi %s1136_s19, %s1290_s19   ;;  %s1084_s18 = sphi %s1134_s18, %s1289_s18  }
   0x4   : > { %p25_p0 = scmp.ge.s32.totalorder %s24_s23, 2  ;;  %p109_p1 = scmp.ne.s32.totalorder %s1088_s19, %s1084_s18 }
   0x5   : > { %p110_p2 = scmp.eq.s32.totalorder %s1100_s22, 0  ;;  %p167_p4 = scmp.eq.s32.totalorder %s864_s24, 1 }
   0x6   : > { %s1294_s23 = smov (%p25_p0, %s24_s23), 0  ;;  %s102_s26 = sadd.s32 1, %s1088_s19 }
   0x7   : > { %p111_p3 = por %p110_p2, %p109_p1  ;;  %s99_s25 = ssub.s32 %s1096_s21, %s1294_s23 }
   0x8   : > { %p100_p5 = scmp.eq.s32.totalorder %s99_s25, 0  ;;  %p1169_p6 = por %p167_p4, %p109_p1 }
   0x9   : > { %p868_p7 = scmp.ge.s32.totalorder %s1100_s22, 2 }
   0xa   : > { %s1174_s28 = scalar_select %p100_p5, %s1088_s19, %s102_s26  }
   0xb   : > { %204 = sbr.rel (%p868_p7) target bundleno = 32 (0x20), region = 28 }
  0x12   : > { %207 = sbr.rel (!%p111_p3) target bundleno = 32 (0x20), region = 32  ;;  %s209_s29 = sand.u32 (%p111_p3), 1, %s1088_s19  }
  0x13   : > { %s870_s30 = sshll.u32 (%p111_p3), %s1096_s21, 2  ;;  %s869_s6 = sshll.u32 (%p111_p3), %s209_s29, 6 }
  0x14   : > { %s1182_s9 = scalar_lea.vmem (%p111_p3), %s1285_s3, %s870_s30  ;;  %s211_s10 = scalar_lea.vmem (%p111_p3), [#allocation3], %s869_s6 }
  0x15   : > { %v229_v0 = vld [vmem:[%s1182_s9] sm:$0xf] (%p111_p3)  ;;  %v231_v1 = vld [vmem:[%s1182_s9 + $0x8] sm:$0xf] (%p111_p3)  ;;  %v233_v2 = vld [vmem:[%s1182_s9 + $0x10] sm:$0xf] (%p111_p3) }
  0x16   : > { %230 = vst [vmem:[%s211_s10] sm:$0xf] (%p111_p3), %v229_v0  ;;  %232 = vst [vmem:[%s211_s10 + $0x4] sm:$0xf] (%p111_p3), %v231_v1  ;;  %v235_v3 = vld [vmem:[%s1182_s9 + $0x18] sm:$0xf] (%p111_p3) }
  0x17   : > { %v237_v4 = vld [vmem:[%s1182_s9 + $0x20] sm:$0xf] (%p111_p3)  ;;  %234 = vst [vmem:[%s211_s10 + $0x8] sm:$0xf] (%p111_p3), %v233_v2  ;;  %236 = vst [vmem:[%s211_s10 + $0xc] sm:$0xf] (%p111_p3), %v235_v3 }
  0x18   : > { %238 = vst [vmem:[%s211_s10 + $0x10] sm:$0xf] (%p111_p3), %v237_v4  ;;  %v239_v5 = vld [vmem:[%s1182_s9 + $0x28] sm:$0xf] (%p111_p3)  ;;  %v241_v6 = vld [vmem:[%s1182_s9 + $0x30] sm:$0xf] (%p111_p3) }
  0x19   : > { %v243_v7 = vld [vmem:[%s1182_s9 + $0x38] sm:$0xf]  ;;  %240 = vst [vmem:[%s211_s10 + $0x14] sm:$0xf] %v239_v5  ;;  %242 = vst [vmem:[%s211_s10 + $0x18] sm:$0xf] %v241_v6 }
  0x1a   : > { %244 = vst [vmem:[%s211_s10 + $0x1c] sm:$0xf] %v243_v7  ;;  %v245_v8 = vld [vmem:[%s1182_s9 + $0x40] sm:$0xf]  ;;  %v247_v9 = vld [vmem:[%s1182_s9 + $0x48] sm:$0xf] }
  0x1b   : > { %v249_v10 = vld [vmem:[%s1182_s9 + $0x50] sm:$0xf]  ;;  %246 = vst [vmem:[%s211_s10 + $0x20] sm:$0xf] %v245_v8  ;;  %248 = vst [vmem:[%s211_s10 + $0x24] sm:$0xf] %v247_v9 }
  0x1c   : > { %250 = vst [vmem:[%s211_s10 + $0x28] sm:$0xf] %v249_v10  ;;  %v251_v11 = vld [vmem:[%s1182_s9 + $0x58] sm:$0xf]  ;;  %v253_v12 = vld [vmem:[%s1182_s9 + $0x60] sm:$0xf] }
  0x1d   : > { %v255_v13 = vld [vmem:[%s1182_s9 + $0x68] sm:$0xf]  ;;  %252 = vst [vmem:[%s211_s10 + $0x2c] sm:$0xf] %v251_v11  ;;  %254 = vst [vmem:[%s211_s10 + $0x30] sm:$0xf] %v253_v12 }
  0x1e   : > { %256 = vst [vmem:[%s211_s10 + $0x34] sm:$0xf] %v255_v13  ;;  %v257_v14 = vld [vmem:[%s1182_s9 + $0x70] sm:$0xf]  ;;  %v259_v15 = vld [vmem:[%s1182_s9 + $0x78] sm:$0xf] }
  0x1f   : > { %258 = vst [vmem:[%s211_s10 + $0x38] sm:$0xf] %v257_v14  ;;  %260 = vst [vmem:[%s211_s10 + $0x3c] sm:$0xf] %v259_v15 }
  0x20 PF: > { %p871_p8 = scmp.ge.s32.totalorder %s1100_s22, 1  ;;  %p320_p9 = scmp.lt.s32.totalorder %s1100_s22, 3 }
  0x22   : > { %p321_p10 = pnand %p871_p8, %p320_p9 }
  0x23   : > { %s327_s11 = sand.u32 (!%p321_p10), 1, %s1084_s18   ;;  %p367_p11 = scmp.lt.s32.totalorder (!%p321_p10), %s1092_s20, 1 }
  0x24   : > { %324 = sbr.rel (%p321_p10) target bundleno = 660 (0x294), region = 77  ;;  %s872_s12 = sshll.u32 (!%p321_p10), %s327_s11, 6 }
  0x25   : > { %s988_s13 = smul.u32 (!%p321_p10), 20, %s327_s11  ;;  %s1211_s24 = scalar_lea.vmem (!%p321_p10), [#allocation3], %s872_s12 }
  0x26   : > { %p873_p12 = scmp.ne.s32.totalorder (!%p321_p10), %s1092_s20, 0 }
  0x27   : > { %s1213_s25 = scalar_lea.vmem (!%p321_p10), [#allocation4], %s988_s13 }
  0x2b   : > { %s1205_s14 = scalar_select %p367_p11, %s1092_s20, 1 }
  0x2c   : > { %375 = sbr.rel (%p873_p12) target bundleno = 368 (0x170), region = 85  ;;  %v376_v16 = vld [vmem:[%s1282_s0] sm:$0xff] (!%p873_p12)  ;;  %v378_v17 = vld [vmem:[%s1282_s0 + $0x10] sm:$0xff] (!%p873_p12)  ;;  %v377_v18 = vld [vmem:[%s1282_s0 + $0x8] sm:$0xff] (!%p873_p12) }
  0x2d   : > { %s369_s17 = scalar_lea.vmem %s1286_s4, %s1205_s14  ;;  %381 = vadd.xlane.f32.xlu0 (!%p873_p12), %v376_v16  ;;  %385 = vadd.xlane.f32.xlu1 (!%p873_p12), %v378_v17  ;;  %v379_v19 = vld [vmem:[%s1282_s0 + $0x18] sm:$0xff] (!%p873_p12)  ;;  %v380_v20 = vld [vmem:[%s1282_s0 + $0x20] sm:$0xff] (!%p873_p12) }
  0x2e   : > { %v874_v58 = vld [vmem:[%s1283_s1] ss:$0 sm:$0xff] (!%p873_p12) }
  0x2f   : > { %v875_v0 = vld [vmem:[%s1284_s2] ss:$0 sm:$0xff] (!%p873_p12) }
  0x31   : > { %383 = vadd.xlane.f32.xlu0 (!%p873_p12), %v377_v18  ;;  %387 = vadd.xlane.f32.xlu1 (!%p873_p12), %v379_v19 }
  0x35   : > { %389 = vadd.xlane.f32.xlu0 %v380_v20 }
  0xba   : > { %v382_v21 = vpop.xlane.xlu0 %381  ;;  %v386_v22 = vpop.xlane.xlu1 %385 }
  0xbb   : > { %v392_v23 = vmul.f32 0.0078125, %v382_v21  ;;  %v394_v24 = vmul.f32 0.0078125, %v386_v22 }
  0xbd   : > { %v397_v25 = vsub.f32 %v376_v16, %v392_v23  ;;  %v399_v26 = vsub.f32 %v378_v17, %v394_v24 }
  0xbe   : > { %v384_v27 = vpop.xlane.xlu0 %383  ;;  %v388_v28 = vpop.xlane.xlu1 %387 }
  0xbf   : > { %v393_v29 = vmul.f32 0.0078125, %v384_v27  ;;  %v402_v30 = vmul.f32 %v397_v25, %v397_v25  ;;  %v395_v31 = vmul.f32 0.0078125, %v388_v28  ;;  %v404_v34 = vmul.f32 %v399_v26, %v399_v26 }
  0xc1   : > { %v398_v32 = vsub.f32 %v377_v18, %v393_v29  ;;  %407 = vadd.xlane.f32.xlu1 %v402_v30  ;;  %v400_v33 = vsub.f32 %v379_v19, %v395_v31 }
  0xc2   : > { %v390_v35 = vpop.xlane.xlu0 %389 }
  0xc3   : > { %v396_v36 = vmul.f32 0.0078125, %v390_v35  ;;  %v403_v37 = vmul.f32 %v398_v32, %v398_v32  ;;  %v405_v39 = vmul.f32 %v400_v33, %v400_v33 }
  0xc5   : > { %v401_v38 = vsub.f32 %v380_v20, %v396_v36  ;;  %411 = vadd.xlane.f32.xlu1 %v404_v34  ;;  %409 = vadd.xlane.f32.xlu0 %v403_v37 }
  0xc7   : > { %v406_v40 = vmul.f32 %v401_v38, %v401_v38 }
  0xc9   : > { %413 = vadd.xlane.f32.xlu0 %v405_v39  ;;  %415 = vadd.xlane.f32.xlu1 %v406_v40 }
 0x14e   : > { %v408_v41 = vpop.xlane.xlu1 %407 }
 0x14f   : > { %v417_v42 = vmul.f32 0.0078125, %v408_v41 }
 0x151   : > { %v422_v43 = vadd.f32 1e-05, %v417_v42 }
 0x152   : > { %v412_v44 = vpop.xlane.xlu1 %411  ;;  %v410_v45 = vpop.xlane.xlu0 %409 }
 0x153   : > { %1031 = vrsqrt.f32 %v422_v43  ;;  %v419_v46 = vmul.f32 0.0078125, %v412_v44  ;;  %v418_v47 = vmul.f32 0.0078125, %v410_v45 }
 0x155   : > { %v424_v48 = vadd.f32 1e-05, %v419_v46  ;;  %v423_v49 = vadd.f32 1e-05, %v418_v47 }
 0x156   : > { %v416_v50 = vpop.xlane.xlu1 %415  ;;  %v414_v51 = vpop.xlane.xlu0 %413 }
 0x157   : > { %1033 = vrsqrt.f32 %v424_v48  ;;  %v421_v52 = vmul.f32 0.0078125, %v416_v50  ;;  %v420_v53 = vmul.f32 0.0078125, %v414_v51 }
 0x158   : > { %1035 = vrsqrt.f32 %v423_v49 }
 0x159   : > { %v426_v54 = vadd.f32 1e-05, %v421_v52  ;;  %v425_v55 = vadd.f32 1e-05, %v420_v53 }
 0x15b   : > { %1037 = vrsqrt.f32 %v426_v54 }
 0x15c   : > { %1039 = vrsqrt.f32 %v425_v55 }
 0x15d   : > { %v1032_v56 = vpop.eup %1031 }
 0x15e   : > { %v432_v57 = vmul.f32 %v1032_v56, %v397_v25 }
 0x160   : > { %v444_v61 = vmul.f32 %v874_v58, %v432_v57 }
 0x161   : > { %v1034_v59 = vpop.eup %1033 }
 0x162   : > { %v1036_v60 = vpop.eup %1035  ;;  %v434_v62 = vmul.f32 %v1034_v59, %v399_v26  ;;  %v456_v5 = vadd.f32 %v875_v0, %v444_v61 }
 0x163   : > { %v433_v63 = vmul.f32 %v1036_v60, %v398_v32 }
 0x164   : > { %v446_v6 = vmul.f32 %v874_v58, %v434_v62 }
 0x165   : > { %v1038_v1 = vpop.eup %1037  ;;  %v445_v2 = vmul.f32 %v874_v58, %v433_v63 }
 0x166   : > { %v1040_v3 = vpop.eup %1039  ;;  %v436_v4 = vmul.f32 %v1038_v1, %v401_v38  ;;  %v458_v13 = vadd.f32 %v875_v0, %v446_v6 }
 0x167   : > { %v457_v7 = vadd.f32 %v875_v0, %v445_v2  ;;  %v435_v8 = vmul.f32 %v1040_v3, %v400_v33 }
 0x168   : > { %v448_v9 = vmul.f32 %v874_v58, %v436_v4 }
 0x169   : > { %v914_v10 = vpack.c.bf16 %v457_v7, %v456_v5  ;;  %v447_v11 = vmul.f32 %v874_v58, %v435_v8 }
 0x16a   : > { %v460_v12 = vadd.f32 %v875_v0, %v448_v9 }
 0x16b   : > { %915 = vst [vmem:[#allocation2] sm:$0xff] %v914_v10   ;;  %v459_v14 = vadd.f32 %v875_v0, %v447_v11 }
 0x16c   : > { %v905_v15 = vpack.c.bf16 %v460_v12, %v460_v12 }
 0x16d   : > { %v919_v16 = vpack.c.bf16 %v459_v14, %v458_v13 }
 0x16e   : > { %486 = vst [vmem:[#allocation2 + $0x10] sm:$0xf] %v905_v15 }
 0x16f   : > { %931 = vst [vmem:[#allocation2 + $0x8] sm:$0xff] %v919_v16  }
 0x170 PF: > { %v1041_v17 = vld [vmem:[%s1211_s24] sm:$0xff]   ;;  %v1102_v18 = vmov 0.0   ;;  %v1042_v19 = vld [vmem:[%s1211_s24 + $0x8] sm:$0xff]   ;;  %vm1103_vm0 = vmmov 0   ;;  %v1043_v20 = vld [vmem:[%s1211_s24 + $0x10] sm:$0xff]   ;;  %s898_s14 = sshll.u32 (%p1169_p6), %s1092_s20, 2 }
 0x171   : > { %944 = vmatprep.subr.bf16.mxu0 %v1102_v18  ;;  %972 = vmatprep.subr.bf16.mxu1 %v1102_v18  ;;  %v1044_v21 = vld [vmem:[%s1211_s24 + $0x18] sm:$0xff]   ;;  %v1045_v22 = vld [vmem:[%s1211_s24 + $0x20] sm:$0xff]   ;;  %v1046_v23 = vld [vmem:[%s1211_s24 + $0x28] sm:$0xff]   ;;  %s717_s18 = scalar_lea.vmem (%p1169_p6), %s1287_s5, %s898_s14 }
 0x172   : > { %945 = vmatpush3.bf16.msra.mxu0 %v1041_v17  ;;  %980 = vmatpush3.bf16.msra.mxu1 %v1041_v17  ;;  %v1047_v24 = vld [vmem:[%s1211_s24 + $0x30] sm:$0xff]   ;;  %v1048_v25 = vld [vmem:[%s1211_s24 + $0x38] sm:$0xff]   ;;  %v881_v29 = vld [vmem:[%s369_s17] ss:$0 sm:$0xff] }
 0x173   : > { %946 = vmatprep.subr.bf16.mxu0 %v1102_v18  ;;  %973 = vmatprep.subr.bf16.mxu1 %v1102_v18  ;;  %v1049_v26 = vld [vmem:[#allocation2] sm:$0xff]  }
 0x174   : > { %960 = vmatprep.mubr.msk.bf16.mxu0 %vm1103_vm0, %v1102_v18  ;;  %964 = vmatprep.mubr.msk.bf16.mxu1 %vm1103_vm0, %v1102_v18 }
 0x175   : > { %v1051_v28 = vld [vmem:[#allocation2 + $0x10] ss:$0 sps:$4 sm:$0xff]  }
 0x176   : > { %947 = vmatpush3.bf16.msra.mxu0 %v1042_v19  ;;  %981 = vmatpush3.bf16.msra.mxu1 %v1042_v19  ;;  %v1050_v27 = vld [vmem:[#allocation2 + $0x8] sm:$0xff]  }
 0x177   : > { %948 = vmatprep.subr.bf16.mxu0 %v1102_v18  ;;  %974 = vmatprep.subr.bf16.mxu1 %v1102_v18 }
 0x17a   : > { %949 = vmatpush3.bf16.msra.mxu0 %v1043_v20  ;;  %982 = vmatpush3.bf16.msra.mxu1 %v1043_v20 }
 0x17b   : > { %950 = vmatprep.subr.bf16.mxu0 %v1102_v18  ;;  %975 = vmatprep.subr.bf16.mxu1 %v1102_v18 }
 0x17e   : > { %951 = vmatpush3.bf16.msra.mxu0 %v1044_v21  ;;  %983 = vmatpush3.bf16.msra.mxu1 %v1044_v21 }
 0x17f   : > { %952 = vmatprep.subr.bf16.mxu0 %v1102_v18  ;;  %976 = vmatprep.subr.bf16.mxu1 %v1102_v18 }
 0x182   : > { %953 = vmatpush3.bf16.msra.mxu0 %v1045_v22  ;;  %984 = vmatpush3.bf16.msra.mxu1 %v1045_v22 }
 0x183   : > { %954 = vmatprep.subr.bf16.mxu0 %v1102_v18  ;;  %977 = vmatprep.subr.bf16.mxu1 %v1102_v18 }
 0x186   : > { %955 = vmatpush3.bf16.msra.mxu0 %v1046_v23  ;;  %985 = vmatpush3.bf16.msra.mxu1 %v1046_v23 }
 0x187   : > { %956 = vmatprep.subr.bf16.mxu0 %v1102_v18  ;;  %978 = vmatprep.subr.bf16.mxu1 %v1102_v18 }
 0x18a   : > { %957 = vmatpush3.bf16.msra.mxu0 %v1047_v24  ;;  %986 = vmatpush3.bf16.msra.mxu1 %v1047_v24 }
 0x18b   : > { %958 = vmatprep.subr.bf16.mxu0 %v1102_v18  ;;  %979 = vmatprep.subr.bf16.mxu1 %v1102_v18 }
 0x18e   : > { %959 = vmatpush3.bf16.msra.mxu0 %v1048_v25  ;;  %987 = vmatpush3.bf16.msra.mxu1 %v1048_v25 }
 0x191   : > { %961 = vmatmul.mubr.bf16.vlgmr.msra.gmra.mrb[0].mxu0 %v1049_v26  ;;  %965 = vmatmul.mubr.bf16.vlgmr.msra.gmra.mrb[0].mxu1 %v1050_v27 }
 0x192   : > { %968 = vmatprep.mubr.msk.bf16.mxu1 %vm1103_vm0, %v1102_v18 }
 0x199   : > { %969 = vmatmul.mubr.bf16.gmra.mrb[4].mxu1 %v1051_v28 }
 0x264   : > { %v613_v30 = vpop.f32.mrb[0].mxu0  ;;  %v621_v31 = vpop.f32.mrb[0].mxu1 }
 0x265   : > { %v614_v32 = vadd.f32 %v881_v29, %v613_v30  ;;  %v622_v33 = vadd.f32 %v881_v29, %v621_v31  ;;  %v962_v34 = vpop.f32.mrb[1].mxu0  ;;  %v966_v35 = vpop.f32.mrb[1].mxu1 }
 0x266   : > { %v616_v36 = vpop.f32.mrb[2].mxu0  ;;  %v624_v37 = vpop.f32.mrb[2].mxu1 }
 0x267   : > { %v640_v38 = vmul.f32 0.044715, %v614_v32  ;;  %v642_v39 = vmul.f32 0.044715, %v622_v33  ;;  %v617_v40 = vadd.f32 %v881_v29, %v616_v36  ;;  %v625_v41 = vadd.f32 %v881_v29, %v624_v37  ;;  %v967_v42 = vpop.f32.mrb[3].mxu1  ;;  %v963_v43 = vpop.f32.mrb[3].mxu0 }
 0x268   : > { %v635_v14 = vmul.f32 0.5, %v614_v32  ;;  %v637_v17 = vmul.f32 0.5, %v622_v33 }
 0x269   : > { %v645_v44 = vmul.f32 %v640_v38, %v614_v32  ;;  %v647_v45 = vmul.f32 %v642_v39, %v622_v33  ;;  %v641_v46 = vmul.f32 0.044715, %v617_v40  ;;  %v643_v47 = vmul.f32 0.044715, %v625_v41 }
 0x26a   : > { %v636_v15 = vmul.f32 0.5, %v617_v40  ;;  %v638_v18 = vmul.f32 0.5, %v625_v41 }
 0x26b   : > { %v650_v48 = vmul.f32 %v645_v44, %v614_v32  ;;  %v652_v49 = vmul.f32 %v647_v45, %v622_v33  ;;  %v646_v50 = vmul.f32 %v641_v46, %v617_v40  ;;  %v648_v51 = vmul.f32 %v643_v47, %v625_v41 }
 0x26c   : > { %v629_v52 = vpop.f32.mrb[4].mxu1 }
 0x26d   : > { %v655_v53 = vadd.f32 %v650_v48, %v614_v32  ;;  %v657_v54 = vadd.f32 %v652_v49, %v622_v33  ;;  %v630_v55 = vadd.f32 %v881_v29, %v629_v52  ;;  %v970_v56 = vpop.f32.mrb[5].mxu1  ;;  %v651_v57 = vmul.f32 %v646_v50, %v617_v40 }
 0x26e   : > { %v653_v58 = vmul.f32 %v648_v51, %v625_v41  ;;  %v632_v59 = vpop.f32.mrb[6].mxu1 }
 0x26f   : > { %v660_v60 = vmul.f32 0.7978846, %v655_v53  ;;  %v662_v61 = vmul.f32 0.7978846, %v657_v54  ;;  %v971_v62 = vpop.f32.mrb[7].mxu1  ;;  %v656_v63 = vadd.f32 %v651_v57, %v617_v40  ;;  %v639_v27 = vmul.f32 0.5, %v630_v55 }
 0x270   : > { %v658_v0 = vadd.f32 %v653_v58, %v625_v41  ;;  %v644_v1 = vmul.f32 0.044715, %v630_v55 }
 0x271   : > { %1052 = vtanh.f32 %v660_v60  ;;  %v661_v2 = vmul.f32 0.7978846, %v656_v63 }
 0x272   : > { %1054 = vtanh.f32 %v662_v61  ;;  %v663_v3 = vmul.f32 0.7978846, %v658_v0  ;;  %v649_v4 = vmul.f32 %v644_v1, %v630_v55 }
 0x273   : > { %1056 = vtanh.f32 %v661_v2 }
 0x274   : > { %v654_v5 = vmul.f32 %v649_v4, %v630_v55  ;;  %1058 = vtanh.f32 %v663_v3 }
 0x276   : > { %v659_v6 = vadd.f32 %v654_v5, %v630_v55 }
 0x278   : > { %v664_v7 = vmul.f32 0.7978846, %v659_v6 }
 0x27a   : > { %1060 = vtanh.f32 %v664_v7 }
 0x27b   : > { %v1053_v8 = vpop.eup %1052 }
 0x27c   : > { %v1055_v9 = vpop.eup %1054  ;;  %v670_v10 = vadd.f32 1.0, %v1053_v8 }
 0x27d   : > { %v1057_v11 = vpop.eup %1056  ;;  %v672_v12 = vadd.f32 1.0, %v1055_v9 }
 0x27e   : > { %v1059_v13 = vpop.eup %1058  ;;  %v671_v16 = vadd.f32 1.0, %v1057_v11  ;;  %v675_v20 = vmul.f32 %v670_v10, %v635_v14 }
 0x27f   : > { %v673_v19 = vadd.f32 1.0, %v1059_v13  ;;  %v677_v22 = vmul.f32 %v672_v12, %v637_v17 }
 0x280   : > { %v676_v21 = vmul.f32 %v671_v16, %v636_v15 }
 0x281   : > { %v678_v23 = vmul.f32 %v673_v19, %v638_v18 }
 0x282   : > { %v924_v24 = vpack.c.bf16 %v676_v21, %v675_v20 }
 0x283   : > { %v929_v26 = vpack.c.bf16 %v678_v23, %v677_v22 }
 0x284   : > { %v1061_v25 = vpop.eup %1060  ;;  %925 = vst [vmem:[%s1213_s25] sm:$0xff] %v924_v24  }
 0x285   : > { %v674_v28 = vadd.f32 1.0, %v1061_v25  ;;  %932 = vst [vmem:[%s1213_s25 + $0x8] sm:$0xff] %v929_v26   ;;  %712 = sbr.rel (!%p1169_p6) target bundleno = 660 (0x294), region = 89 }
 0x287   : > { %v679_v29 = vmul.f32 %v674_v28, %v639_v27 }
 0x289   : > { %v910_v30 = vpack.c.bf16 %v679_v29, %v679_v29 }
 0x28b   : > { %705 = vst [vmem:[%s1213_s25 + $0x10] sm:$0xf] %v910_v30  ;;  %v733_v31 = vld [vmem:[%s1213_s25] sm:$0xf] (%p1169_p6)  ;;  %v735_v32 = vld [vmem:[%s1213_s25 + $0x4] sm:$0xf] (%p1169_p6) }
 0x28c   : > { %v737_v33 = vld [vmem:[%s1213_s25 + $0x8] sm:$0xf]  ;;  %v739_v34 = vld [vmem:[%s1213_s25 + $0xc] sm:$0xf]  ;;  %734 = vst [vmem:[%s717_s18] sm:$0xf] %v733_v31 }
 0x28d   : > { %736 = vst [vmem:[%s717_s18 + $0x8] sm:$0xf] %v735_v32  ;;  %738 = vst [vmem:[%s717_s18 + $0x10] sm:$0xf] %v737_v33 }
 0x28e   : > { %740 = vst [vmem:[%s717_s18 + $0x18] sm:$0xf] %v739_v34 }
 0x292   : > { %v741_v35 = vld [vmem:[%s1213_s25 + $0x10] sm:$0xf] }
 0x293   : > { %742 = vst [vmem:[%s717_s18 + $0x20] sm:$0xf] %v741_v35 }
 0x294 PF: > { %s15_s22 = sadd.s32 1, %s1100_s22   ;;  %s1289_s18 = smov %s1088_s19 }
 0x295   : > { %p12_p13 = scmp.ge.s32.totalorder %s15_s22, 4   ;;  %s1290_s19 = smov %s1174_s28 }
 0x296   : > { %s1291_s20 = smov %s1096_s21  ;;  %s1292_s21 = smov %s1294_s23 }
 0x297   :  { %14 = sbr.rel (!%p12_p13) target bundleno = 3 (0x3), region = 167 }

// kernel: vit_forward.23
= control target key start
LH: loop header
LB: loop body
LE: loop exit
PB: predicated region body
PF: predicated region fallthrough
CT: control target
= control target key end

     0   :  { %v392_v1 = vmov 0.0   ;;  %vm393_vm0 = vmmov 0   ;;  %s494_s0 = inlined_call_operand.vmem [shape: f32[2,128], index: 0, kind: input, shape index: {}]   ;;  %s495_s1 = inlined_call_operand.vmem [shape: bf16[128,128], index: 1, kind: input, shape index: {}]   ;;  %s496_s2 = inlined_call_operand.vmem [shape: f32[1,128], index: 2, kind: input, shape index: {}]   ;;  %s497_s3 = inlined_call_operand.vmem [shape: bf16[128,128], index: 3, kind: input, shape index: {}]   ;;  %s498_s4 = inlined_call_operand.vmem [shape: f32[1,128], index: 4, kind: input, shape index: {}]   ;;  %s499_s5 = inlined_call_operand.hbm [shape: f32[2,128], index: 5, kind: output, shape index: {}]  }
   0x1   :  { %v350_v0 = vld [vmem:[%s495_s1] sm:$0xff]   ;;  %307 = vmatprep.subr.bf16.mxu0 %v392_v1  ;;  %327 = vmatprep.subr.bf16.mxu1 %v392_v1  ;;  %v351_v2 = vld [vmem:[%s495_s1 + $0x8] sm:$0xff]   ;;  %v352_v3 = vld [vmem:[%s495_s1 + $0x10] sm:$0xff]  }
   0x2   :  { %308 = vmatpush3.bf16.msra.mxu0 %v350_v0  ;;  %323 = vmatprep.mubr.msk.bf16.mxu0 %vm393_vm0, %v392_v1  ;;  %v353_v4 = vld [vmem:[%s495_s1 + $0x18] sm:$0xff]   ;;  %v358_v5 = vld [vmem:[%s497_s3] sm:$0xff]  }
   0x3   :  { %309 = vmatprep.subr.bf16.mxu0 %v392_v1  ;;  %343 = vmatprep.mubr.msk.bf16.mxu1 %vm393_vm0, %v392_v1  ;;  %v354_v6 = vld [vmem:[%s495_s1 + $0x20] sm:$0xff]  }
   0x4   :  { %328 = vmatpush3.bf16.msra.mxu1 %v358_v5 }
   0x5   :  { %329 = vmatprep.subr.bf16.mxu1 %v392_v1 }
   0x6   :  { %310 = vmatpush3.bf16.msra.mxu0 %v351_v2 }
   0x7   :  { %311 = vmatprep.subr.bf16.mxu0 %v392_v1 }
   0xa   :  { %312 = vmatpush3.bf16.msra.mxu0 %v352_v3 }
   0xb   :  { %313 = vmatprep.subr.bf16.mxu0 %v392_v1 }
   0xe   :  { %314 = vmatpush3.bf16.msra.mxu0 %v353_v4 }
   0xf   :  { %10 = vsyncpa [#allocation3], 0  ;;  %315 = vmatprep.subr.bf16.mxu0 %v392_v1  ;;  %v355_v7 = vld [vmem:[%s495_s1 + $0x28] sm:$0xff]   ;;  %v356_v8 = vld [vmem:[%s495_s1 + $0x30] sm:$0xff]  }
  0x10   :  { %v357_v9 = vld [vmem:[%s495_s1 + $0x38] sm:$0xff]   ;;  %v22_v10 = vld [vmem:[%s494_s0] sm:$0x3]  ;;  %v359_v12 = vld [vmem:[%s497_s3 + $0x8] sm:$0xff]  }
  0x11   :  { %v23_v11 = vpack.c.bf16 %v22_v10, %v22_v10  ;;  %330 = vmatpush3.bf16.msra.mxu1 %v359_v12  ;;  %v360_v13 = vld [vmem:[%s497_s3 + $0x10] sm:$0xff]   ;;  %v361_v14 = vld [vmem:[%s497_s3 + $0x18] sm:$0xff]   ;;  %v362_v15 = vld [vmem:[%s497_s3 + $0x20] sm:$0xff]  }
  0x12   :  { %316 = vmatpush3.bf16.msra.mxu0 %v354_v6  ;;  %331 = vmatprep.subr.bf16.mxu1 %v392_v1  ;;  %v363_v16 = vld [vmem:[%s497_s3 + $0x28] sm:$0xff]   ;;  %v364_v17 = vld [vmem:[%s497_s3 + $0x30] sm:$0xff]   ;;  %v365_v18 = vld [vmem:[%s497_s3 + $0x38] sm:$0xff]  }
  0x13   :  { %317 = vmatprep.subr.bf16.mxu0 %v392_v1  ;;  %v271_v19 = vld [vmem:[%s496_s2] ss:$0 sm:$0xff]  ;;  %s394_s2 = smov [#allocation2]  }
  0x14   :  { %v280_v35 = vld [vmem:[%s498_s4] ss:$0 sm:$0xff]  ;;  %s263_s28 = sshll.u32 %s394_s2, 4  ;;  %s264_s28 = int_to_ptr.vmem [resolvable:$true] %s263_s28 }
  0x15   :  { %332 = vmatpush3.bf16.msra.mxu1 %v360_v13  ;;  %s368_s29 = scalar_lea.vmem %s264_s28, 32  ;;  %p373_p1 = scmp.lt.s32.totalorder %s264_s28, %s264_s28 }
  0x16   :  { %318 = vmatpush3.bf16.msra.mxu0 %v355_v7  ;;  %333 = vmatprep.subr.bf16.mxu1 %v392_v1  ;;  %p369_p0 = scmp.ne.s32.totalorder %s264_s28, %s368_s29  ;;  %p374_p2 = scmp.lt.s32.totalorder %s368_s29, %s368_s29 }
  0x17   :  { %319 = vmatprep.subr.bf16.mxu0 %v392_v1 }
  0x18   :  { %p375_p3 = por %p374_p2, %p373_p1 }
  0x19   :  { %334 = vmatpush3.bf16.msra.mxu1 %v361_v14 }
  0x1a   :  { %320 = vmatpush3.bf16.msra.mxu0 %v356_v8  ;;  %335 = vmatprep.subr.bf16.mxu1 %v392_v1  ;;  %p376_p4 = pnand %p375_p3, %p369_p0 }
  0x1b   :  { %321 = vmatprep.subr.bf16.mxu0 %v392_v1 }
  0x1d   :  { %336 = vmatpush3.bf16.msra.mxu1 %v362_v15 }
  0x1e   :  { %322 = vmatpush3.bf16.msra.mxu0 %v357_v9  ;;  %337 = vmatprep.subr.bf16.mxu1 %v392_v1 }
  0x21   :  { %324 = vmatmul.mubr.bf16.vlgmr.msra.gmra.mrb[0].mxu0 %v23_v11  ;;  %338 = vmatpush3.bf16.msra.mxu1 %v363_v16 }
  0x22   :  { %339 = vmatprep.subr.bf16.mxu1 %v392_v1 }
  0x25   :  { %340 = vmatpush3.bf16.msra.mxu1 %v364_v17 }
  0x26   :  { %341 = vmatprep.subr.bf16.mxu1 %v392_v1 }
  0x29   :  { %342 = vmatpush3.bf16.msra.mxu1 %v365_v18 }
  0xf4   :  { %v129_v20 = vpop.f32.mrb[0].mxu0 }
  0xf5   :  { %v130_v21 = vadd.f32 %v271_v19, %v129_v20  ;;  %v325_v22 = vpop.f32.mrb[1].mxu0 }
  0xf6   :  { %v132_v23 = vpop.f32.mrb[2].mxu0 }
  0xf7   :  { %v136_v24 = vmul.f32 0.044715, %v130_v21  ;;  %v326_v25 = vpop.f32.mrb[3].mxu0  ;;  %v135_v31 = vmul.f32 0.5, %v130_v21 }
  0xf9   :  { %v137_v26 = vmul.f32 %v136_v24, %v130_v21 }
  0xfb   :  { %v138_v27 = vmul.f32 %v137_v26, %v130_v21 }
  0xfd   :  { %v139_v28 = vadd.f32 %v138_v27, %v130_v21 }
  0xff   :  { %v140_v29 = vmul.f32 0.7978846, %v139_v28 }
 0x101   :  { %366 = vtanh.f32 %v140_v29 }
 0x10b   :  { %v367_v30 = vpop.eup %366 }
 0x10c   :  { %v142_v32 = vadd.f32 1.0, %v367_v30 }
 0x10e   :  { %v143_v33 = vmul.f32 %v142_v32, %v135_v31 }
 0x110   :  { %v144_v34 = vpack.c.bf16 %v143_v33, %v143_v33 }
 0x112   :  { %344 = vmatmul.mubr.bf16.vlgmr.msra.gmra.mrb[0].mxu1 %v144_v34 }
 0x1e5   :  { %v250_v36 = vpop.f32.mrb[0].mxu1 }
 0x1e6   :  { %v251_v37 = vadd.f32 %v280_v35, %v250_v36  ;;  %v345_v38 = vpop.f32.mrb[1].mxu1 }
 0x1e7   :  { %v253_v39 = vpop.f32.mrb[2].mxu1 }
 0x1e8   :  { %256 = vst [vmem:[#allocation2] sm:$0x3] %v251_v37  ;;  %v346_v40 = vpop.f32.mrb[3].mxu1 }
 0x1e9   :  { %379 = shalt.err (!%p376_p4)
}
 0x1ea   :  { %s380_s4 = scalar_lea.hbm %s499_s5, 32 }
 0x1eb   :  { %p381_p5 = scmp.ne.s32.totalorder %s499_s5, %s380_s4  ;;  %p384_p6 = scmp.lt.u32.totalorder %s380_s4, %s499_s5 }
 0x1ed   :  { %p386_p7 = pnand %p384_p6, %p381_p5 }
 0x1ef   :  { %389 = shalt.err (!%p386_p7)
}
 0x1f0   :  { %266 = dma.vmem_to_hbm [thread:$0]  %s264_s28, 32, %s499_s5, [#allocation3]  }
 0x1f1   :  { %390 = dma.done.wait [#allocation3], 32  }
 0x1f2   :  { %391 = vsyncadd [#allocation3], 4294967264 }
 0x1f3   :  { %270 = vsyncpa [#allocation3], 1 }

</bundles_post_ra>
